<compile_context>
chip_gen: v7x
topology: tpu7x:2x2x1
jax: 0.10.0
libtpu: 0.0.40
codegen_flags: <defaults>
</compile_context>

<pallas_src>
import jax
import jax.numpy as jnp
from jax.experimental import pallas as pl
from jax.experimental.pallas import tpu as pltpu


def _layernorm(x, gamma, beta, eps=1e-5):
    # x: (N, D); gamma/beta: (1, D). Matches torch.nn.LayerNorm(eps=1e-5).
    mu = jnp.mean(x, axis=-1, keepdims=True)
    var = jnp.mean((x - mu) ** 2, axis=-1, keepdims=True)
    return (x - mu) * jax.lax.rsqrt(var + eps) * gamma + beta


def fused_transformer_kernel(x_ref, wq_ref, wk_ref, wv_ref, wo_ref,
                             ff1w_ref, ff2w_ref, vec_ref, ff1b_ref,
                             lng_ref, lnb_ref, fcw_ref, fcb_ref,
                             o_ref, act_ref):
    """One nn.TransformerEncoderLayer per grid step (post-norm, ReLU FFN) + fused head.

    Grid axis 0 = layer index.  act_ref (VMEM scratch) holds the (B*S, D) activation
    resident across layers; o_ref (padded logits) is only written at the last layer.
    """
    l = pl.program_id(0)
    B, S, D = x_ref.shape
    BS = B * S
    H = wq_ref.shape[0]
    hd = wq_ref.shape[2]
    cdt = wq_ref.dtype                      # MXU operand dtype (float32 or bfloat16)

    @pl.when(l == 0)
    def _():
        act_ref[...] = x_ref[...].reshape(BS, D)     # load embedding once

    x = act_ref[...]                        # (BS, D) f32, resident across layers
    xh = x.astype(cdt)

    vec = vec_ref[...]                      # (9, D) f32 packed per-layer vectors
    qb, kb, vb = vec[0:1, :], vec[1:2, :], vec[2:3, :]
    ob = vec[3:4, :]
    ln1g, ln1b = vec[4:5, :], vec[5:6, :]
    ln2g, ln2b = vec[6:7, :], vec[7:8, :]
    ff2b = vec[8:9, :]

    # --- self-attention: per-head unroll over head-stacked weights (scale pre-folded) ---
    attn = jnp.zeros((BS, D), jnp.float32)
    for h in range(H):                      # small static unroll
        csl = slice(h * hd, (h + 1) * hd)
        qh = (jnp.dot(xh, wq_ref[h], preferred_element_type=jnp.float32)
              + qb[:, csl]).reshape(B, S, hd)
        kh = (jnp.dot(xh, wk_ref[h], preferred_element_type=jnp.float32)
              + kb[:, csl]).reshape(B, S, hd)
        vh = (jnp.dot(xh, wv_ref[h], preferred_element_type=jnp.float32)
              + vb[:, csl]).reshape(B, S, hd)
        s = jnp.einsum('bqd,bkd->bqk', qh.astype(cdt), kh.astype(cdt),
                       preferred_element_type=jnp.float32)           # (B, S, S)
        s = s - jnp.max(s, axis=-1, keepdims=True)
        p = jnp.exp(s)
        p = p * pl.reciprocal(jnp.sum(p, axis=-1, keepdims=True), approx=True)
        ctx = jnp.einsum('bqk,bkd->bqd', p.astype(cdt), vh.astype(cdt),
                         preferred_element_type=jnp.float32)         # (B, S, hd)
        # fused out-projection per head (no concat relayout): sum_h ctx_h @ Wo_h
        attn = attn + jnp.dot(ctx.reshape(BS, hd).astype(cdt), wo_ref[h],
                              preferred_element_type=jnp.float32)
    attn = attn + ob

    # --- residual + norm1 (post-norm) ---
    x1 = _layernorm(x + attn, ln1g, ln1b)

    # --- feed-forward: linear -> relu -> linear (weights pre-transposed / pre-cast) ---
    h1 = jnp.dot(x1.astype(cdt), ff1w_ref[...],
                 preferred_element_type=jnp.float32) + ff1b_ref[...]
    h1 = jnp.maximum(h1, 0.0)
    h2 = jnp.dot(h1.astype(cdt), ff2w_ref[...],
                 preferred_element_type=jnp.float32) + ff2b
    x2 = _layernorm(x1 + h2, ln2g, ln2b)

    act_ref[...] = x2                       # stays resident for the next layer

    # --- fused head at the last layer: final LayerNorm + fc on the last token only ---
    @pl.when(l == pl.num_programs(0) - 1)
    def _():
        x_last = x2.reshape(B, S, D)[:, S - 1, :]                    # (B, D)
        y = _layernorm(x_last, lng_ref[...], lnb_ref[...])
        o_ref[...] = (jnp.dot(y.astype(cdt), fcw_ref[...],
                              preferred_element_type=jnp.float32) + fcb_ref[...])


def transformer_forward(tokens, p, *, out_dim):
    # Embedding gather stays in plain-JAX glue; all matmul/attention/LN hot paths run
    # inside the single fused Pallas kernel.
    x = jnp.take(p['embedding'], tokens, axis=0).astype(jnp.float32)   # (B, S, D)
    B, S, D = x.shape
    L, H, _, hd = p['wq'].shape
    d_ff = p['ff1_w'].shape[-1]
    out_pad = p['fc_w'].shape[-1]

    def wspec(shape):
        # Per-layer weight tile: leading (squeezed) layer dim indexed by grid step l.
        n = len(shape)
        return pl.BlockSpec((None,) + shape, lambda l, n=n: (l,) + (0,) * n)

    def cspec(shape):
        # Constant (fetched-once) full-array block.
        n = len(shape)
        return pl.BlockSpec(shape, lambda l, n=n: (0,) * n)

    in_specs = [
        cspec((B, S, D)),                 # embedding activation (read at l == 0)
        wspec((H, D, hd)),                # wq  (scale folded in)
        wspec((H, D, hd)),                # wk
        wspec((H, D, hd)),                # wv
        wspec((H, hd, D)),                # wo
        wspec((D, d_ff)),                 # ff1_w
        wspec((d_ff, D)),                 # ff2_w
        wspec((9, D)),                    # packed per-layer vectors
        wspec((1, d_ff)),                 # ff1_b
        cspec((1, D)), cspec((1, D)),     # final ln gamma / beta
        cspec((D, out_pad)),              # fc_w (padded to 128 lanes)
        cspec((1, out_pad)),              # fc_b
    ]
    out_spec = cspec((B, out_pad))        # lane-dense padded logits, written at l==L-1

    # VMEM budget from the packed shapes: 2x (double-buffered) per-layer weights +
    # embedding block + resident activation scratch + head params + output.
    wbytes = p['wq'].dtype.itemsize
    per_layer = wbytes * (4 * D * D + 2 * D * d_ff) + 4 * (9 * D + d_ff)
    est = (2 * per_layer + 4 * (2 * B * S * D)
           + wbytes * D * out_pad + 4 * (2 * D + out_pad + B * out_pad))
    vmem_limit = int(min(max(2 * est + (8 << 20), 32 << 20), 100 << 20))

    out = pl.pallas_call(
        fused_transformer_kernel,
        grid=(L,),
        out_shape=jax.ShapeDtypeStruct((B, out_pad), jnp.float32),
        in_specs=in_specs,
        out_specs=out_spec,
        scratch_shapes=[pltpu.VMEM((B * S, D), jnp.float32)],   # resident activation
        compiler_params=pltpu.CompilerParams(
            dimension_semantics=("arbitrary",),                 # layers are sequential
            vmem_limit_bytes=vmem_limit),
    )(x, p['wq'], p['wk'], p['wv'], p['wo'],
      p['ff1_w'], p['ff2_w'], p['vec_d'], p['ff1_b'],
      p['ln_g'], p['ln_b'], p['fc_w'], p['fc_b'])
    return out[:, :out_dim]


def init_params(key, input_dim, output_dim, d_model, n_head, num_layers, d_ff):
    """PyTorch-layout parameters: every linear weight is (out_features, in_features)."""
    assert d_model % n_head == 0
    keys = jax.random.split(key, 2 + num_layers)

    def dense(k, shape, scale=0.05):
        return (scale * jax.random.normal(k, shape)).astype(jnp.float32)

    params = {
        'embedding': dense(keys[0], (input_dim, d_model), scale=1.0),
        'ln_g': jnp.ones((1, d_model), jnp.float32),
        'ln_b': jnp.zeros((1, d_model), jnp.float32),
        'fc_w': dense(keys[1], (output_dim, d_model)),
        'fc_b': jnp.zeros((1, output_dim), jnp.float32),
        'layers': [],
    }
    for i in range(num_layers):
        lk = jax.random.split(keys[2 + i], 4)
        params['layers'].append({
            'in_proj_w': dense(lk[0], (3 * d_model, d_model)),
            'in_proj_b': jnp.zeros((1, 3 * d_model), jnp.float32),
            'out_proj_w': dense(lk[1], (d_model, d_model)),
            'out_proj_b': jnp.zeros((1, d_model), jnp.float32),
            'ln1_g': jnp.ones((1, d_model), jnp.float32),
            'ln1_b': jnp.zeros((1, d_model), jnp.float32),
            'ln2_g': jnp.ones((1, d_model), jnp.float32),
            'ln2_b': jnp.zeros((1, d_model), jnp.float32),
            'ff1_w': dense(lk[2], (d_ff, d_model)),
            'ff1_b': jnp.zeros((1, d_ff), jnp.float32),
            'ff2_w': dense(lk[3], (d_model, d_ff)),
            'ff2_b': jnp.zeros((1, d_model), jnp.float32),
        })
    return params


def pack_params(params, *, n_head, mxu_dtype=jnp.float32):
    """One-time layout plumbing outside the hot path:
       - head-stack + transpose all attention weights (no in-kernel transpose/slices),
       - fold 1/sqrt(hd) into the Q weights and bias,
       - pack the eight tiny per-layer vectors into one (L, 9, D) array,
       - pre-cast all MXU weights to mxu_dtype (bf16 halves DMA + VMEM on v6e/v7x),
       - stack everything along a leading num_layers axis for the layer grid,
       - pad the fc head to a 128-lane-dense output."""
    layers = params['layers']
    D = params['embedding'].shape[1]
    H = n_head
    hd = D // H
    scale = 1.0 / float(hd) ** 0.5

    def head_split_t(w):          # (H*hd, D) torch rows -> (H, D, hd)
        return jnp.transpose(w.reshape(H, hd, D), (0, 2, 1))

    wq, wk, wv, wo, ff1w, ff2w, vec_d, ff1b = [], [], [], [], [], [], [], []
    for lyr in layers:
        W = lyr['in_proj_w']                       # (3D, D) = [Wq; Wk; Wv]
        b = lyr['in_proj_b'][0]                    # (3D,)
        wq.append(head_split_t(W[:D]) * scale)     # scale folded into Q
        wk.append(head_split_t(W[D:2 * D]))
        wv.append(head_split_t(W[2 * D:]))
        wo.append(jnp.transpose(lyr['out_proj_w'], (1, 0)).reshape(H, hd, D))
        ff1w.append(lyr['ff1_w'].T)                # (D, d_ff)
        ff2w.append(lyr['ff2_w'].T)                # (d_ff, D)
        vec_d.append(jnp.stack([
            b[:D] * scale, b[D:2 * D], b[2 * D:],
            lyr['out_proj_b'][0],
            lyr['ln1_g'][0], lyr['ln1_b'][0],
            lyr['ln2_g'][0], lyr['ln2_b'][0],
            lyr['ff2_b'][0]], axis=0))             # (9, D)
        ff1b.append(lyr['ff1_b'])                  # (1, d_ff)

    out_dim = params['fc_w'].shape[0]
    out_pad = max(128, ((out_dim + 127) // 128) * 128)
    fc_w = jnp.zeros((D, out_pad), jnp.float32).at[:, :out_dim].set(params['fc_w'].T)
    fc_b = jnp.zeros((1, out_pad), jnp.float32).at[:, :out_dim].set(params['fc_b'][0])

    cast = lambda a: a.astype(mxu_dtype)
    return {
        'embedding': params['embedding'],
        'ln_g': params['ln_g'], 'ln_b': params['ln_b'],
        'fc_w': cast(fc_w), 'fc_b': fc_b,
        'wq': cast(jnp.stack(wq)), 'wk': cast(jnp.stack(wk)), 'wv': cast(jnp.stack(wv)),
        'wo': cast(jnp.stack(wo)),
        'ff1_w': cast(jnp.stack(ff1w)), 'ff2_w': cast(jnp.stack(ff2w)),
        'vec_d': jnp.stack(vec_d), 'ff1_b': jnp.stack(ff1b),
    }


def reference_forward(tokens, params, *, n_head):
    """Pure-JAX reference mirroring nn.TransformerEncoderLayer (post-norm, relu)."""
    x = jnp.take(params['embedding'], tokens, axis=0)
    B, S, D = x.shape
    hd = D // n_head
    scale = 1.0 / float(hd) ** 0.5

    def ln(v, g, b):
        mu = v.mean(-1, keepdims=True)
        var = ((v - mu) ** 2).mean(-1, keepdims=True)
        return (v - mu) / jnp.sqrt(var + 1e-5) * g + b

    for lyr in params['layers']:
        qkv = x @ lyr['in_proj_w'].T + lyr['in_proj_b'][0]
        q, k, v = qkv[..., :D], qkv[..., D:2 * D], qkv[..., 2 * D:]
        q = q.reshape(B, S, n_head, hd).transpose(0, 2, 1, 3)
        k = k.reshape(B, S, n_head, hd).transpose(0, 2, 1, 3)
        v = v.reshape(B, S, n_head, hd).transpose(0, 2, 1, 3)
        s = jnp.einsum('bhqd,bhkd->bhqk', q, k) * scale
        p = jax.nn.softmax(s, axis=-1)
        ctx = jnp.einsum('bhqk,bhkd->bhqd', p, v).transpose(0, 2, 1, 3).reshape(B, S, D)
        attn = ctx @ lyr['out_proj_w'].T + lyr['out_proj_b'][0]
        x = ln(x + attn, lyr['ln1_g'][0], lyr['ln1_b'][0])
        h1 = jnp.maximum(x @ lyr['ff1_w'].T + lyr['ff1_b'][0], 0.0)
        h2 = h1 @ lyr['ff2_w'].T + lyr['ff2_b'][0]
        x = ln(x + h2, lyr['ln2_g'][0], lyr['ln2_b'][0])
    x = ln(x, params['ln_g'][0], params['ln_b'][0])
    return x[:, -1, :] @ params['fc_w'].T + params['fc_b'][0]


if __name__ == "__main__":
    # Small shapes consistent with the module's forward.
    B, S = 2, 8
    input_dim, output_dim = 16, 10
    d_model, n_head, num_layers = 32, 4, 2
    d_ff = 2048  # PyTorch TransformerEncoderLayer default dim_feedforward

    key = jax.random.PRNGKey(0)
    pkey, tkey = jax.random.split(key)
    params = init_params(pkey, input_dim, output_dim, d_model, n_head, num_layers, d_ff)
    tokens = jax.random.randint(tkey, (B, S), 0, input_dim, dtype=jnp.int32)

    # Exact-semantics path: f32 MXU operands.
    packed_f32 = pack_params(params, n_head=n_head, mxu_dtype=jnp.float32)
    out = transformer_forward(tokens, packed_f32, out_dim=output_dim)
    out = jax.block_until_ready(out)
    assert out.shape == (B, output_dim), out.shape
    assert bool(jnp.all(jnp.isfinite(out)))

    ref = jax.block_until_ready(reference_forward(tokens, params, n_head=n_head))
    assert bool(jnp.allclose(out, ref, rtol=2e-2, atol=2e-2)), (
        float(jnp.max(jnp.abs(out - ref))))

    # Fast path: bf16 MXU weights streamed from HBM (half the per-layer DMA + VMEM).
    packed_bf16 = pack_params(params, n_head=n_head, mxu_dtype=jnp.bfloat16)
    out_bf16 = transformer_forward(tokens, packed_bf16, out_dim=output_dim)
    out_bf16 = jax.block_until_ready(out_bf16)
    assert out_bf16.shape == (B, output_dim)
    assert bool(jnp.all(jnp.isfinite(out_bf16)))

    print("KERNEL_OK")
</pallas_src>

<mosaic_0001>
module attributes {stable_mosaic.version = 11 : i64} {
  func.func @fused_transformer_kernel(%arg0: i32, %arg1: memref<2x8x32xf32, #tpu.memory_space<vmem>>, %arg2: memref<1x4x32x8xf32, #tpu.memory_space<vmem>>, %arg3: memref<1x4x32x8xf32, #tpu.memory_space<vmem>>, %arg4: memref<1x4x32x8xf32, #tpu.memory_space<vmem>>, %arg5: memref<1x4x8x32xf32, #tpu.memory_space<vmem>>, %arg6: memref<1x32x2048xf32, #tpu.memory_space<vmem>>, %arg7: memref<1x2048x32xf32, #tpu.memory_space<vmem>>, %arg8: memref<1x9x32xf32, #tpu.memory_space<vmem>>, %arg9: memref<1x1x2048xf32, #tpu.memory_space<vmem>>, %arg10: memref<1x32xf32, #tpu.memory_space<vmem>>, %arg11: memref<1x32xf32, #tpu.memory_space<vmem>>, %arg12: memref<32x128xf32, #tpu.memory_space<vmem>>, %arg13: memref<1x128xf32, #tpu.memory_space<vmem>>, %arg14: memref<2x128xf32, #tpu.memory_space<vmem>>, %arg15: memref<16x32xf32, #tpu.memory_space<vmem>>) attributes {dimension_semantics = [#tpu.dimension_semantics<arbitrary>], iteration_bounds = array<i64: 2>, scalar_prefetch = 0 : i64, scratch_operands = 1 : i64, tpu.core_type = #tpu.core_type<tc>, window_params = [{pipeline_mode = #tpu.pipeline_mode<synchronous>, transform_indices = @transform_0, window_bounds = array<i64: 2, 8, 32>}, {transform_indices = @transform_1, window_bounds = array<i64: 1, 4, 32, 8>}, {transform_indices = @transform_2, window_bounds = array<i64: 1, 4, 32, 8>}, {transform_indices = @transform_3, window_bounds = array<i64: 1, 4, 32, 8>}, {transform_indices = @transform_4, window_bounds = array<i64: 1, 4, 8, 32>}, {transform_indices = @transform_5, window_bounds = array<i64: 1, 32, 2048>}, {transform_indices = @transform_6, window_bounds = array<i64: 1, 2048, 32>}, {transform_indices = @transform_7, window_bounds = array<i64: 1, 9, 32>}, {transform_indices = @transform_8, window_bounds = array<i64: 1, 1, 2048>}, {pipeline_mode = #tpu.pipeline_mode<synchronous>, transform_indices = @transform_9, window_bounds = array<i64: 1, 32>}, {pipeline_mode = #tpu.pipeline_mode<synchronous>, transform_indices = @transform_10, window_bounds = array<i64: 1, 32>}, {pipeline_mode = #tpu.pipeline_mode<synchronous>, transform_indices = @transform_11, window_bounds = array<i64: 32, 128>}, {pipeline_mode = #tpu.pipeline_mode<synchronous>, transform_indices = @transform_12, window_bounds = array<i64: 1, 128>}, {pipeline_mode = #tpu.pipeline_mode<synchronous>, transform_indices = @transform_13, window_bounds = array<i64: 2, 128>}]} {
    %c0_i32 = arith.constant 0 : i32
    %0 = arith.cmpi eq, %arg0, %c0_i32 : i32
    %1 = arith.extui %0 : i1 to i32
    %c0_i32_0 = arith.constant 0 : i32
    %2 = arith.cmpi ne, %1, %c0_i32_0 : i32
    scf.if %2 {
      %c0_123 = arith.constant 0 : index
      %c0_124 = arith.constant 0 : index
      %c0_125 = arith.constant 0 : index
      %234 = vector.load %arg1[%c0_123, %c0_124, %c0_125] : memref<2x8x32xf32, #tpu.memory_space<vmem>>, vector<2x8x32xf32>
      %235 = vector.shape_cast %234 : vector<2x8x32xf32> to vector<16x32xf32>
      %c0_126 = arith.constant 0 : index
      %c0_127 = arith.constant 0 : index
      %236 = vector.load %arg15[%c0_126, %c0_127] : memref<16x32xf32, #tpu.memory_space<vmem>>, vector<16x32xf32>
      tpu.vector_store %arg15[%c0_126, %c0_127], %235 {strides = array<i32>} : memref<16x32xf32, #tpu.memory_space<vmem>>, vector<16x32xf32>,
    } else {
    }
    %c0 = arith.constant 0 : index
    %c0_1 = arith.constant 0 : index
    %3 = vector.load %arg15[%c0, %c0_1] : memref<16x32xf32, #tpu.memory_space<vmem>>, vector<16x32xf32>
    %c0_2 = arith.constant 0 : index
    %c0_3 = arith.constant 0 : index
    %c0_4 = arith.constant 0 : index
    %4 = vector.load %arg8[%c0_2, %c0_3, %c0_4] : memref<1x9x32xf32, #tpu.memory_space<vmem>>, vector<1x9x32xf32>
    %5 = vector.shape_cast %4 : vector<1x9x32xf32> to vector<9x32xf32>
    %6 = vector.extract_strided_slice %5 {offsets = [0, 0], sizes = [1, 32], strides = [1, 1]} : vector<9x32xf32> to vector<1x32xf32>
    %7 = vector.extract_strided_slice %5 {offsets = [1, 0], sizes = [1, 32], strides = [1, 1]} : vector<9x32xf32> to vector<1x32xf32>
    %8 = vector.extract_strided_slice %5 {offsets = [2, 0], sizes = [1, 32], strides = [1, 1]} : vector<9x32xf32> to vector<1x32xf32>
    %9 = vector.extract_strided_slice %5 {offsets = [3, 0], sizes = [1, 32], strides = [1, 1]} : vector<9x32xf32> to vector<1x32xf32>
    %10 = vector.extract_strided_slice %5 {offsets = [4, 0], sizes = [1, 32], strides = [1, 1]} : vector<9x32xf32> to vector<1x32xf32>
    %11 = vector.extract_strided_slice %5 {offsets = [5, 0], sizes = [1, 32], strides = [1, 1]} : vector<9x32xf32> to vector<1x32xf32>
    %12 = vector.extract_strided_slice %5 {offsets = [6, 0], sizes = [1, 32], strides = [1, 1]} : vector<9x32xf32> to vector<1x32xf32>
    %13 = vector.extract_strided_slice %5 {offsets = [7, 0], sizes = [1, 32], strides = [1, 1]} : vector<9x32xf32> to vector<1x32xf32>
    %14 = vector.extract_strided_slice %5 {offsets = [8, 0], sizes = [1, 32], strides = [1, 1]} : vector<9x32xf32> to vector<1x32xf32>
    %cst = arith.constant 0.000000e+00 : f32
    %15 = vector.broadcast %cst : f32 to vector<16x32xf32>
    %c0_5 = arith.constant 0 : index
    %c0_6 = arith.constant 0 : index
    %c0_7 = arith.constant 0 : index
    %c0_8 = arith.constant 0 : index
    %16 = vector.load %arg2[%c0_5, %c0_6, %c0_7, %c0_8] : memref<1x4x32x8xf32, #tpu.memory_space<vmem>>, vector<1x1x32x8xf32>
    %17 = vector.shape_cast %16 : vector<1x1x32x8xf32> to vector<32x8xf32>
    %cst_9 = arith.constant dense<0.000000e+00> : vector<16x8xf32>
    %18 = tpu.matmul %3, %17, %cst_9 {dimension_numbers = #tpu.dot_dimension_numbers<[1], [0], [0], [1], [0, 0, 1, 1], [], []>} : vector<16x32xf32>, vector<32x8xf32>, vector<16x8xf32> -> vector<16x8xf32>
    %19 = vector.extract_strided_slice %6 {offsets = [0, 0], sizes = [1, 8], strides = [1, 1]} : vector<1x32xf32> to vector<1x8xf32>
    %20 = vector.broadcast %19 : vector<1x8xf32> to vector<16x8xf32>
    %21 = arith.addf %18, %20 : vector<16x8xf32>
    %22 = vector.shape_cast %21 : vector<16x8xf32> to vector<2x8x8xf32>
    %c0_10 = arith.constant 0 : index
    %c0_11 = arith.constant 0 : index
    %c0_12 = arith.constant 0 : index
    %c0_13 = arith.constant 0 : index
    %23 = vector.load %arg3[%c0_10, %c0_11, %c0_12, %c0_13] : memref<1x4x32x8xf32, #tpu.memory_space<vmem>>, vector<1x1x32x8xf32>
    %24 = vector.shape_cast %23 : vector<1x1x32x8xf32> to vector<32x8xf32>
    %cst_14 = arith.constant dense<0.000000e+00> : vector<16x8xf32>
    %25 = tpu.matmul %3, %24, %cst_14 {dimension_numbers = #tpu.dot_dimension_numbers<[1], [0], [0], [1], [0, 0, 1, 1], [], []>} : vector<16x32xf32>, vector<32x8xf32>, vector<16x8xf32> -> vector<16x8xf32>
    %26 = vector.extract_strided_slice %7 {offsets = [0, 0], sizes = [1, 8], strides = [1, 1]} : vector<1x32xf32> to vector<1x8xf32>
    %27 = vector.broadcast %26 : vector<1x8xf32> to vector<16x8xf32>
    %28 = arith.addf %25, %27 : vector<16x8xf32>
    %29 = vector.shape_cast %28 : vector<16x8xf32> to vector<2x8x8xf32>
    %c0_15 = arith.constant 0 : index
    %c0_16 = arith.constant 0 : index
    %c0_17 = arith.constant 0 : index
    %c0_18 = arith.constant 0 : index
    %30 = vector.load %arg4[%c0_15, %c0_16, %c0_17, %c0_18] : memref<1x4x32x8xf32, #tpu.memory_space<vmem>>, vector<1x1x32x8xf32>
    %31 = vector.shape_cast %30 : vector<1x1x32x8xf32> to vector<32x8xf32>
    %cst_19 = arith.constant dense<0.000000e+00> : vector<16x8xf32>
    %32 = tpu.matmul %3, %31, %cst_19 {dimension_numbers = #tpu.dot_dimension_numbers<[1], [0], [0], [1], [0, 0, 1, 1], [], []>} : vector<16x32xf32>, vector<32x8xf32>, vector<16x8xf32> -> vector<16x8xf32>
    %33 = vector.extract_strided_slice %8 {offsets = [0, 0], sizes = [1, 8], strides = [1, 1]} : vector<1x32xf32> to vector<1x8xf32>
    %34 = vector.broadcast %33 : vector<1x8xf32> to vector<16x8xf32>
    %35 = arith.addf %32, %34 : vector<16x8xf32>
    %36 = vector.shape_cast %35 : vector<16x8xf32> to vector<2x8x8xf32>
    "tpu.trace_start"() <{level = 10 : i32, message = "bqd,bkd->bqk"}> : () -> ()
    %cst_20 = arith.constant dense<0.000000e+00> : vector<2x8x8xf32>
    %37 = tpu.matmul %22, %29, %cst_20 {dimension_numbers = #tpu.dot_dimension_numbers<[2], [2], [1], [1], [0, 0, 0, 1, 1, 1], [0], [0]>} : vector<2x8x8xf32>, vector<2x8x8xf32>, vector<2x8x8xf32> -> vector<2x8x8xf32>
    "tpu.trace_stop"() : () -> ()
    %cst_21 = arith.constant dense<0xFF800000> : vector<2x8xf32>
    %38 = vector.multi_reduction <maximumf>, %37, %cst_21 [2] : vector<2x8x8xf32> to vector<2x8xf32>
    %39 = vector.shape_cast %38 : vector<2x8xf32> to vector<2x8x1xf32>
    %40 = vector.broadcast %39 : vector<2x8x1xf32> to vector<2x8x8xf32>
    %41 = arith.subf %37, %40 : vector<2x8x8xf32>
    %42 = math.exp %41 : vector<2x8x8xf32>
    %cst_22 = arith.constant dense<0.000000e+00> : vector<2x8xf32>
    %43 = vector.multi_reduction <add>, %42, %cst_22 [2] : vector<2x8x8xf32> to vector<2x8xf32>
    %44 = vector.shape_cast %43 : vector<2x8xf32> to vector<2x8x1xf32>
    %45 = tpu.reciprocal %44 {approx = true} : vector<2x8x1xf32> -> vector<2x8x1xf32>
    %46 = vector.broadcast %45 : vector<2x8x1xf32> to vector<2x8x8xf32>
    %47 = arith.mulf %42, %46 : vector<2x8x8xf32>
    "tpu.trace_start"() <{level = 10 : i32, message = "bqk,bkd->bqd"}> : () -> ()
    %cst_23 = arith.constant dense<0.000000e+00> : vector<2x8x8xf32>
    %48 = tpu.matmul %47, %36, %cst_23 {dimension_numbers = #tpu.dot_dimension_numbers<[2], [1], [1], [2], [0, 0, 0, 1, 1, 2], [0], [0]>} : vector<2x8x8xf32>, vector<2x8x8xf32>, vector<2x8x8xf32> -> vector<2x8x8xf32>
    "tpu.trace_stop"() : () -> ()
    %49 = vector.shape_cast %48 : vector<2x8x8xf32> to vector<16x8xf32>
    %c0_24 = arith.constant 0 : index
    %c0_25 = arith.constant 0 : index
    %c0_26 = arith.constant 0 : index
    %c0_27 = arith.constant 0 : index
    %50 = vector.load %arg5[%c0_24, %c0_25, %c0_26, %c0_27] : memref<1x4x8x32xf32, #tpu.memory_space<vmem>>, vector<1x1x8x32xf32>
    %51 = vector.shape_cast %50 : vector<1x1x8x32xf32> to vector<8x32xf32>
    %cst_28 = arith.constant dense<0.000000e+00> : vector<16x32xf32>
    %52 = tpu.matmul %49, %51, %cst_28 {dimension_numbers = #tpu.dot_dimension_numbers<[1], [0], [0], [1], [0, 0, 1, 1], [], []>} : vector<16x8xf32>, vector<8x32xf32>, vector<16x32xf32> -> vector<16x32xf32>
    %53 = arith.addf %15, %52 : vector<16x32xf32>
    %c0_29 = arith.constant 0 : index
    %c1 = arith.constant 1 : index
    %c0_30 = arith.constant 0 : index
    %c0_31 = arith.constant 0 : index
    %54 = vector.load %arg2[%c0_29, %c1, %c0_30, %c0_31] : memref<1x4x32x8xf32, #tpu.memory_space<vmem>>, vector<1x1x32x8xf32>
    %55 = vector.shape_cast %54 : vector<1x1x32x8xf32> to vector<32x8xf32>
    %cst_32 = arith.constant dense<0.000000e+00> : vector<16x8xf32>
    %56 = tpu.matmul %3, %55, %cst_32 {dimension_numbers = #tpu.dot_dimension_numbers<[1], [0], [0], [1], [0, 0, 1, 1], [], []>} : vector<16x32xf32>, vector<32x8xf32>, vector<16x8xf32> -> vector<16x8xf32>
    %57 = vector.extract_strided_slice %6 {offsets = [0, 8], sizes = [1, 8], strides = [1, 1]} : vector<1x32xf32> to vector<1x8xf32>
    %58 = vector.broadcast %57 : vector<1x8xf32> to vector<16x8xf32>
    %59 = arith.addf %56, %58 : vector<16x8xf32>
    %60 = vector.shape_cast %59 : vector<16x8xf32> to vector<2x8x8xf32>
    %c0_33 = arith.constant 0 : index
    %c1_34 = arith.constant 1 : index
    %c0_35 = arith.constant 0 : index
    %c0_36 = arith.constant 0 : index
    %61 = vector.load %arg3[%c0_33, %c1_34, %c0_35, %c0_36] : memref<1x4x32x8xf32, #tpu.memory_space<vmem>>, vector<1x1x32x8xf32>
    %62 = vector.shape_cast %61 : vector<1x1x32x8xf32> to vector<32x8xf32>
    %cst_37 = arith.constant dense<0.000000e+00> : vector<16x8xf32>
    %63 = tpu.matmul %3, %62, %cst_37 {dimension_numbers = #tpu.dot_dimension_numbers<[1], [0], [0], [1], [0, 0, 1, 1], [], []>} : vector<16x32xf32>, vector<32x8xf32>, vector<16x8xf32> -> vector<16x8xf32>
    %64 = vector.extract_strided_slice %7 {offsets = [0, 8], sizes = [1, 8], strides = [1, 1]} : vector<1x32xf32> to vector<1x8xf32>
    %65 = vector.broadcast %64 : vector<1x8xf32> to vector<16x8xf32>
    %66 = arith.addf %63, %65 : vector<16x8xf32>
    %67 = vector.shape_cast %66 : vector<16x8xf32> to vector<2x8x8xf32>
    %c0_38 = arith.constant 0 : index
    %c1_39 = arith.constant 1 : index
    %c0_40 = arith.constant 0 : index
    %c0_41 = arith.constant 0 : index
    %68 = vector.load %arg4[%c0_38, %c1_39, %c0_40, %c0_41] : memref<1x4x32x8xf32, #tpu.memory_space<vmem>>, vector<1x1x32x8xf32>
    %69 = vector.shape_cast %68 : vector<1x1x32x8xf32> to vector<32x8xf32>
    %cst_42 = arith.constant dense<0.000000e+00> : vector<16x8xf32>
    %70 = tpu.matmul %3, %69, %cst_42 {dimension_numbers = #tpu.dot_dimension_numbers<[1], [0], [0], [1], [0, 0, 1, 1], [], []>} : vector<16x32xf32>, vector<32x8xf32>, vector<16x8xf32> -> vector<16x8xf32>
    %71 = vector.extract_strided_slice %8 {offsets = [0, 8], sizes = [1, 8], strides = [1, 1]} : vector<1x32xf32> to vector<1x8xf32>
    %72 = vector.broadcast %71 : vector<1x8xf32> to vector<16x8xf32>
    %73 = arith.addf %70, %72 : vector<16x8xf32>
    %74 = vector.shape_cast %73 : vector<16x8xf32> to vector<2x8x8xf32>
    "tpu.trace_start"() <{level = 10 : i32, message = "bqd,bkd->bqk"}> : () -> ()
    %cst_43 = arith.constant dense<0.000000e+00> : vector<2x8x8xf32>
    %75 = tpu.matmul %60, %67, %cst_43 {dimension_numbers = #tpu.dot_dimension_numbers<[2], [2], [1], [1], [0, 0, 0, 1, 1, 1], [0], [0]>} : vector<2x8x8xf32>, vector<2x8x8xf32>, vector<2x8x8xf32> -> vector<2x8x8xf32>
    "tpu.trace_stop"() : () -> ()
    %cst_44 = arith.constant dense<0xFF800000> : vector<2x8xf32>
    %76 = vector.multi_reduction <maximumf>, %75, %cst_44 [2] : vector<2x8x8xf32> to vector<2x8xf32>
    %77 = vector.shape_cast %76 : vector<2x8xf32> to vector<2x8x1xf32>
    %78 = vector.broadcast %77 : vector<2x8x1xf32> to vector<2x8x8xf32>
    %79 = arith.subf %75, %78 : vector<2x8x8xf32>
    %80 = math.exp %79 : vector<2x8x8xf32>
    %cst_45 = arith.constant dense<0.000000e+00> : vector<2x8xf32>
    %81 = vector.multi_reduction <add>, %80, %cst_45 [2] : vector<2x8x8xf32> to vector<2x8xf32>
    %82 = vector.shape_cast %81 : vector<2x8xf32> to vector<2x8x1xf32>
    %83 = tpu.reciprocal %82 {approx = true} : vector<2x8x1xf32> -> vector<2x8x1xf32>
    %84 = vector.broadcast %83 : vector<2x8x1xf32> to vector<2x8x8xf32>
    %85 = arith.mulf %80, %84 : vector<2x8x8xf32>
    "tpu.trace_start"() <{level = 10 : i32, message = "bqk,bkd->bqd"}> : () -> ()
    %cst_46 = arith.constant dense<0.000000e+00> : vector<2x8x8xf32>
    %86 = tpu.matmul %85, %74, %cst_46 {dimension_numbers = #tpu.dot_dimension_numbers<[2], [1], [1], [2], [0, 0, 0, 1, 1, 2], [0], [0]>} : vector<2x8x8xf32>, vector<2x8x8xf32>, vector<2x8x8xf32> -> vector<2x8x8xf32>
    "tpu.trace_stop"() : () -> ()
    %87 = vector.shape_cast %86 : vector<2x8x8xf32> to vector<16x8xf32>
    %c0_47 = arith.constant 0 : index
    %c1_48 = arith.constant 1 : index
    %c0_49 = arith.constant 0 : index
    %c0_50 = arith.constant 0 : index
    %88 = vector.load %arg5[%c0_47, %c1_48, %c0_49, %c0_50] : memref<1x4x8x32xf32, #tpu.memory_space<vmem>>, vector<1x1x8x32xf32>
    %89 = vector.shape_cast %88 : vector<1x1x8x32xf32> to vector<8x32xf32>
    %cst_51 = arith.constant dense<0.000000e+00> : vector<16x32xf32>
    %90 = tpu.matmul %87, %89, %cst_51 {dimension_numbers = #tpu.dot_dimension_numbers<[1], [0], [0], [1], [0, 0, 1, 1], [], []>} : vector<16x8xf32>, vector<8x32xf32>, vector<16x32xf32> -> vector<16x32xf32>
    %91 = arith.addf %53, %90 : vector<16x32xf32>
    %c0_52 = arith.constant 0 : index
    %c2 = arith.constant 2 : index
    %c0_53 = arith.constant 0 : index
    %c0_54 = arith.constant 0 : index
    %92 = vector.load %arg2[%c0_52, %c2, %c0_53, %c0_54] : memref<1x4x32x8xf32, #tpu.memory_space<vmem>>, vector<1x1x32x8xf32>
    %93 = vector.shape_cast %92 : vector<1x1x32x8xf32> to vector<32x8xf32>
    %cst_55 = arith.constant dense<0.000000e+00> : vector<16x8xf32>
    %94 = tpu.matmul %3, %93, %cst_55 {dimension_numbers = #tpu.dot_dimension_numbers<[1], [0], [0], [1], [0, 0, 1, 1], [], []>} : vector<16x32xf32>, vector<32x8xf32>, vector<16x8xf32> -> vector<16x8xf32>
    %95 = vector.extract_strided_slice %6 {offsets = [0, 16], sizes = [1, 8], strides = [1, 1]} : vector<1x32xf32> to vector<1x8xf32>
    %96 = vector.broadcast %95 : vector<1x8xf32> to vector<16x8xf32>
    %97 = arith.addf %94, %96 : vector<16x8xf32>
    %98 = vector.shape_cast %97 : vector<16x8xf32> to vector<2x8x8xf32>
    %c0_56 = arith.constant 0 : index
    %c2_57 = arith.constant 2 : index
    %c0_58 = arith.constant 0 : index
    %c0_59 = arith.constant 0 : index
    %99 = vector.load %arg3[%c0_56, %c2_57, %c0_58, %c0_59] : memref<1x4x32x8xf32, #tpu.memory_space<vmem>>, vector<1x1x32x8xf32>
    %100 = vector.shape_cast %99 : vector<1x1x32x8xf32> to vector<32x8xf32>
    %cst_60 = arith.constant dense<0.000000e+00> : vector<16x8xf32>
    %101 = tpu.matmul %3, %100, %cst_60 {dimension_numbers = #tpu.dot_dimension_numbers<[1], [0], [0], [1], [0, 0, 1, 1], [], []>} : vector<16x32xf32>, vector<32x8xf32>, vector<16x8xf32> -> vector<16x8xf32>
    %102 = vector.extract_strided_slice %7 {offsets = [0, 16], sizes = [1, 8], strides = [1, 1]} : vector<1x32xf32> to vector<1x8xf32>
    %103 = vector.broadcast %102 : vector<1x8xf32> to vector<16x8xf32>
    %104 = arith.addf %101, %103 : vector<16x8xf32>
    %105 = vector.shape_cast %104 : vector<16x8xf32> to vector<2x8x8xf32>
    %c0_61 = arith.constant 0 : index
    %c2_62 = arith.constant 2 : index
    %c0_63 = arith.constant 0 : index
    %c0_64 = arith.constant 0 : index
    %106 = vector.load %arg4[%c0_61, %c2_62, %c0_63, %c0_64] : memref<1x4x32x8xf32, #tpu.memory_space<vmem>>, vector<1x1x32x8xf32>
    %107 = vector.shape_cast %106 : vector<1x1x32x8xf32> to vector<32x8xf32>
    %cst_65 = arith.constant dense<0.000000e+00> : vector<16x8xf32>
    %108 = tpu.matmul %3, %107, %cst_65 {dimension_numbers = #tpu.dot_dimension_numbers<[1], [0], [0], [1], [0, 0, 1, 1], [], []>} : vector<16x32xf32>, vector<32x8xf32>, vector<16x8xf32> -> vector<16x8xf32>
    %109 = vector.extract_strided_slice %8 {offsets = [0, 16], sizes = [1, 8], strides = [1, 1]} : vector<1x32xf32> to vector<1x8xf32>
    %110 = vector.broadcast %109 : vector<1x8xf32> to vector<16x8xf32>
    %111 = arith.addf %108, %110 : vector<16x8xf32>
    %112 = vector.shape_cast %111 : vector<16x8xf32> to vector<2x8x8xf32>
    "tpu.trace_start"() <{level = 10 : i32, message = "bqd,bkd->bqk"}> : () -> ()
    %cst_66 = arith.constant dense<0.000000e+00> : vector<2x8x8xf32>
    %113 = tpu.matmul %98, %105, %cst_66 {dimension_numbers = #tpu.dot_dimension_numbers<[2], [2], [1], [1], [0, 0, 0, 1, 1, 1], [0], [0]>} : vector<2x8x8xf32>, vector<2x8x8xf32>, vector<2x8x8xf32> -> vector<2x8x8xf32>
    "tpu.trace_stop"() : () -> ()
    %cst_67 = arith.constant dense<0xFF800000> : vector<2x8xf32>
    %114 = vector.multi_reduction <maximumf>, %113, %cst_67 [2] : vector<2x8x8xf32> to vector<2x8xf32>
    %115 = vector.shape_cast %114 : vector<2x8xf32> to vector<2x8x1xf32>
    %116 = vector.broadcast %115 : vector<2x8x1xf32> to vector<2x8x8xf32>
    %117 = arith.subf %113, %116 : vector<2x8x8xf32>
    %118 = math.exp %117 : vector<2x8x8xf32>
    %cst_68 = arith.constant dense<0.000000e+00> : vector<2x8xf32>
    %119 = vector.multi_reduction <add>, %118, %cst_68 [2] : vector<2x8x8xf32> to vector<2x8xf32>
    %120 = vector.shape_cast %119 : vector<2x8xf32> to vector<2x8x1xf32>
    %121 = tpu.reciprocal %120 {approx = true} : vector<2x8x1xf32> -> vector<2x8x1xf32>
    %122 = vector.broadcast %121 : vector<2x8x1xf32> to vector<2x8x8xf32>
    %123 = arith.mulf %118, %122 : vector<2x8x8xf32>
    "tpu.trace_start"() <{level = 10 : i32, message = "bqk,bkd->bqd"}> : () -> ()
    %cst_69 = arith.constant dense<0.000000e+00> : vector<2x8x8xf32>
    %124 = tpu.matmul %123, %112, %cst_69 {dimension_numbers = #tpu.dot_dimension_numbers<[2], [1], [1], [2], [0, 0, 0, 1, 1, 2], [0], [0]>} : vector<2x8x8xf32>, vector<2x8x8xf32>, vector<2x8x8xf32> -> vector<2x8x8xf32>
    "tpu.trace_stop"() : () -> ()
    %125 = vector.shape_cast %124 : vector<2x8x8xf32> to vector<16x8xf32>
    %c0_70 = arith.constant 0 : index
    %c2_71 = arith.constant 2 : index
    %c0_72 = arith.constant 0 : index
    %c0_73 = arith.constant 0 : index
    %126 = vector.load %arg5[%c0_70, %c2_71, %c0_72, %c0_73] : memref<1x4x8x32xf32, #tpu.memory_space<vmem>>, vector<1x1x8x32xf32>
    %127 = vector.shape_cast %126 : vector<1x1x8x32xf32> to vector<8x32xf32>
    %cst_74 = arith.constant dense<0.000000e+00> : vector<16x32xf32>
    %128 = tpu.matmul %125, %127, %cst_74 {dimension_numbers = #tpu.dot_dimension_numbers<[1], [0], [0], [1], [0, 0, 1, 1], [], []>} : vector<16x8xf32>, vector<8x32xf32>, vector<16x32xf32> -> vector<16x32xf32>
    %129 = arith.addf %91, %128 : vector<16x32xf32>
    %c0_75 = arith.constant 0 : index
    %c3 = arith.constant 3 : index
    %c0_76 = arith.constant 0 : index
    %c0_77 = arith.constant 0 : index
    %130 = vector.load %arg2[%c0_75, %c3, %c0_76, %c0_77] : memref<1x4x32x8xf32, #tpu.memory_space<vmem>>, vector<1x1x32x8xf32>
    %131 = vector.shape_cast %130 : vector<1x1x32x8xf32> to vector<32x8xf32>
    %cst_78 = arith.constant dense<0.000000e+00> : vector<16x8xf32>
    %132 = tpu.matmul %3, %131, %cst_78 {dimension_numbers = #tpu.dot_dimension_numbers<[1], [0], [0], [1], [0, 0, 1, 1], [], []>} : vector<16x32xf32>, vector<32x8xf32>, vector<16x8xf32> -> vector<16x8xf32>
    %133 = vector.extract_strided_slice %6 {offsets = [0, 24], sizes = [1, 8], strides = [1, 1]} : vector<1x32xf32> to vector<1x8xf32>
    %134 = vector.broadcast %133 : vector<1x8xf32> to vector<16x8xf32>
    %135 = arith.addf %132, %134 : vector<16x8xf32>
    %136 = vector.shape_cast %135 : vector<16x8xf32> to vector<2x8x8xf32>
    %c0_79 = arith.constant 0 : index
    %c3_80 = arith.constant 3 : index
    %c0_81 = arith.constant 0 : index
    %c0_82 = arith.constant 0 : index
    %137 = vector.load %arg3[%c0_79, %c3_80, %c0_81, %c0_82] : memref<1x4x32x8xf32, #tpu.memory_space<vmem>>, vector<1x1x32x8xf32>
    %138 = vector.shape_cast %137 : vector<1x1x32x8xf32> to vector<32x8xf32>
    %cst_83 = arith.constant dense<0.000000e+00> : vector<16x8xf32>
    %139 = tpu.matmul %3, %138, %cst_83 {dimension_numbers = #tpu.dot_dimension_numbers<[1], [0], [0], [1], [0, 0, 1, 1], [], []>} : vector<16x32xf32>, vector<32x8xf32>, vector<16x8xf32> -> vector<16x8xf32>
    %140 = vector.extract_strided_slice %7 {offsets = [0, 24], sizes = [1, 8], strides = [1, 1]} : vector<1x32xf32> to vector<1x8xf32>
    %141 = vector.broadcast %140 : vector<1x8xf32> to vector<16x8xf32>
    %142 = arith.addf %139, %141 : vector<16x8xf32>
    %143 = vector.shape_cast %142 : vector<16x8xf32> to vector<2x8x8xf32>
    %c0_84 = arith.constant 0 : index
    %c3_85 = arith.constant 3 : index
    %c0_86 = arith.constant 0 : index
    %c0_87 = arith.constant 0 : index
    %144 = vector.load %arg4[%c0_84, %c3_85, %c0_86, %c0_87] : memref<1x4x32x8xf32, #tpu.memory_space<vmem>>, vector<1x1x32x8xf32>
    %145 = vector.shape_cast %144 : vector<1x1x32x8xf32> to vector<32x8xf32>
    %cst_88 = arith.constant dense<0.000000e+00> : vector<16x8xf32>
    %146 = tpu.matmul %3, %145, %cst_88 {dimension_numbers = #tpu.dot_dimension_numbers<[1], [0], [0], [1], [0, 0, 1, 1], [], []>} : vector<16x32xf32>, vector<32x8xf32>, vector<16x8xf32> -> vector<16x8xf32>
    %147 = vector.extract_strided_slice %8 {offsets = [0, 24], sizes = [1, 8], strides = [1, 1]} : vector<1x32xf32> to vector<1x8xf32>
    %148 = vector.broadcast %147 : vector<1x8xf32> to vector<16x8xf32>
    %149 = arith.addf %146, %148 : vector<16x8xf32>
    %150 = vector.shape_cast %149 : vector<16x8xf32> to vector<2x8x8xf32>
    "tpu.trace_start"() <{level = 10 : i32, message = "bqd,bkd->bqk"}> : () -> ()
    %cst_89 = arith.constant dense<0.000000e+00> : vector<2x8x8xf32>
    %151 = tpu.matmul %136, %143, %cst_89 {dimension_numbers = #tpu.dot_dimension_numbers<[2], [2], [1], [1], [0, 0, 0, 1, 1, 1], [0], [0]>} : vector<2x8x8xf32>, vector<2x8x8xf32>, vector<2x8x8xf32> -> vector<2x8x8xf32>
    "tpu.trace_stop"() : () -> ()
    %cst_90 = arith.constant dense<0xFF800000> : vector<2x8xf32>
    %152 = vector.multi_reduction <maximumf>, %151, %cst_90 [2] : vector<2x8x8xf32> to vector<2x8xf32>
    %153 = vector.shape_cast %152 : vector<2x8xf32> to vector<2x8x1xf32>
    %154 = vector.broadcast %153 : vector<2x8x1xf32> to vector<2x8x8xf32>
    %155 = arith.subf %151, %154 : vector<2x8x8xf32>
    %156 = math.exp %155 : vector<2x8x8xf32>
    %cst_91 = arith.constant dense<0.000000e+00> : vector<2x8xf32>
    %157 = vector.multi_reduction <add>, %156, %cst_91 [2] : vector<2x8x8xf32> to vector<2x8xf32>
    %158 = vector.shape_cast %157 : vector<2x8xf32> to vector<2x8x1xf32>
    %159 = tpu.reciprocal %158 {approx = true} : vector<2x8x1xf32> -> vector<2x8x1xf32>
    %160 = vector.broadcast %159 : vector<2x8x1xf32> to vector<2x8x8xf32>
    %161 = arith.mulf %156, %160 : vector<2x8x8xf32>
    "tpu.trace_start"() <{level = 10 : i32, message = "bqk,bkd->bqd"}> : () -> ()
    %cst_92 = arith.constant dense<0.000000e+00> : vector<2x8x8xf32>
    %162 = tpu.matmul %161, %150, %cst_92 {dimension_numbers = #tpu.dot_dimension_numbers<[2], [1], [1], [2], [0, 0, 0, 1, 1, 2], [0], [0]>} : vector<2x8x8xf32>, vector<2x8x8xf32>, vector<2x8x8xf32> -> vector<2x8x8xf32>
    "tpu.trace_stop"() : () -> ()
    %163 = vector.shape_cast %162 : vector<2x8x8xf32> to vector<16x8xf32>
    %c0_93 = arith.constant 0 : index
    %c3_94 = arith.constant 3 : index
    %c0_95 = arith.constant 0 : index
    %c0_96 = arith.constant 0 : index
    %164 = vector.load %arg5[%c0_93, %c3_94, %c0_95, %c0_96] : memref<1x4x8x32xf32, #tpu.memory_space<vmem>>, vector<1x1x8x32xf32>
    %165 = vector.shape_cast %164 : vector<1x1x8x32xf32> to vector<8x32xf32>
    %cst_97 = arith.constant dense<0.000000e+00> : vector<16x32xf32>
    %166 = tpu.matmul %163, %165, %cst_97 {dimension_numbers = #tpu.dot_dimension_numbers<[1], [0], [0], [1], [0, 0, 1, 1], [], []>} : vector<16x8xf32>, vector<8x32xf32>, vector<16x32xf32> -> vector<16x32xf32>
    %167 = arith.addf %129, %166 : vector<16x32xf32>
    %168 = vector.broadcast %9 : vector<1x32xf32> to vector<16x32xf32>
    %169 = arith.addf %167, %168 : vector<16x32xf32>
    %170 = arith.addf %3, %169 : vector<16x32xf32>
    %cst_98 = arith.constant dense<0.000000e+00> : vector<16xf32>
    %171 = vector.multi_reduction <add>, %170, %cst_98 [1] : vector<16x32xf32> to vector<16xf32>
    %172 = vector.shape_cast %171 : vector<16xf32> to vector<16x1xf32>
    %cst_99 = arith.constant 3.200000e+01 : f32
    %173 = vector.broadcast %cst_99 : f32 to vector<16x1xf32>
    %174 = arith.divf %172, %173 : vector<16x1xf32>
    %175 = vector.broadcast %174 : vector<16x1xf32> to vector<16x32xf32>
    %176 = arith.subf %170, %175 : vector<16x32xf32>
    %177 = arith.mulf %176, %176 : vector<16x32xf32>
    %cst_100 = arith.constant dense<0.000000e+00> : vector<16xf32>
    %178 = vector.multi_reduction <add>, %177, %cst_100 [1] : vector<16x32xf32> to vector<16xf32>
    %179 = vector.shape_cast %178 : vector<16xf32> to vector<16x1xf32>
    %cst_101 = arith.constant 3.200000e+01 : f32
    %180 = vector.broadcast %cst_101 : f32 to vector<16x1xf32>
    %181 = arith.divf %179, %180 : vector<16x1xf32>
    %182 = vector.broadcast %174 : vector<16x1xf32> to vector<16x32xf32>
    %183 = arith.subf %170, %182 : vector<16x32xf32>
    %cst_102 = arith.constant 9.99999974E-6 : f32
    %184 = vector.broadcast %cst_102 : f32 to vector<16x1xf32>
    %185 = arith.addf %181, %184 : vector<16x1xf32>
    %186 = math.rsqrt %185 : vector<16x1xf32>
    %187 = vector.broadcast %186 : vector<16x1xf32> to vector<16x32xf32>
    %188 = arith.mulf %183, %187 : vector<16x32xf32>
    %189 = vector.broadcast %10 : vector<1x32xf32> to vector<16x32xf32>
    %190 = arith.mulf %188, %189 : vector<16x32xf32>
    %191 = vector.broadcast %11 : vector<1x32xf32> to vector<16x32xf32>
    %192 = arith.addf %190, %191 : vector<16x32xf32>
    %c0_103 = arith.constant 0 : index
    %c0_104 = arith.constant 0 : index
    %c0_105 = arith.constant 0 : index
    %193 = vector.load %arg6[%c0_103, %c0_104, %c0_105] : memref<1x32x2048xf32, #tpu.memory_space<vmem>>, vector<1x32x2048xf32>
    %194 = vector.shape_cast %193 : vector<1x32x2048xf32> to vector<32x2048xf32>
    %cst_106 = arith.constant dense<0.000000e+00> : vector<16x2048xf32>
    %195 = tpu.matmul %192, %194, %cst_106 {dimension_numbers = #tpu.dot_dimension_numbers<[1], [0], [0], [1], [0, 0, 1, 1], [], []>} : vector<16x32xf32>, vector<32x2048xf32>, vector<16x2048xf32> -> vector<16x2048xf32>
    %c0_107 = arith.constant 0 : index
    %c0_108 = arith.constant 0 : index
    %c0_109 = arith.constant 0 : index
    %196 = vector.load %arg9[%c0_107, %c0_108, %c0_109] : memref<1x1x2048xf32, #tpu.memory_space<vmem>>, vector<1x1x2048xf32>
    %197 = vector.shape_cast %196 : vector<1x1x2048xf32> to vector<1x2048xf32>
    %198 = vector.broadcast %197 : vector<1x2048xf32> to vector<16x2048xf32>
    %199 = arith.addf %195, %198 : vector<16x2048xf32>
    %cst_110 = arith.constant 0.000000e+00 : f32
    %200 = vector.broadcast %cst_110 : f32 to vector<16x2048xf32>
    %201 = arith.maximumf %199, %200 : vector<16x2048xf32>
    %c0_111 = arith.constant 0 : index
    %c0_112 = arith.constant 0 : index
    %c0_113 = arith.constant 0 : index
    %202 = vector.load %arg7[%c0_111, %c0_112, %c0_113] : memref<1x2048x32xf32, #tpu.memory_space<vmem>>, vector<1x2048x32xf32>
    %203 = vector.shape_cast %202 : vector<1x2048x32xf32> to vector<2048x32xf32>
    %cst_114 = arith.constant dense<0.000000e+00> : vector<16x32xf32>
    %204 = tpu.matmul %201, %203, %cst_114 {dimension_numbers = #tpu.dot_dimension_numbers<[1], [0], [0], [1], [0, 0, 1, 1], [], []>} : vector<16x2048xf32>, vector<2048x32xf32>, vector<16x32xf32> -> vector<16x32xf32>
    %205 = vector.broadcast %14 : vector<1x32xf32> to vector<16x32xf32>
    %206 = arith.addf %204, %205 : vector<16x32xf32>
    %207 = arith.addf %192, %206 : vector<16x32xf32>
    %cst_115 = arith.constant dense<0.000000e+00> : vector<16xf32>
    %208 = vector.multi_reduction <add>, %207, %cst_115 [1] : vector<16x32xf32> to vector<16xf32>
    %209 = vector.shape_cast %208 : vector<16xf32> to vector<16x1xf32>
    %cst_116 = arith.constant 3.200000e+01 : f32
    %210 = vector.broadcast %cst_116 : f32 to vector<16x1xf32>
    %211 = arith.divf %209, %210 : vector<16x1xf32>
    %212 = vector.broadcast %211 : vector<16x1xf32> to vector<16x32xf32>
    %213 = arith.subf %207, %212 : vector<16x32xf32>
    %214 = arith.mulf %213, %213 : vector<16x32xf32>
    %cst_117 = arith.constant dense<0.000000e+00> : vector<16xf32>
    %215 = vector.multi_reduction <add>, %214, %cst_117 [1] : vector<16x32xf32> to vector<16xf32>
    %216 = vector.shape_cast %215 : vector<16xf32> to vector<16x1xf32>
    %cst_118 = arith.constant 3.200000e+01 : f32
    %217 = vector.broadcast %cst_118 : f32 to vector<16x1xf32>
    %218 = arith.divf %216, %217 : vector<16x1xf32>
    %219 = vector.broadcast %211 : vector<16x1xf32> to vector<16x32xf32>
    %220 = arith.subf %207, %219 : vector<16x32xf32>
    %cst_119 = arith.constant 9.99999974E-6 : f32
    %221 = vector.broadcast %cst_119 : f32 to vector<16x1xf32>
    %222 = arith.addf %218, %221 : vector<16x1xf32>
    %223 = math.rsqrt %222 : vector<16x1xf32>
    %224 = vector.broadcast %223 : vector<16x1xf32> to vector<16x32xf32>
    %225 = arith.mulf %220, %224 : vector<16x32xf32>
    %226 = vector.broadcast %12 : vector<1x32xf32> to vector<16x32xf32>
    %227 = arith.mulf %225, %226 : vector<16x32xf32>
    %228 = vector.broadcast %13 : vector<1x32xf32> to vector<16x32xf32>
    %229 = arith.addf %227, %228 : vector<16x32xf32>
    %c0_120 = arith.constant 0 : index
    %c0_121 = arith.constant 0 : index
    %230 = vector.load %arg15[%c0_120, %c0_121] : memref<16x32xf32, #tpu.memory_space<vmem>>, vector<16x32xf32>
    tpu.vector_store %arg15[%c0_120, %c0_121], %229 {strides = array<i32>} : memref<16x32xf32, #tpu.memory_space<vmem>>, vector<16x32xf32>,
    %c1_i32 = arith.constant 1 : i32
    %231 = arith.cmpi eq, %arg0, %c1_i32 : i32
    %232 = arith.extui %231 : i1 to i32
    %c0_i32_122 = arith.constant 0 : i32
    %233 = arith.cmpi ne, %232, %c0_i32_122 : i32
    scf.if %233 {
      %234 = vector.shape_cast %229 : vector<16x32xf32> to vector<2x8x32xf32>
      %235 = vector.extract_strided_slice %234 {offsets = [0, 7, 0], sizes = [2, 1, 32], strides = [1, 1, 1]} : vector<2x8x32xf32> to vector<2x1x32xf32>
      %236 = vector.shape_cast %235 : vector<2x1x32xf32> to vector<2x32xf32>
      %c0_123 = arith.constant 0 : index
      %c0_124 = arith.constant 0 : index
      %237 = vector.load %arg10[%c0_123, %c0_124] : memref<1x32xf32, #tpu.memory_space<vmem>>, vector<1x32xf32>
      %c0_125 = arith.constant 0 : index
      %c0_126 = arith.constant 0 : index
      %238 = vector.load %arg11[%c0_125, %c0_126] : memref<1x32xf32, #tpu.memory_space<vmem>>, vector<1x32xf32>
      %cst_127 = arith.constant dense<0.000000e+00> : vector<2xf32>
      %239 = vector.multi_reduction <add>, %236, %cst_127 [1] : vector<2x32xf32> to vector<2xf32>
      %240 = vector.shape_cast %239 : vector<2xf32> to vector<2x1xf32>
      %cst_128 = arith.constant 3.200000e+01 : f32
      %241 = vector.broadcast %cst_128 : f32 to vector<2x1xf32>
      %242 = arith.divf %240, %241 : vector<2x1xf32>
      %243 = vector.broadcast %242 : vector<2x1xf32> to vector<2x32xf32>
      %244 = arith.subf %236, %243 : vector<2x32xf32>
      %245 = arith.mulf %244, %244 : vector<2x32xf32>
      %cst_129 = arith.constant dense<0.000000e+00> : vector<2xf32>
      %246 = vector.multi_reduction <add>, %245, %cst_129 [1] : vector<2x32xf32> to vector<2xf32>
      %247 = vector.shape_cast %246 : vector<2xf32> to vector<2x1xf32>
      %cst_130 = arith.constant 3.200000e+01 : f32
      %248 = vector.broadcast %cst_130 : f32 to vector<2x1xf32>
      %249 = arith.divf %247, %248 : vector<2x1xf32>
      %250 = vector.broadcast %242 : vector<2x1xf32> to vector<2x32xf32>
      %251 = arith.subf %236, %250 : vector<2x32xf32>
      %cst_131 = arith.constant 9.99999974E-6 : f32
      %252 = vector.broadcast %cst_131 : f32 to vector<2x1xf32>
      %253 = arith.addf %249, %252 : vector<2x1xf32>
      %254 = math.rsqrt %253 : vector<2x1xf32>
      %255 = vector.broadcast %254 : vector<2x1xf32> to vector<2x32xf32>
      %256 = arith.mulf %251, %255 : vector<2x32xf32>
      %257 = vector.broadcast %237 : vector<1x32xf32> to vector<2x32xf32>
      %258 = arith.mulf %256, %257 : vector<2x32xf32>
      %259 = vector.broadcast %238 : vector<1x32xf32> to vector<2x32xf32>
      %260 = arith.addf %258, %259 : vector<2x32xf32>
      %c0_132 = arith.constant 0 : index
      %c0_133 = arith.constant 0 : index
      %261 = vector.load %arg12[%c0_132, %c0_133] : memref<32x128xf32, #tpu.memory_space<vmem>>, vector<32x128xf32>
      %cst_134 = arith.constant dense<0.000000e+00> : vector<2x128xf32>
      %262 = tpu.matmul %260, %261, %cst_134 {dimension_numbers = #tpu.dot_dimension_numbers<[1], [0], [0], [1], [0, 0, 1, 1], [], []>} : vector<2x32xf32>, vector<32x128xf32>, vector<2x128xf32> -> vector<2x128xf32>
      %c0_135 = arith.constant 0 : index
      %c0_136 = arith.constant 0 : index
      %263 = vector.load %arg13[%c0_135, %c0_136] : memref<1x128xf32, #tpu.memory_space<vmem>>, vector<1x128xf32>
      %264 = vector.broadcast %263 : vector<1x128xf32> to vector<2x128xf32>
      %265 = arith.addf %262, %264 : vector<2x128xf32>
      %c0_137 = arith.constant 0 : index
      %c0_138 = arith.constant 0 : index
      %266 = vector.load %arg14[%c0_137, %c0_138] : memref<2x128xf32, #tpu.memory_space<vmem>>, vector<2x128xf32>
      tpu.vector_store %arg14[%c0_137, %c0_138], %265 {strides = array<i32>} : memref<2x128xf32, #tpu.memory_space<vmem>>, vector<2x128xf32>,
    } else {
    }
    return
  }
  func.func @transform_0(%arg0: i32) -> (i32, i32, i32) {
    %c0_i32 = arith.constant 0 : i32
    %c0_i32_0 = arith.constant 0 : i32
    %c0_i32_1 = arith.constant 0 : i32
    %c0_i32_2 = arith.constant 0 : i32
    return %c0_i32, %c0_i32_0, %c0_i32_1 : i32, i32, i32
  }
  func.func @transform_1(%arg0: i32) -> (i32, i32, i32, i32) {
    %c0_i32 = arith.constant 0 : i32
    %c0_i32_0 = arith.constant 0 : i32
    %c0_i32_1 = arith.constant 0 : i32
    %c0_i32_2 = arith.constant 0 : i32
    return %arg0, %c0_i32, %c0_i32_0, %c0_i32_1 : i32, i32, i32, i32
  }
  func.func @transform_2(%arg0: i32) -> (i32, i32, i32, i32) {
    %c0_i32 = arith.constant 0 : i32
    %c0_i32_0 = arith.constant 0 : i32
    %c0_i32_1 = arith.constant 0 : i32
    %c0_i32_2 = arith.constant 0 : i32
    return %arg0, %c0_i32, %c0_i32_0, %c0_i32_1 : i32, i32, i32, i32
  }
  func.func @transform_3(%arg0: i32) -> (i32, i32, i32, i32) {
    %c0_i32 = arith.constant 0 : i32
    %c0_i32_0 = arith.constant 0 : i32
    %c0_i32_1 = arith.constant 0 : i32
    %c0_i32_2 = arith.constant 0 : i32
    return %arg0, %c0_i32, %c0_i32_0, %c0_i32_1 : i32, i32, i32, i32
  }
  func.func @transform_4(%arg0: i32) -> (i32, i32, i32, i32) {
    %c0_i32 = arith.constant 0 : i32
    %c0_i32_0 = arith.constant 0 : i32
    %c0_i32_1 = arith.constant 0 : i32
    %c0_i32_2 = arith.constant 0 : i32
    return %arg0, %c0_i32, %c0_i32_0, %c0_i32_1 : i32, i32, i32, i32
  }
  func.func @transform_5(%arg0: i32) -> (i32, i32, i32) {
    %c0_i32 = arith.constant 0 : i32
    %c0_i32_0 = arith.constant 0 : i32
    %c0_i32_1 = arith.constant 0 : i32
    return %arg0, %c0_i32, %c0_i32_0 : i32, i32, i32
  }
  func.func @transform_6(%arg0: i32) -> (i32, i32, i32) {
    %c0_i32 = arith.constant 0 : i32
    %c0_i32_0 = arith.constant 0 : i32
    %c0_i32_1 = arith.constant 0 : i32
    return %arg0, %c0_i32, %c0_i32_0 : i32, i32, i32
  }
  func.func @transform_7(%arg0: i32) -> (i32, i32, i32) {
    %c0_i32 = arith.constant 0 : i32
    %c0_i32_0 = arith.constant 0 : i32
    %c0_i32_1 = arith.constant 0 : i32
    return %arg0, %c0_i32, %c0_i32_0 : i32, i32, i32
  }
  func.func @transform_8(%arg0: i32) -> (i32, i32, i32) {
    %c0_i32 = arith.constant 0 : i32
    %c0_i32_0 = arith.constant 0 : i32
    %c0_i32_1 = arith.constant 0 : i32
    return %arg0, %c0_i32, %c0_i32_0 : i32, i32, i32
  }
  func.func @transform_9(%arg0: i32) -> (i32, i32) {
    %c0_i32 = arith.constant 0 : i32
    %c0_i32_0 = arith.constant 0 : i32
    %c0_i32_1 = arith.constant 0 : i32
    return %c0_i32, %c0_i32_0 : i32, i32
  }
  func.func @transform_10(%arg0: i32) -> (i32, i32) {
    %c0_i32 = arith.constant 0 : i32
    %c0_i32_0 = arith.constant 0 : i32
    %c0_i32_1 = arith.constant 0 : i32
    return %c0_i32, %c0_i32_0 : i32, i32
  }
  func.func @transform_11(%arg0: i32) -> (i32, i32) {
    %c0_i32 = arith.constant 0 : i32
    %c0_i32_0 = arith.constant 0 : i32
    %c0_i32_1 = arith.constant 0 : i32
    return %c0_i32, %c0_i32_0 : i32, i32
  }
  func.func @transform_12(%arg0: i32) -> (i32, i32) {
    %c0_i32 = arith.constant 0 : i32
    %c0_i32_0 = arith.constant 0 : i32
    %c0_i32_1 = arith.constant 0 : i32
    return %c0_i32, %c0_i32_0 : i32, i32
  }
  func.func @transform_13(%arg0: i32) -> (i32, i32) {
    %c0_i32 = arith.constant 0 : i32
    %c0_i32_0 = arith.constant 0 : i32
    %c0_i32_1 = arith.constant 0 : i32
    return %c0_i32, %c0_i32_0 : i32, i32
  }
}

</mosaic_0001>

<bundles_post_ra>
// kernel: tpu_custom_call.1
= control target key start
LH: loop header
LB: loop body
LE: loop exit
PB: predicated region body
PF: predicated region fallthrough
CT: control target
= control target key end

     0   :  { %s7582_s0 = inlined_call_operand.vmem [shape: f32[2,8,32], index: 0, kind: input, shape index: {}]   ;;  %s7583_s1 = inlined_call_operand.vmem [shape: f32[2,4,32,8], index: 1, kind: input, shape index: {}]   ;;  %s7584_s2 = inlined_call_operand.vmem [shape: f32[2,4,32,8], index: 2, kind: input, shape index: {}]   ;;  %s7585_s3 = inlined_call_operand.vmem [shape: f32[2,4,32,8], index: 3, kind: input, shape index: {}]   ;;  %s7586_s4 = inlined_call_operand.vmem [shape: f32[2,4,8,32], index: 4, kind: input, shape index: {}]   ;;  %s7587_s5 = inlined_call_operand.vmem [shape: f32[2,32,2048], index: 5, kind: input, shape index: {}]   ;;  %s7588_s6 = inlined_call_operand.vmem [shape: f32[2,2048,32], index: 6, kind: input, shape index: {}]   ;;  %s7589_s7 = inlined_call_operand.vmem [shape: f32[2,9,32], index: 7, kind: input, shape index: {}]   ;;  %s7590_s8 = inlined_call_operand.vmem [shape: f32[2,1,2048], index: 8, kind: input, shape index: {}]   ;;  %s7591_s9 = inlined_call_operand.vmem [shape: f32[1,32], index: 9, kind: input, shape index: {}]   ;;  %s7592_s10 = inlined_call_operand.vmem [shape: f32[1,32], index: 10, kind: input, shape index: {}]   ;;  %s7593_s11 = inlined_call_operand.vmem [shape: f32[32,128], index: 11, kind: input, shape index: {}]   ;;  %s7594_s12 = inlined_call_operand.vmem [shape: f32[1,128], index: 12, kind: input, shape index: {}]   ;;  %s7595_s13 = inlined_call_operand.hbm [shape: f32[2,128], index: 13, kind: output, shape index: {}]  }
   0x1   :  { %7598 = sst [smem:[#allocation7_spill]] %s7583_s1 }
   0x2   :  { %7599 = sst [smem:[#allocation8_spill]] %s7584_s2 }
   0x3   :  { %7600 = sst [smem:[#allocation9_spill]] %s7585_s3 }
   0x4   :  { %7601 = sst [smem:[#allocation10_spill]] %s7595_s13 }
   0x5   :  { %18 = vsyncpa [#allocation4], 0  ;;  %s6669_s25 = smov 0  }
   0x6 LB: > { %7602 = sst [smem:[#allocation6_spill]] %s6588_s25  ;;  %s6675_s26 = sadd.s32 4294967295, %s6588_s25   ;;  %s6588_s25 = sphi %s6669_s25, %s24_s25  }
   0x7   : > { %p5243_p0 = scmp.ge.s32.totalorder %s6588_s25, 1  ;;  %p452_p1 = scmp.lt.s32.totalorder %s6588_s25, 3 }
   0x9   : > { %p453_p2 = pnand %p5243_p0, %p452_p1 }
   0xa   : > { %p525_p3 = scmp.lt.s32.totalorder (!%p453_p2), %s6675_s26, 1  ;;  %s7603_s1 = sld [smem:[#allocation7_spill]] (!%p453_p2) }
   0xb   : > { %456 = sbr.rel (%p453_p2) target bundleno = 5659 (0x161b), region = 72  ;;  %s7604_s2 = sld [smem:[#allocation8_spill]] (!%p453_p2) }
   0xc   : > { %s7605_s3 = sld [smem:[#allocation9_spill]] (!%p453_p2)  ;;  %p5259_p4 = scmp.ne.s32.totalorder (!%p453_p2), %s6675_s26, 0 }
  0x12   : > { %s526_s27 = scalar_select %p525_p3, %s6675_s26, 1 }
  0x13   : > { %v568_v0 = vld [vmem:[%s7582_s0] sm:$0xff] (!%p5259_p4)  ;;  %vm570_vm0 = vcmask (!%p5259_p4), 261120   ;;  %v569_v1 = vld [vmem:[%s7582_s0 + $0x8] sm:$0xff] (!%p5259_p4) }
  0x14   : > { %s5381_s28 = sshll.u32 %s526_s27, 7  ;;  %s5384_s29 = sshll.u32 %s526_s27, 5  ;;  %571 = vst.msk [vmem:[#allocation2] sm:$0xff] (!%p5259_p4), %vm570_vm0, %v568_v0  ;;  %572 = vst.msk [vmem:[#allocation2 + $0x8] sm:$0xff] (!%p5259_p4), %vm570_vm0, %v569_v1 }
  0x15   : > { %s6684_s15 = scalar_lea.vmem %s7603_s1, %s5381_s28  ;;  %s6689_s18 = scalar_lea.vmem %s7604_s2, %s5381_s28 }
  0x16   : > { %s6694_s21 = scalar_lea.vmem %s7605_s3, %s5381_s28  ;;  %s6699_s24 = scalar_lea.vmem %s7586_s4, %s5384_s29 }
  0x17   : > { %s5385_s25 = sshll.u32 %s526_s27, 9  ;;  %s5386_s13 = sshll.u32 %s526_s27, 11 }
  0x18   : > { %s6704_s1 = scalar_lea.vmem %s7587_s5, %s5385_s25  ;;  %s6709_s2 = scalar_lea.vmem %s7588_s6, %s5386_s13 }
  0x19   : > { %s5387_s19 = sshll.u32 %s526_s27, 4  ;;  %567 = sbr.rel (%p5259_p4) target bundleno = 32 (0x20), region = 76 }
  0x1a   : > { %s6714_s3 = scalar_lea.vmem %s7589_s7, %s5387_s19  ;;  %s6719_s23 = scalar_lea.vmem %s7590_s8, %s5387_s19 }
  0x20 PF: > { %v667_v2 = vld [vmem:[%s6689_s18] sm:$0xff]  ;;  %v668_v3 = vld [vmem:[%s6689_s18 + $0x8] sm:$0xff]  ;;  %vm585_vm1 = vcmask 261120   ;;  %v669_v7 = vld [vmem:[%s6689_s18 + $0x10] sm:$0xff]  ;;  %v6590_v16 = vmov 0.0   ;;  %vm6591_vm2 = vmmov 0   ;;  %v581_v17 = vlaneseq }
  0x21   : > { %v577_v4 = vld [vmem:[%s6684_s15] sm:$0xff]  ;;  %v6064_v5 = vpack.c.bf16 %v668_v3, %v667_v2  ;;  %v578_v6 = vld [vmem:[%s6684_s15 + $0x8] sm:$0xff]  ;;  %v670_v8 = vld [vmem:[%s6689_s18 + $0x18] sm:$0xff]  ;;  %vm833_vm3 = vcmask 64512   ;;  %s6592_s14 = smov 120   ;;  %s6593_s16 = smov 112  }
  0x22   : > { %v6056_v9 = vpack.c.bf16 %v578_v6, %v577_v4  ;;  %v6068_v10 = vpack.c.bf16 %v670_v8, %v669_v7  ;;  %v579_v11 = vld [vmem:[%s6684_s15 + $0x10] sm:$0xff]  ;;  %v580_v12 = vld [vmem:[%s6684_s15 + $0x18] sm:$0xff]  ;;  %v6736_v13 = vld [vmem:[#allocation2] sm:$0xff]  ;;  %v6753_v18 = vshrl.u32 %v581_v17, 7  ;;  %s6594_s17 = smov 104   ;;  %p5372_p5 = scmp.ne.s32.totalorder %s6675_s26, 1 }
  0x23   : > { %6065 = vmatprep.subr.bf16.mxu1 %v6064_v5  ;;  %v6060_v14 = vpack.c.bf16 %v580_v12, %v579_v11  ;;  %5832 = vmatprep.mubr.msk.f32.mxu1 %vm585_vm1, %v6736_v13  ;;  %v6742_v15 = vld [vmem:[#allocation2 + $0x8] sm:$0xff]  ;;  %v6759_v20 = vld [vmem:[%s6714_s3] sm:$0xff]  ;;  %v752_v34 = vld [vmem:[%s6694_s21 + $0x10] sm:$0xff]  ;;  %vm4965_vm4 = vcmask (!%p5372_p5), 253952   ;;  %vm4961_vm5 = vcmask (!%p5372_p5), 261127   ;;  %vm6596_vm6 = vmmov (!%p5372_p5), 0  }
  0x24   : > { %6067 = vmatpush3.bf16.msra.mxu1 %v6064_v5  ;;  %6057 = vmatprep.subr.bf16.mxu0 %v6056_v9  ;;  %v6756_v19 = vsub.s32 1, %v6753_v18  ;;  %v6762_v21 = vsub.s32 0, %v6753_v18  ;;  %v750_v32 = vld [vmem:[%s6694_s21] sm:$0xff]  ;;  %v751_v33 = vld [vmem:[%s6694_s21 + $0x8] sm:$0xff]  ;;  %v753_v36 = vld [vmem:[%s6694_s21 + $0x18] sm:$0xff]  ;;  %v6799_v54 = vsub.s32 2, %v6753_v18 }
  0x25   : > { %6059 = vmatpush3.bf16.msra.mxu0 %v6056_v9  ;;  %6069 = vmatprep.subr.bf16.mxu1 %v6068_v10  ;;  %v6072_v35 = vpack.c.bf16 %v751_v33, %v750_v32  ;;  %v6076_v37 = vpack.c.bf16 %v753_v36, %v752_v34  ;;  %v5272_v59 = vld [vmem:[%s6684_s15 + $0x20] sm:$0xff]  ;;  %v5273_v60 = vld [vmem:[%s6684_s15 + $0x28] sm:$0xff]  ;;  %v5274_v62 = vld [vmem:[%s6684_s15 + $0x30] sm:$0xff]  ;;  %vm5035_vm7 = vcmask (!%p5372_p5), 1041409  }
  0x26   : > { %6061 = vmatprep.subr.bf16.mxu0 %v6060_v14  ;;  %5821 = vmatprep.mubr.msk.f32.mxu0 %vm585_vm1, %v6736_v13  ;;  %v6766_v22 = vrot.slane %v6759_v20, %v6756_v19  ;;  %v6770_v23 = vrot.slane %v6759_v20, %v6762_v21  ;;  %v6803_v55 = vrot.slane %v6759_v20, %v6799_v54  ;;  %v5275_v63 = vld [vmem:[%s6684_s15 + $0x38] sm:$0xff]  ;;  %v5278_v3 = vld [vmem:[%s6689_s18 + $0x20] sm:$0xff]  ;;  %v5279_v4 = vld [vmem:[%s6689_s18 + $0x28] sm:$0xff] }
  0x27   : > { %v6080_v61 = vpack.c.bf16 %v5273_v60, %v5272_v59  ;;  %v6084_v0 = vpack.c.bf16 %v5275_v63, %v5274_v62  ;;  %v6088_v7 = vpack.c.bf16 %v5279_v4, %v5278_v3  ;;  %v5280_v9 = vld [vmem:[%s6689_s18 + $0x30] sm:$0xff] }
  0x28   : > { %6071 = vmatpush3.bf16.msra.mxu1 %v6068_v10  ;;  %v5281_v10 = vld [vmem:[%s6689_s18 + $0x38] sm:$0xff] }
  0x29   : > { %6063 = vmatpush3.bf16.msra.mxu0 %v6060_v14  ;;  %5846 = vmatprep.subr.mxu1 %v6590_v16  ;;  %v6092_v14 = vpack.c.bf16 %v5281_v10, %v5280_v9  ;;  %v1154_v9 = vld [vmem:[%s6699_s24] sm:$0xff] }
  0x2a   : > { %6073 = vmatprep.subr.bf16.mxu0 %v6072_v35  ;;  %v5301_v10 = vld [vmem:[%s6684_s15 + $0x40] sm:$0xff] }
  0x2b   : > { %5833 = vmatmul.mubr.msk.f32.vlgmr.msra.gmra.mrb[0].mxu1 %vm585_vm1, %v6742_v15 }
  0x2c   : > { %5822 = vmatmul.mubr.msk.f32.vlgmr.msra.gmra.mrb[0].mxu0 %vm585_vm1, %v6742_v15  ;;  %5848 = vmatprep.mubr.msk.f32.mxu1 %vm6591_vm2, %v6590_v16 }
  0x2d   : > { %5843 = vmatprep.mubr.msk.f32.mxu0 %vm585_vm1, %v6736_v13  ;;  %6075 = vmatpush3.bf16.msra.mxu0 %v6072_v35 }
  0x2e   : > { %6077 = vmatprep.subr.bf16.mxu0 %v6076_v37 }
  0x31   : > { %6079 = vmatpush3.bf16.msra.mxu0 %v6076_v37  ;;  %v5284_v37 = vld [vmem:[%s6694_s21 + $0x20] sm:$0xff] }
  0x32   : > { %6081 = vmatprep.subr.bf16.mxu0 %v6080_v61 }
  0x34   : > { %5844 = vmatmul.mubr.msk.f32.vlgmr.msra.gmra.mrb[2].mxu0 %vm585_vm1, %v6742_v15 }
  0x35   : > { %5874 = vmatprep.mubr.msk.f32.mxu0 %vm585_vm1, %v6736_v13  ;;  %6083 = vmatpush3.bf16.msra.mxu0 %v6080_v61 }
  0x36   : > { %6085 = vmatprep.subr.bf16.mxu0 %v6084_v0 }
  0x39   : > { %6087 = vmatpush3.bf16.msra.mxu0 %v6084_v0 }
  0x3c   : > { %5875 = vmatmul.mubr.msk.f32.vlgmr.msra.gmra.mrb[4].mxu0 %vm585_vm1, %v6742_v15 }
  0x3d   : > { %5896 = vmatprep.mubr.msk.f32.mxu0 %vm585_vm1, %v6736_v13 }
  0xfe   : > { %v5834_v24 = vpop.f32.mrb[0].mxu1 }
  0xff   : > { %v741_v25 = vpop.f32.mrb[1].mxu1  ;;  %v5823_v26 = vpop.f32.mrb[0].mxu0  ;;  %v747_v30 = vadd.f32 %v5834_v24, %v6766_v22 }
 0x100   : > { %v742_v27 = vadd.f32 %v741_v25, %v6766_v22  ;;  %v658_v28 = vpop.f32.mrb[1].mxu0  ;;  %v664_v31 = vadd.f32 %v5823_v26, %v6770_v23 }
 0x101   : > { %v659_v29 = vadd.f32 %v658_v28, %v6770_v23 }
 0x102   : > { %5847 = vmatpush3.xpose.msk.msra.mxu1 %vm833_vm3, %v742_v27 }
 0x103   : > { %5851 = vmatprep.subr.mxu1 %v6590_v16 }
 0x105   : > { %5849 = vmatmul.mubr.msk.f32.vlgmr.msra.gmra.mrb[2].mxu1 %vm833_vm3, %v659_v29 }
 0x106   : > { %5852 = vmatpush3.xpose.msk.msra.mxu1 %vm833_vm3, %v747_v30  ;;  %5853 = vmatprep.mubr.msk.f32.mxu1 %vm6591_vm2, %v6590_v16 }
 0x107   : > { %5856 = vmatprep.subr.mxu1 %v6590_v16  ;;  %v5845_v56 = vpop.f32.mrb[2].mxu0 }
 0x108   : > { %v824_v57 = vpop.f32.mrb[3].mxu0  ;;  %v830_v8 = vadd.f32 %v5845_v56, %v6803_v55 }
 0x109   : > { %5854 = vmatmul.mubr.msk.f32.vlgmr.msra.gmra.mrb[4].mxu1 %vm833_vm3, %v664_v31  ;;  %v825_v58 = vadd.f32 %v824_v57, %v6803_v55 }
 0x10a   : > { %5858 = vmatprep.mubr.msk.f32.mxu1 %vm6591_vm2, %v6590_v16 }
 0x10b   : > { %5857 = vmatpush3.msra.mxu1 %v825_v58 }
 0x10c   : > { %5861 = vmatprep.subr.mxu1 %v6590_v16 }
 0x10f   : > { %v5876_v17 = vpop.f32.mrb[4].mxu0 }
 0x110   : > { %v1230_v24 = vpop.f32.mrb[5].mxu0 }
 0x1d8   : > { %v906_v38 = vpop.f32.mrb[2].mxu1 }
 0x1d9   : > { %v5850_v39 = vpop.f32.mrb[3].mxu1  ;;  %v986_v40 = vsel %vm833_vm3, %v906_v38, -inf }
 0x1da   : > { %987 = vmax.xlane.f32.xlu0 %v986_v40  ;;  %v5286_v39 = vld [vmem:[%s6694_s21 + $0x30] sm:$0xff] }
 0x1dc   : > { %v982_v41 = vpop.f32.mrb[4].mxu1 }
 0x1dd   : > { %v5855_v42 = vpop.f32.mrb[5].mxu1  ;;  %v989_v43 = vsel %vm833_vm3, %v982_v41, -inf }
 0x1de   : > { %990 = vmax.xlane.f32.xlu0 %v989_v43 }
 0x1f4   : > { %1245 = vrot.lane.b32.xlu0 %v6766_v22, %s6592_s14 }
 0x267   : > { %v988_v44 = vpop.xlane.xlu0 %987 }
 0x268   : > { %v992_v45 = vsub.f32 %v906_v38, %v988_v44  ;;  %v5285_v38 = vld [vmem:[%s6694_s21 + $0x28] sm:$0xff] }
 0x269   : > { %v6096_v40 = vpack.c.bf16 %v5285_v38, %v5284_v37 }
 0x26a   : > { %v994_v46 = vmul.f32 1.442695, %v992_v45 }
 0x26b   : > { %v991_v47 = vpop.xlane.xlu0 %990  ;;  %6097 = vmatprep.subr.bf16.mxu0 %v6096_v40 }
 0x26c   : > { %6507 = vpow2.f32 %v994_v46  ;;  %v993_v48 = vsub.f32 %v982_v41, %v991_v47  ;;  %v5287_v41 = vld [vmem:[%s6694_s21 + $0x38] sm:$0xff]  ;;  %6099 = vmatpush3.bf16.msra.mxu0 %v6096_v40  ;;  %v5309_v40 = vld [vmem:[%s6689_s18 + $0x50] sm:$0xff] }
 0x26d   : > { %v6100_v42 = vpack.c.bf16 %v5287_v41, %v5286_v39  ;;  %v5310_v41 = vld [vmem:[%s6689_s18 + $0x58] sm:$0xff] }
 0x26e   : > { %v996_v49 = vmul.f32 1.442695, %v993_v48 }
 0x26f   : > { %v1246_v29 = vpop.permute.xlu0 %1245  ;;  %6101 = vmatprep.subr.bf16.mxu0 %v6100_v42 }
 0x270   : > { %6509 = vpow2.f32 %v996_v49  ;;  %6103 = vmatpush3.bf16.msra.mxu0 %v6100_v42  ;;  %v6116_v42 = vpack.c.bf16 %v5310_v41, %v5309_v40 }
 0x271   : > { %5909 = vmatprep.subr.mxu0 %v6590_v16 }
 0x273   : > { %5897 = vmatmul.mubr.msk.f32.vlgmr.msra.gmra.mrb[6].mxu0 %vm585_vm1, %v6742_v15 }
 0x274   : > { %5911 = vmatprep.mubr.msk.f32.mxu0 %vm6591_vm2, %v6590_v16 }
 0x276   : > { %v6508_v50 = vpop.eup %6507 }
 0x277   : > { %v998_v51 = vsel %vm833_vm3, %v6508_v50, 0.0 }
 0x278   : > { %999 = vadd.xlane.f32.xlu1 %v998_v51 }
 0x27a   : > { %v6510_v52 = vpop.eup %6509 }
 0x27b   : > { %v1001_v53 = vsel %vm833_vm3, %v6510_v52, 0.0 }
 0x27c   : > { %1002 = vadd.xlane.f32.xlu1 %v1001_v53 }
 0x28d   : > { %1161 = vrot.lane.b32.xlu1 %v6770_v23, %s6592_s14 }
 0x305   : > { %v1000_v1 = vpop.xlane.xlu1 %999 }
 0x306   : > { %6511 = vrcp.f32 %v1000_v1 }
 0x309   : > { %v1003_v2 = vpop.xlane.xlu1 %1002 }
 0x30a   : > { %6513 = vrcp.f32 %v1003_v2 }
 0x30d   : > { %v1162_v31 = vpop.permute.xlu1 %1161 }
 0x30e   : > { %v1231_v34 = vadd.f32 %v1230_v24, %v1162_v31  ;;  %v1236_v36 = vadd.f32 %v5876_v17, %v1162_v31  ;;  %v5304_v17 = vld [vmem:[%s6684_s15 + $0x58] sm:$0xff] }
 0x30f   : > { %v5316_v31 = vld [vmem:[%s6694_s21 + $0x58] sm:$0xff] }
 0x310   : > { %v6512_v5 = vpop.eup %6511 }
 0x311   : > { %v1006_v6 = vmul.f32 %v6512_v5, %v6508_v50 }
 0x313   : > { %5859 = vmatmul.mubr.msk.f32.vlgmr.msra.gmra.mrb[6].mxu1 %vm833_vm3, %v1006_v6 }
 0x314   : > { %v6514_v11 = vpop.eup %6513  ;;  %5862 = vmatpush3.msra.mxu1 %v830_v8  ;;  %5863 = vmatprep.mubr.msk.f32.mxu1 %vm6591_vm2, %v6590_v16  ;;  %v5296_v8 = vld [vmem:[%s6699_s24 + $0x8] sm:$0xff] }
 0x315   : > { %v1007_v12 = vmul.f32 %v6514_v11, %v6510_v52  ;;  %6089 = vmatprep.subr.bf16.mxu1 %v6088_v7  ;;  %v5302_v11 = vld [vmem:[%s6684_s15 + $0x48] sm:$0xff] }
 0x317   : > { %5864 = vmatmul.mubr.msk.f32.vlgmr.msra.gmra.mrb[8].mxu1 %vm833_vm3, %v1007_v12  ;;  %v6104_v12 = vpack.c.bf16 %v5302_v11, %v5301_v10 }
 0x318   : > { %6091 = vmatpush3.bf16.msra.mxu1 %v6088_v7  ;;  %5885 = vmatprep.mubr.msk.f32.mxu1 %vm585_vm1, %v6736_v13 }
 0x319   : > { %6093 = vmatprep.subr.bf16.mxu1 %v6092_v14 }
 0x31c   : > { %6095 = vmatpush3.bf16.msra.mxu1 %v6092_v14  ;;  %v5303_v14 = vld [vmem:[%s6684_s15 + $0x50] sm:$0xff] }
 0x31d   : > { %5899 = vmatprep.subr.mxu1 %v6590_v16  ;;  %v6108_v24 = vpack.c.bf16 %v5304_v17, %v5303_v14 }
 0x31f   : > { %5886 = vmatmul.mubr.msk.f32.vlgmr.msra.gmra.mrb[10].mxu1 %vm585_vm1, %v6742_v15 }
 0x320   : > { %5901 = vmatprep.mubr.msk.f32.mxu1 %vm6591_vm2, %v6590_v16 }
 0x346   : > { %v5898_v61 = vpop.f32.mrb[6].mxu0 }
 0x347   : > { %v1398_v62 = vpop.f32.mrb[7].mxu0 }
 0x3e6   : > { %v6835_v25 = vpop.f32.mrb[6].mxu1 }
 0x3e7   : > { %v5860_v26 = vpop.f32.mrb[7].mxu1 }
 0x3e8   : > { %v5313_v26 = vld [vmem:[%s6694_s21 + $0x40] sm:$0xff] }
 0x3ea   : > { %v6837_v27 = vpop.f32.mrb[8].mxu1 }
 0x3eb   : > { %v5865_v28 = vpop.f32.mrb[9].mxu1 }
 0x3ec   : > { %v5314_v28 = vld [vmem:[%s6694_s21 + $0x48] sm:$0xff] }
 0x3f2   : > { %v5887_v30 = vpop.f32.mrb[10].mxu1 }
 0x3f3   : > { %v1314_v32 = vpop.f32.mrb[11].mxu1  ;;  %v1320_v35 = vadd.f32 %v5887_v30, %v1246_v29  ;;  %v6120_v30 = vpack.c.bf16 %v5314_v28, %v5313_v26  ;;  %v5325_v26 = vld [vmem:[%s6699_s24 + $0x10] sm:$0xff]  ;;  %v5334_v28 = vld [vmem:[%s6689_s18 + $0x60] sm:$0xff] }
 0x3f4   : > { %v1315_v33 = vadd.f32 %v1314_v32, %v1246_v29  ;;  %v5315_v29 = vld [vmem:[%s6694_s21 + $0x50] sm:$0xff] }
 0x3f5   : > { %v6124_v32 = vpack.c.bf16 %v5316_v31, %v5315_v29  ;;  %v5335_v29 = vld [vmem:[%s6689_s18 + $0x68] sm:$0xff]  ;;  %v5328_v31 = vld [vmem:[%s6684_s15 + $0x60] sm:$0xff] }
 0x3f6   : > { %5900 = vmatpush3.xpose.msk.msra.mxu1 %vm833_vm3, %v1315_v33 }
 0x3f7   : > { %5904 = vmatprep.subr.mxu1 %v6590_v16 }
 0x3f9   : > { %5902 = vmatmul.mubr.msk.f32.vlgmr.msra.gmra.mrb[12].mxu1 %vm833_vm3, %v1231_v34  ;;  %v5307_v34 = vld [vmem:[%s6689_s18 + $0x40] sm:$0xff] }
 0x3fa   : > { %5905 = vmatpush3.xpose.msk.msra.mxu1 %vm833_vm3, %v1320_v35  ;;  %5906 = vmatprep.mubr.msk.f32.mxu1 %vm6591_vm2, %v6590_v16  ;;  %v5308_v35 = vld [vmem:[%s6689_s18 + $0x48] sm:$0xff] }
 0x3fb   : > { %5914 = vmatprep.subr.mxu1 %v6590_v16  ;;  %v6112_v37 = vpack.c.bf16 %v5308_v35, %v5307_v34  ;;  %v5330_v34 = vld [vmem:[%s6684_s15 + $0x70] sm:$0xff]  ;;  %v5331_v35 = vld [vmem:[%s6684_s15 + $0x78] sm:$0xff] }
 0x3fd   : > { %5907 = vmatmul.mubr.msk.f32.vlgmr.msra.gmra.mrb[14].mxu1 %vm833_vm3, %v1236_v36 }
 0x3fe   : > { %5916 = vmatprep.mubr.msk.f32.mxu1 %vm6591_vm2, %v6590_v16 }
 0x4cc   : > { %v1479_v43 = vpop.f32.mrb[12].mxu1 }
 0x4cd   : > { %v5903_v44 = vpop.f32.mrb[13].mxu1  ;;  %v1559_v45 = vsel %vm833_vm3, %v1479_v43, -inf }
 0x4ce   : > { %1560 = vmax.xlane.f32.xlu1 %v1559_v45 }
 0x4d0   : > { %v1555_v46 = vpop.f32.mrb[14].mxu1 }
 0x4d1   : > { %v5908_v47 = vpop.f32.mrb[15].mxu1  ;;  %v1562_v48 = vsel %vm833_vm3, %v1555_v46, -inf }
 0x4d2   : > { %1563 = vmax.xlane.f32.xlu0 %v1562_v48 }
 0x55b   : > { %v1561_v49 = vpop.xlane.xlu1 %1560 }
 0x55c   : > { %v1565_v50 = vsub.f32 %v1479_v43, %v1561_v49 }
 0x55e   : > { %v1567_v51 = vmul.f32 1.442695, %v1565_v50 }
 0x55f   : > { %v1564_v52 = vpop.xlane.xlu0 %1563 }
 0x560   : > { %6515 = vpow2.f32 %v1567_v51  ;;  %v1566_v53 = vsub.f32 %v1555_v46, %v1564_v52 }
 0x562   : > { %v1569_v56 = vmul.f32 1.442695, %v1566_v53 }
 0x564   : > { %6517 = vpow2.f32 %v1569_v56 }
 0x56a   : > { %v6516_v57 = vpop.eup %6515 }
 0x56b   : > { %v1571_v58 = vsel %vm833_vm3, %v6516_v57, 0.0 }
 0x56c   : > { %1572 = vadd.xlane.f32.xlu0 %v1571_v58 }
 0x56e   : > { %v6518_v59 = vpop.eup %6517 }
 0x56f   : > { %v1574_v60 = vsel %vm833_vm3, %v6518_v59, 0.0 }
 0x570   : > { %1575 = vadd.xlane.f32.xlu1 %v1574_v60 }
 0x581   : > { %1979 = vrot.lane.b32.xlu1 %v6766_v22, %s6593_s16 }
 0x582   : > { %1329 = vrot.lane.b32.xlu0 %v6803_v55, %s6592_s14 }
 0x585   : > { %1896 = vrot.lane.b32.xlu1 %v6770_v23, %s6593_s16 }
 0x5f9   : > { %v1573_v63 = vpop.xlane.xlu0 %1572 }
 0x5fa   : > { %6519 = vrcp.f32 %v1573_v63 }
 0x5fd   : > { %v1576_v0 = vpop.xlane.xlu1 %1575  ;;  %v1330_v1 = vpop.permute.xlu0 %1329 }
 0x5fe   : > { %6521 = vrcp.f32 %v1576_v0  ;;  %v1399_v2 = vadd.f32 %v1398_v62, %v1330_v1  ;;  %v1404_v3 = vadd.f32 %v5898_v61, %v1330_v1 }
 0x600   : > { %5910 = vmatpush3.msra.mxu0 %v1399_v2  ;;  %5915 = vmatpush3.msra.mxu1 %v1404_v3 }
 0x601   : > { %5919 = vmatprep.subr.mxu0 %v5296_v8  ;;  %6105 = vmatprep.subr.bf16.mxu1 %v6104_v12  ;;  %v1980_v46 = vpop.permute.xlu1 %1979 }
 0x604   : > { %v6520_v4 = vpop.eup %6519 }
 0x605   : > { %v1579_v5 = vmul.f32 %v6520_v4, %v6516_v57 }
 0x607   : > { %5912 = vmatmul.mubr.msk.f32.vlgmr.msra.gmra.mrb[8].mxu0 %vm833_vm3, %v1579_v5 }
 0x608   : > { %v6522_v6 = vpop.eup %6521  ;;  %5920 = vmatpush3.msra.mxu0 %v5296_v8 }
 0x609   : > { %v1580_v7 = vmul.f32 %v6522_v6, %v6518_v59  ;;  %5924 = vmatprep.subr.mxu0 %v1154_v9 }
 0x60b   : > { %5917 = vmatmul.mubr.msk.f32.vlgmr.msra.gmra.mrb[16].mxu1 %vm833_vm3, %v1580_v7 }
 0x60c   : > { %5937 = vmatprep.mubr.msk.f32.mxu1 %vm585_vm1, %v6736_v13  ;;  %6107 = vmatpush3.bf16.msra.mxu1 %v6104_v12 }
 0x60d   : > { %6109 = vmatprep.subr.bf16.mxu1 %v6108_v24 }
 0x610   : > { %6111 = vmatpush3.bf16.msra.mxu1 %v6108_v24 }
 0x611   : > { %6121 = vmatprep.subr.bf16.mxu1 %v6120_v30 }
 0x613   : > { %5938 = vmatmul.mubr.msk.f32.vlgmr.msra.gmra.mrb[18].mxu1 %vm585_vm1, %v6742_v15 }
 0x614   : > { %5959 = vmatprep.mubr.msk.f32.mxu1 %vm585_vm1, %v6736_v13  ;;  %6123 = vmatpush3.bf16.msra.mxu1 %v6120_v30  ;;  %v6136_v30 = vpack.c.bf16 %v5335_v29, %v5334_v28 }
 0x615   : > { %6125 = vmatprep.subr.bf16.mxu1 %v6124_v32 }
 0x618   : > { %6127 = vmatpush3.bf16.msra.mxu1 %v6124_v32  ;;  %v5329_v32 = vld [vmem:[%s6684_s15 + $0x68] sm:$0xff] }
 0x619   : > { %5967 = vmatprep.subr.mxu1 %v6590_v16 }
 0x61b   : > { %5960 = vmatmul.mubr.msk.f32.vlgmr.msra.gmra.mrb[20].mxu1 %vm585_vm1, %v6742_v15 }
 0x61c   : > { %5969 = vmatprep.mubr.msk.f32.mxu1 %vm6591_vm2, %v6590_v16 }
 0x6da   : > { %v1650_v33 = vpop.f32.mrb[8].mxu0 }
 0x6db   : > { %v5913_v36 = vpop.f32.mrb[9].mxu0  ;;  %5921 = vmatprep.mubr.msk.f32.mxu0 %vm833_vm3, %v1650_v33  ;;  %v6128_v33 = vpack.c.bf16 %v5329_v32, %v5328_v31  ;;  %v5352_v31 = vld [vmem:[%s6699_s24 + $0x18] sm:$0xff] }
 0x6dc   : > { %v6132_v36 = vpack.c.bf16 %v5331_v35, %v5330_v34 }
 0x6de   : > { %v1723_v38 = vpop.f32.mrb[16].mxu1 }
 0x6df   : > { %v5918_v39 = vpop.f32.mrb[17].mxu1  ;;  %5922 = vmatmul.mubr.msk.f32.vlgmr.msra.gmra.mrb[10].mxu0 %vm833_vm3, %v1723_v38  ;;  %v5336_v38 = vld [vmem:[%s6689_s18 + $0x70] sm:$0xff] }
 0x6e0   : > { %5925 = vmatpush3.msra.mxu0 %v1154_v9  ;;  %5926 = vmatprep.mubr.msk.f32.mxu0 %vm833_vm3, %v6835_v25  ;;  %v5337_v39 = vld [vmem:[%s6689_s18 + $0x78] sm:$0xff] }
 0x6e1   : > { %6113 = vmatprep.subr.bf16.mxu0 %v6112_v37  ;;  %v6140_v41 = vpack.c.bf16 %v5337_v39, %v5336_v38 }
 0x6e6   : > { %v5939_v25 = vpop.f32.mrb[18].mxu1 }
 0x6e7   : > { %5927 = vmatmul.mubr.msk.f32.vlgmr.msra.gmra.mrb[10].mxu0 %vm833_vm3, %v6837_v27  ;;  %v1965_v43 = vpop.f32.mrb[19].mxu1  ;;  %v1897_v27 = vpop.permute.xlu1 %1896 }
 0x6e8   : > { %6115 = vmatpush3.bf16.msra.mxu0 %v6112_v37  ;;  %5948 = vmatprep.mubr.msk.f32.mxu0 %vm585_vm1, %v6736_v13  ;;  %v1971_v51 = vadd.f32 %v5939_v25, %v1897_v27  ;;  %v1966_v52 = vadd.f32 %v1965_v43, %v1897_v27 }
 0x6e9   : > { %6117 = vmatprep.subr.bf16.mxu0 %v6116_v42 }
 0x6ec   : > { %6119 = vmatpush3.bf16.msra.mxu0 %v6116_v42 }
 0x6ed   : > { %5962 = vmatprep.subr.mxu0 %v6590_v16 }
 0x6ee   : > { %v5961_v44 = vpop.f32.mrb[20].mxu1 }
 0x6ef   : > { %5949 = vmatmul.mubr.msk.f32.vlgmr.msra.gmra.mrb[12].mxu0 %vm585_vm1, %v6742_v15  ;;  %v2131_v45 = vpop.f32.mrb[21].mxu1 }
 0x6f0   : > { %5964 = vmatprep.mubr.msk.f32.mxu0 %vm6591_vm2, %v6590_v16 }
 0x7c2   : > { %v5950_v47 = vpop.f32.mrb[12].mxu0 }
 0x7c3   : > { %v2054_v48 = vadd.f32 %v5950_v47, %v1980_v46  ;;  %v2048_v49 = vpop.f32.mrb[13].mxu0 }
 0x7c4   : > { %v2049_v50 = vadd.f32 %v2048_v49, %v1980_v46 }
 0x7c5   : > { %5968 = vmatpush3.xpose.msk.msra.mxu1 %vm833_vm3, %v2054_v48 }
 0x7c6   : > { %5963 = vmatpush3.xpose.msk.msra.mxu0 %vm833_vm3, %v2049_v50  ;;  %5977 = vmatprep.subr.mxu1 %v6590_v16  ;;  %v5340_v50 = vld [vmem:[%s6694_s21 + $0x60] sm:$0xff] }
 0x7c7   : > { %5972 = vmatprep.subr.mxu0 %v6590_v16 }
 0x7c8   : > { %5970 = vmatmul.mubr.msk.f32.vlgmr.msra.gmra.mrb[22].mxu1 %vm833_vm3, %v1971_v51  ;;  %v5341_v51 = vld [vmem:[%s6694_s21 + $0x68] sm:$0xff] }
 0x7c9   : > { %5965 = vmatmul.mubr.msk.f32.vlgmr.msra.gmra.mrb[14].mxu0 %vm833_vm3, %v1966_v52  ;;  %5979 = vmatprep.mubr.msk.f32.mxu1 %vm6591_vm2, %v6590_v16  ;;  %v5342_v52 = vld [vmem:[%s6694_s21 + $0x70] sm:$0xff] }
 0x7ca   : > { %5974 = vmatprep.mubr.msk.f32.mxu0 %vm6591_vm2, %v6590_v16 }
 0x89b   : > { %v2288_v53 = vpop.f32.mrb[22].mxu1 }
 0x89c   : > { %v2212_v56 = vpop.f32.mrb[14].mxu0  ;;  %v5971_v57 = vpop.f32.mrb[23].mxu1  ;;  %v2295_v58 = vsel %vm833_vm3, %v2288_v53, -inf }
 0x89d   : > { %2296 = vmax.xlane.f32.xlu0 %v2295_v58  ;;  %v5966_v59 = vpop.f32.mrb[15].mxu0  ;;  %v2292_v60 = vsel %vm833_vm3, %v2212_v56, -inf }
 0x89e   : > { %2293 = vmax.xlane.f32.xlu1 %v2292_v60 }
 0x8af   : > { %2062 = vrot.lane.b32.xlu1 %v6803_v55, %s6593_s16 }
 0x8b3   : > { %2550 = vrot.lane.b32.xlu1 %v6770_v23, %s6594_s17 }
 0x92a   : > { %v2297_v61 = vpop.xlane.xlu0 %2296 }
 0x92b   : > { %v2299_v62 = vsub.f32 %v2288_v53, %v2297_v61  ;;  %v2294_v63 = vpop.xlane.xlu1 %2293  ;;  %v6144_v53 = vpack.c.bf16 %v5341_v51, %v5340_v50  ;;  %v3247_v50 = vld [vmem:[%s6704_s1 + $0x8] sm:$0xff] }
 0x92c   : > { %v2298_v0 = vsub.f32 %v2212_v56, %v2294_v63  ;;  %v5343_v56 = vld [vmem:[%s6694_s21 + $0x78] sm:$0xff]  ;;  %v3263_v51 = vld [vmem:[%s6704_s1 + $0x88] sm:$0xff] }
 0x92d   : > { %v2302_v1 = vmul.f32 1.442695, %v2299_v62  ;;  %v6148_v57 = vpack.c.bf16 %v5343_v56, %v5342_v52  ;;  %v3249_v52 = vld [vmem:[%s6704_s1 + $0x18] sm:$0xff] }
 0x92e   : > { %v2300_v2 = vmul.f32 1.442695, %v2298_v0  ;;  %v3265_v56 = vld [vmem:[%s6704_s1 + $0x98] sm:$0xff] }
 0x92f   : > { %v2063_v3 = vpop.permute.xlu1 %2062 }
 0x930   : > { %6523 = vpow2.f32 %v2300_v2  ;;  %v2132_v4 = vadd.f32 %v2131_v45, %v2063_v3  ;;  %v2137_v5 = vadd.f32 %v5961_v44, %v2063_v3 }
 0x931   : > { %6525 = vpow2.f32 %v2302_v1 }
 0x932   : > { %5973 = vmatpush3.msra.mxu0 %v2132_v4  ;;  %5978 = vmatpush3.msra.mxu1 %v2137_v5 }
 0x933   : > { %5982 = vmatprep.subr.mxu0 %v5325_v26  ;;  %6129 = vmatprep.subr.bf16.mxu1 %v6128_v33  ;;  %v2551_v45 = vpop.permute.xlu1 %2550 }
 0x93a   : > { %v6524_v6 = vpop.eup %6523 }
 0x93b   : > { %v2304_v7 = vsel %vm833_vm3, %v6524_v6, 0.0  ;;  %v6526_v8 = vpop.eup %6525 }
 0x93c   : > { %2305 = vadd.xlane.f32.xlu0 %v2304_v7  ;;  %v2307_v9 = vsel %vm833_vm3, %v6526_v8, 0.0 }
 0x940   : > { %2308 = vadd.xlane.f32.xlu0 %v2307_v9 }
 0x956   : > { %2633 = vrot.lane.b32.xlu0 %v6766_v22, %s6594_s17 }
 0x9c9   : > { %v2306_v10 = vpop.xlane.xlu0 %2305 }
 0x9ca   : > { %6527 = vrcp.f32 %v2306_v10 }
 0x9cd   : > { %v2309_v11 = vpop.xlane.xlu0 %2308 }
 0x9ce   : > { %6529 = vrcp.f32 %v2309_v11 }
 0x9d1   : > { %v2634_v43 = vpop.permute.xlu0 %2633 }
 0x9d4   : > { %v6528_v12 = vpop.eup %6527 }
 0x9d5   : > { %v2312_v14 = vmul.f32 %v6528_v12, %v6524_v6 }
 0x9d7   : > { %5975 = vmatmul.mubr.msk.f32.vlgmr.msra.gmra.mrb[16].mxu0 %vm833_vm3, %v2312_v14 }
 0x9d8   : > { %v6530_v17 = vpop.eup %6529  ;;  %5983 = vmatpush3.msra.mxu0 %v5325_v26 }
 0x9d9   : > { %v2313_v24 = vmul.f32 %v6530_v17, %v6526_v8  ;;  %6137 = vmatprep.subr.bf16.mxu0 %v6136_v30 }
 0x9db   : > { %5980 = vmatmul.mubr.msk.f32.vlgmr.msra.gmra.mrb[24].mxu1 %vm833_vm3, %v2313_v24 }
 0x9dc   : > { %5995 = vmatprep.mubr.msk.f32.mxu1 %vm585_vm1, %v6736_v13  ;;  %6131 = vmatpush3.bf16.msra.mxu1 %v6128_v33 }
 0x9dd   : > { %6133 = vmatprep.subr.bf16.mxu1 %v6132_v36 }
 0x9e0   : > { %6135 = vmatpush3.bf16.msra.mxu1 %v6132_v36  ;;  %v6987_v36 = vsub.s32 3, %v6753_v18 }
 0x9e1   : > { %6145 = vmatprep.subr.bf16.mxu1 %v6144_v53 }
 0x9e3   : > { %5996 = vmatmul.mubr.msk.f32.vlgmr.msra.gmra.mrb[26].mxu1 %vm585_vm1, %v6742_v15 }
 0x9e4   : > { %6017 = vmatprep.mubr.msk.f32.mxu1 %vm585_vm1, %v6736_v13  ;;  %6147 = vmatpush3.bf16.msra.mxu1 %v6144_v53  ;;  %v6152_v53 = vpack.c.bf16 %v3263_v51, %v3247_v50  ;;  %v3298_v50 = vld [vmem:[%s6704_s1 + $0x1a0] sm:$0xff]  ;;  %v3284_v51 = vld [vmem:[%s6704_s1 + $0x130] sm:$0xff] }
 0x9e5   : > { %6149 = vmatprep.subr.bf16.mxu1 %v6148_v57 }
 0x9e8   : > { %6151 = vmatpush3.bf16.msra.mxu1 %v6148_v57  ;;  %v3246_v57 = vld [vmem:[%s6704_s1] sm:$0xff] }
 0x9e9   : > { %6030 = vmatprep.subr.mxu1 %v6590_v16 }
 0x9eb   : > { %6018 = vmatmul.mubr.msk.f32.vlgmr.msra.gmra.mrb[28].mxu1 %vm585_vm1, %v6742_v15 }
 0x9ec   : > { %6032 = vmatprep.mubr.msk.f32.mxu1 %vm6591_vm2, %v6590_v16 }
 0xaaa   : > { %v2383_v37 = vpop.f32.mrb[16].mxu0 }
 0xaab   : > { %v5976_v40 = vpop.f32.mrb[17].mxu0  ;;  %5984 = vmatprep.mubr.msk.f32.mxu0 %vm833_vm3, %v2383_v37  ;;  %v3202_v37 = vrot.slane %v6759_v20, %v6987_v36 }
 0xaae   : > { %v2456_v42 = vpop.f32.mrb[24].mxu1 }
 0xaaf   : > { %v5981_v25 = vpop.f32.mrb[25].mxu1  ;;  %5985 = vmatmul.mubr.msk.f32.vlgmr.msra.gmra.mrb[10].mxu0 %vm833_vm3, %v2456_v42 }
 0xab0   : > { %6139 = vmatpush3.bf16.msra.mxu0 %v6136_v30  ;;  %6006 = vmatprep.mubr.msk.f32.mxu0 %vm585_vm1, %v6736_v13 }
 0xab1   : > { %6141 = vmatprep.subr.bf16.mxu0 %v6140_v41 }
 0xab4   : > { %6143 = vmatpush3.bf16.msra.mxu0 %v6140_v41 }
 0xab5   : > { %6020 = vmatprep.subr.mxu0 %v6590_v16 }
 0xab6   : > { %v5997_v22 = vpop.f32.mrb[26].mxu1 }
 0xab7   : > { %6007 = vmatmul.mubr.msk.f32.vlgmr.msra.gmra.mrb[18].mxu0 %vm585_vm1, %v6742_v15  ;;  %v2619_v23 = vpop.f32.mrb[27].mxu1  ;;  %v2625_v49 = vadd.f32 %v5997_v22, %v2551_v45 }
 0xab8   : > { %6022 = vmatprep.mubr.msk.f32.mxu0 %vm6591_vm2, %v6590_v16  ;;  %v2620_v47 = vadd.f32 %v2619_v23, %v2551_v45 }
 0xabe   : > { %v6019_v10 = vpop.f32.mrb[28].mxu1 }
 0xabf   : > { %v2785_v11 = vpop.f32.mrb[29].mxu1 }
 0xb8a   : > { %v6008_v44 = vpop.f32.mrb[18].mxu0 }
 0xb8b   : > { %v2702_v46 = vpop.f32.mrb[19].mxu0  ;;  %v2708_v48 = vadd.f32 %v6008_v44, %v2634_v43 }
 0xb8c   : > { %v2703_v27 = vadd.f32 %v2702_v46, %v2634_v43 }
 0xb8e   : > { %6021 = vmatpush3.xpose.msk.msra.mxu0 %vm833_vm3, %v2703_v27 }
 0xb8f   : > { %6025 = vmatprep.subr.mxu0 %v6590_v16 }
 0xb91   : > { %6023 = vmatmul.mubr.msk.f32.vlgmr.msra.gmra.mrb[20].mxu0 %vm833_vm3, %v2620_v47 }
 0xb92   : > { %6026 = vmatpush3.xpose.msk.msra.mxu0 %vm833_vm3, %v2708_v48  ;;  %6027 = vmatprep.mubr.msk.f32.mxu0 %vm6591_vm2, %v6590_v16 }
 0xb93   : > { %6035 = vmatprep.subr.mxu0 %v6590_v16 }
 0xb95   : > { %6028 = vmatmul.mubr.msk.f32.vlgmr.msra.gmra.mrb[22].mxu0 %vm833_vm3, %v2625_v49 }
 0xb96   : > { %6037 = vmatprep.mubr.msk.f32.mxu0 %vm6591_vm2, %v6590_v16 }
 0xc64   : > { %v2866_v58 = vpop.f32.mrb[20].mxu0 }
 0xc65   : > { %v6024_v59 = vpop.f32.mrb[21].mxu0  ;;  %v2946_v60 = vsel %vm833_vm3, %v2866_v58, -inf }
 0xc66   : > { %2947 = vmax.xlane.f32.xlu1 %v2946_v60  ;;  %v6160_v59 = vpack.c.bf16 %v3265_v56, %v3249_v52  ;;  %v3300_v52 = vld [vmem:[%s6704_s1 + $0x1b0] sm:$0xff] }
 0xc68   : > { %v2942_v61 = vpop.f32.mrb[22].mxu0 }
 0xc69   : > { %v6029_v62 = vpop.f32.mrb[23].mxu0  ;;  %v2949_v63 = vsel %vm833_vm3, %v2942_v61, -inf }
 0xc6a   : > { %2950 = vmax.xlane.f32.xlu0 %v2949_v63  ;;  %v3264_v62 = vld [vmem:[%s6704_s1 + $0x90] sm:$0xff] }
 0xcf3   : > { %v2948_v0 = vpop.xlane.xlu1 %2947 }
 0xcf4   : > { %v2952_v1 = vsub.f32 %v2866_v58, %v2948_v0  ;;  %v3262_v58 = vld [vmem:[%s6704_s1 + $0x80] sm:$0xff]  ;;  %v3279_v0 = vld [vmem:[%s6704_s1 + $0x108] sm:$0xff] }
 0xcf5   : > { %v6154_v60 = vpack.c.bf16 %v3262_v58, %v3246_v57  ;;  %v3255_v57 = vld [vmem:[%s6704_s1 + $0x48] sm:$0xff] }
 0xcf6   : > { %v2954_v2 = vmul.f32 1.442695, %v2952_v1  ;;  %v3295_v1 = vld [vmem:[%s6704_s1 + $0x188] sm:$0xff] }
 0xcf7   : > { %v2951_v3 = vpop.xlane.xlu0 %2950 }
 0xcf8   : > { %6531 = vpow2.f32 %v2954_v2  ;;  %v2953_v4 = vsub.f32 %v2942_v61, %v2951_v3  ;;  %v3248_v61 = vld [vmem:[%s6704_s1 + $0x10] sm:$0xff]  ;;  %v3281_v2 = vld [vmem:[%s6704_s1 + $0x118] sm:$0xff]  ;;  %v6156_v3 = vpack.c.bf16 %v3295_v1, %v3279_v0  ;;  %v3270_v1 = vld [vmem:[%s6704_s1 + $0xc0] sm:$0xff] }
 0xcf9   : > { %v6162_v63 = vpack.c.bf16 %v3264_v62, %v3248_v61  ;;  %v6182_v62 = vpack.c.bf16 %v3300_v52, %v3284_v51  ;;  %v4065_v51 = vld [vmem:[%s6709_s2 + $0x88] sm:$0xff]  ;;  %v4096_v52 = vld [vmem:[%s6709_s2 + $0x180] sm:$0xff] }
 0xcfa   : > { %v2956_v5 = vmul.f32 1.442695, %v2953_v4  ;;  %v3297_v4 = vld [vmem:[%s6704_s1 + $0x198] sm:$0xff] }
 0xcfc   : > { %6533 = vpow2.f32 %v2956_v5  ;;  %v3278_v5 = vld [vmem:[%s6704_s1 + $0x100] sm:$0xff] }
 0xd02   : > { %v6532_v6 = vpop.eup %6531 }
 0xd03   : > { %v2958_v7 = vsel %vm833_vm3, %v6532_v6, 0.0 }
 0xd04   : > { %2959 = vadd.xlane.f32.xlu0 %v2958_v7  ;;  %v6164_v7 = vpack.c.bf16 %v3297_v4, %v3281_v2  ;;  %v3256_v2 = vld [vmem:[%s6704_s1 + $0x50] sm:$0xff] }
 0xd06   : > { %v6534_v8 = vpop.eup %6533 }
 0xd07   : > { %v2961_v9 = vsel %vm833_vm3, %v6534_v8, 0.0 }
 0xd08   : > { %2962 = vadd.xlane.f32.xlu1 %v2961_v9  ;;  %v3280_v9 = vld [vmem:[%s6704_s1 + $0x110] sm:$0xff] }
 0xd1a   : > { %2716 = vrot.lane.b32.xlu0 %v6803_v55, %s6594_s17 }
 0xd91   : > { %v2960_v12 = vpop.xlane.xlu0 %2959 }
 0xd92   : > { %6535 = vrcp.f32 %v2960_v12  ;;  %v3251_v12 = vld [vmem:[%s6704_s1 + $0x28] sm:$0xff] }
 0xd95   : > { %v2963_v14 = vpop.xlane.xlu1 %2962  ;;  %v2717_v17 = vpop.permute.xlu0 %2716 }
 0xd96   : > { %6537 = vrcp.f32 %v2963_v14  ;;  %v2786_v24 = vadd.f32 %v2785_v11, %v2717_v17  ;;  %v2791_v26 = vadd.f32 %v6019_v10, %v2717_v17  ;;  %v3296_v10 = vld [vmem:[%s6704_s1 + $0x190] sm:$0xff]  ;;  %v3267_v14 = vld [vmem:[%s6704_s1 + $0xa8] sm:$0xff]  ;;  %v3253_v17 = vld [vmem:[%s6704_s1 + $0x38] sm:$0xff] }
 0xd97   : > { %v6166_v11 = vpack.c.bf16 %v3296_v10, %v3280_v9  ;;  %v3305_v9 = vld [vmem:[%s6704_s1 + $0x1d8] sm:$0xff] }
 0xd98   : > { %6031 = vmatpush3.msra.mxu1 %v2786_v24  ;;  %6036 = vmatpush3.msra.mxu0 %v2791_v26  ;;  %v6168_v24 = vpack.c.bf16 %v3267_v14, %v3251_v12  ;;  %v3269_v26 = vld [vmem:[%s6704_s1 + $0xb8] sm:$0xff]  ;;  %v3286_v12 = vld [vmem:[%s6704_s1 + $0x140] sm:$0xff] }
 0xd99   : > { %6040 = vmatprep.subr.mxu0 %v5352_v31  ;;  %6153 = vmatprep.subr.bf16.mxu1 %v6152_v53  ;;  %v3302_v14 = vld [vmem:[%s6704_s1 + $0x1c0] sm:$0xff] }
 0xd9c   : > { %v6536_v28 = vpop.eup %6535 }
 0xd9d   : > { %v2966_v29 = vmul.f32 %v6536_v28, %v6532_v6  ;;  %v3294_v6 = vld [vmem:[%s6704_s1 + $0x180] sm:$0xff]  ;;  %v6176_v28 = vpack.c.bf16 %v3269_v26, %v3253_v17  ;;  %v3288_v17 = vld [vmem:[%s6704_s1 + $0x150] sm:$0xff] }
 0xd9f   : > { %6033 = vmatmul.mubr.msk.f32.vlgmr.msra.gmra.mrb[30].mxu1 %vm833_vm3, %v2966_v29 }
 0xda0   : > { %v6538_v30 = vpop.eup %6537  ;;  %3464 = vmatprep.mubr.f32.mxu1 %v6590_v16  ;;  %6155 = vmatpush1.bf16.msra.mxu1 %v6154_v60  ;;  %v3257_v60 = vld [vmem:[%s6704_s1 + $0x58] sm:$0xff] }
 0xda1   : > { %v2967_v55 = vmul.f32 %v6538_v30, %v6534_v8  ;;  %v6158_v8 = vpack.c.bf16 %v3294_v6, %v3278_v5  ;;  %6157 = vmatprep.subr.bf16.mxu1 %v6156_v3  ;;  %v3272_v3 = vld [vmem:[%s6704_s1 + $0xd0] sm:$0xff]  ;;  %v3287_v6 = vld [vmem:[%s6704_s1 + $0x148] sm:$0xff] }
 0xda3   : > { %6038 = vmatmul.mubr.msk.f32.vlgmr.msra.gmra.mrb[24].mxu0 %vm833_vm3, %v2967_v55 }
 0xda4   : > { %6041 = vmatpush3.msra.mxu0 %v5352_v31  ;;  %6159 = vmatpush1.bf16.msra.mxu1 %v6158_v8  ;;  %v3289_v8 = vld [vmem:[%s6704_s1 + $0x158] sm:$0xff] }
 0xda5   : > { %6161 = vmatprep.subr.bf16.mxu0 %v6160_v59  ;;  %6169 = vmatprep.subr.bf16.mxu1 %v6168_v24  ;;  %v3271_v59 = vld [vmem:[%s6704_s1 + $0xc8] sm:$0xff]  ;;  %v3304_v24 = vld [vmem:[%s6704_s1 + $0x1d0] sm:$0xff] }
 0xda6   : > { %v6184_v4 = vpack.c.bf16 %v3271_v59, %v3255_v57  ;;  %v4049_v59 = vld [vmem:[%s6709_s2 + $0x8] sm:$0xff] }
 0xe72   : > { %v3037_v32 = vpop.f32.mrb[30].mxu1 }
 0xe73   : > { %v6034_v33 = vpop.f32.mrb[31].mxu1  ;;  %6042 = vmatprep.mubr.msk.f32.mxu0 %vm833_vm3, %v3037_v32 }
 0xe76   : > { %v3110_v34 = vpop.f32.mrb[24].mxu0 }
 0xe77   : > { %v6039_v35 = vpop.f32.mrb[25].mxu0  ;;  %6043 = vmatmul.mubr.msk.f32.vlgmr.msra.gmra.mrb[10].mxu0 %vm833_vm3, %v3110_v34  ;;  %v7026_v34 = vsub.s32 4, %v6753_v18 }
 0xe78   : > { %3541 = vmatprep.mubr.f32.mxu0 %v6590_v16  ;;  %6163 = vmatpush1.bf16.msra.mxu0 %v6162_v63  ;;  %v7029_v35 = vsub.s32 5, %v6753_v18  ;;  %v3254_v63 = vld [vmem:[%s6704_s1 + $0x40] sm:$0xff] }
 0xe79   : > { %6165 = vmatprep.subr.bf16.mxu0 %v6164_v7  ;;  %v3303_v7 = vld [vmem:[%s6704_s1 + $0x1c8] sm:$0xff]  ;;  %v6186_v10 = vpack.c.bf16 %v3270_v1, %v3254_v63  ;;  %v4066_v63 = vld [vmem:[%s6709_s2 + $0x90] sm:$0xff]  ;;  %v4067_v1 = vld [vmem:[%s6709_s2 + $0x98] sm:$0xff] }
 0xe7a   : > { %v6188_v26 = vpack.c.bf16 %v3303_v7, %v3287_v6  ;;  %v4050_v6 = vld [vmem:[%s6709_s2 + $0x10] sm:$0xff]  ;;  %v4051_v7 = vld [vmem:[%s6709_s2 + $0x18] sm:$0xff] }
 0xe7c   : > { %6167 = vmatpush1.bf16.msra.mxu0 %v6166_v11  ;;  %v6194_v11 = vpack.c.bf16 %v3272_v3, %v3256_v2  ;;  %v4098_v2 = vld [vmem:[%s6709_s2 + $0x190] sm:$0xff]  ;;  %v4099_v3 = vld [vmem:[%s6709_s2 + $0x198] sm:$0xff] }
 0xe7d   : > { %6177 = vmatprep.subr.bf16.mxu0 %v6176_v28  ;;  %v6196_v28 = vpack.c.bf16 %v3305_v9, %v3289_v8  ;;  %v6220_v8 = vpack.c.bf16 %v4067_v1, %v4066_v63  ;;  %v6252_v9 = vpack.c.bf16 %v4099_v3, %v4098_v2  ;;  %v4059_v63 = vld [vmem:[%s6709_s2 + $0x58] sm:$0xff]  ;;  %v4090_v3 = vld [vmem:[%s6709_s2 + $0x150] sm:$0xff] }
 0xf4a   : > { %v6044_v38 = vpop.f32.mrb[10].mxu0 }
 0xf4b   : > { %v3188_v39 = vpop.f32.mrb[11].mxu0  ;;  %v3204_v40 = vadd.f32 %v6044_v38, %v3202_v37 }
 0xf4c   : > { %v3203_v41 = vadd.f32 %v3202_v37, %v3188_v39  ;;  %v3237_v37 = vrot.slane %v6759_v20, %v7026_v34  ;;  %v3250_v39 = vld [vmem:[%s6704_s1 + $0x20] sm:$0xff] }
 0xf4d   : > { %v3206_v22 = vadd.f32 %v3204_v40, %v6742_v15  ;;  %v3243_v40 = vrot.slane %v6759_v20, %v7029_v35 }
 0xf4e   : > { %v3205_v42 = vadd.f32 %v3203_v41, %v6736_v13 }
 0xf4f   : > { %v3210_v23 = vsel %vm585_vm1, %v3206_v22, 0.0 }
 0xf50   : > { %v3207_v25 = vsel %vm585_vm1, %v3205_v42, 0.0 }
 0xf51   : > { %3208 = vadd.xlane.f32.xlu1 %v3207_v25  ;;  %v3252_v25 = vld [vmem:[%s6704_s1 + $0x30] sm:$0xff] }
 0xf55   : > { %3211 = vadd.xlane.f32.xlu1 %v3210_v23  ;;  %v3283_v23 = vld [vmem:[%s6704_s1 + $0x128] sm:$0xff] }
 0xfde   : > { %v3209_v43 = vpop.xlane.xlu1 %3208 }
 0xfdf   : > { %v3214_v44 = vmul.f32 0.03125, %v3209_v43 }
 0xfe1   : > { %v6995_v45 = vsub.f32 %v3205_v42, %v3214_v44  ;;  %v3266_v42 = vld [vmem:[%s6704_s1 + $0xa0] sm:$0xff]  ;;  %v3299_v44 = vld [vmem:[%s6704_s1 + $0x1a8] sm:$0xff] }
 0xfe2   : > { %v3212_v46 = vpop.xlane.xlu1 %3211  ;;  %v6172_v53 = vpack.c.bf16 %v3299_v44, %v3283_v23  ;;  %v3293_v23 = vld [vmem:[%s6704_s1 + $0x178] sm:$0xff] }
 0xfe3   : > { %v3215_v13 = vmul.f32 0.03125, %v3212_v46  ;;  %v3218_v27 = vmul.f32 %v6995_v45, %v6995_v45  ;;  %v3285_v46 = vld [vmem:[%s6704_s1 + $0x138] sm:$0xff] }
 0xfe5   : > { %v6999_v15 = vsub.f32 %v3206_v22, %v3215_v13  ;;  %v3220_v47 = vsel %vm585_vm1, %v3218_v27, 0.0  ;;  %v3268_v22 = vld [vmem:[%s6704_s1 + $0xb0] sm:$0xff]  ;;  %v3301_v13 = vld [vmem:[%s6704_s1 + $0x1b8] sm:$0xff] }
 0xfe6   : > { %3221 = vadd.xlane.f32.xlu1 %v3220_v47  ;;  %v6170_v47 = vpack.c.bf16 %v3266_v42, %v3250_v39  ;;  %v6178_v20 = vpack.c.bf16 %v3268_v22, %v3252_v25  ;;  %v6180_v56 = vpack.c.bf16 %v3301_v13, %v3285_v46  ;;  %v3260_v39 = vld [vmem:[%s6704_s1 + $0x70] sm:$0xff]  ;;  %v3291_v25 = vld [vmem:[%s6704_s1 + $0x168] sm:$0xff]  ;;  %v3290_v13 = vld [vmem:[%s6704_s1 + $0x160] sm:$0xff] }
 0xfe7   : > { %v3219_v48 = vmul.f32 %v6999_v15, %v6999_v15  ;;  %v3307_v22 = vld [vmem:[%s6704_s1 + $0x1e8] sm:$0xff] }
 0xfe9   : > { %v3223_v49 = vsel %vm585_vm1, %v3219_v48, 0.0  ;;  %v3282_v48 = vld [vmem:[%s6704_s1 + $0x120] sm:$0xff] }
 0xfea   : > { %3224 = vadd.xlane.f32.xlu1 %v3223_v49  ;;  %v6174_v61 = vpack.c.bf16 %v3298_v50, %v3282_v48  ;;  %v6204_v48 = vpack.c.bf16 %v3307_v22, %v3291_v25  ;;  %v4064_v50 = vld [vmem:[%s6709_s2 + $0x80] sm:$0xff]  ;;  %v4055_v25 = vld [vmem:[%s6709_s2 + $0x38] sm:$0xff] }
0x1073   : > { %v3222_v29 = vpop.xlane.xlu1 %3221 }
0x1074   : > { %v3226_v30 = vmul.f32 0.03125, %v3222_v29  ;;  %v3259_v29 = vld [vmem:[%s6704_s1 + $0x68] sm:$0xff] }
0x1076   : > { %v3228_v55 = vadd.f32 1e-05, %v3226_v30  ;;  %v3275_v30 = vld [vmem:[%s6704_s1 + $0xe8] sm:$0xff] }
0x1077   : > { %v3225_v31 = vpop.xlane.xlu1 %3224 }
0x1078   : > { %6539 = vrsqrt.f32 %v3228_v55  ;;  %v3227_v32 = vmul.f32 0.03125, %v3225_v31  ;;  %v3261_v55 = vld [vmem:[%s6704_s1 + $0x78] sm:$0xff] }
0x1079   : > { %v3277_v31 = vld [vmem:[%s6704_s1 + $0xf8] sm:$0xff] }
0x107a   : > { %v3229_v33 = vadd.f32 1e-05, %v3227_v32  ;;  %v6190_v32 = vpack.c.bf16 %v3302_v14, %v3286_v12  ;;  %v6208_v42 = vpack.c.bf16 %v3277_v31, %v3261_v55  ;;  %v4068_v12 = vld [vmem:[%s6709_s2 + $0xa0] sm:$0xff]  ;;  %v4069_v14 = vld [vmem:[%s6709_s2 + $0xa8] sm:$0xff] }
0x107b   : > { %v6224_v55 = vpack.c.bf16 %v4069_v14, %v4068_v12 }
0x107c   : > { %6541 = vrsqrt.f32 %v3229_v33  ;;  %v6198_v33 = vpack.c.bf16 %v3304_v24, %v3288_v17  ;;  %v4100_v17 = vld [vmem:[%s6709_s2 + $0x1a0] sm:$0xff]  ;;  %v4101_v24 = vld [vmem:[%s6709_s2 + $0x1a8] sm:$0xff] }
0x107d   : > { %v6256_v31 = vpack.c.bf16 %v4101_v24, %v4100_v17  ;;  %v4061_v17 = vld [vmem:[%s6709_s2 + $0x68] sm:$0xff]  ;;  %v4092_v24 = vld [vmem:[%s6709_s2 + $0x160] sm:$0xff] }
0x1082   : > { %v6540_v38 = vpop.eup %6539 }
0x1083   : > { %v3232_v41 = vmul.f32 %v6540_v38, %v6995_v45  ;;  %v3274_v38 = vld [vmem:[%s6704_s1 + $0xe0] sm:$0xff] }
0x1085   : > { %v3238_v43 = vmul.f32 %v3237_v37, %v3232_v41  ;;  %v6200_v41 = vpack.c.bf16 %v3275_v30, %v3259_v29  ;;  %v4052_v29 = vld [vmem:[%s6709_s2 + $0x20] sm:$0xff]  ;;  %v4053_v30 = vld [vmem:[%s6709_s2 + $0x28] sm:$0xff] }
0x1086   : > { %v6542_v27 = vpop.eup %6541 }
0x1087   : > { %v7045_v49 = vadd.f32 %v3243_v40, %v3238_v43  ;;  %v3233_v45 = vmul.f32 %v6542_v27, %v6999_v15  ;;  %v3273_v15 = vld [vmem:[%s6704_s1 + $0xd8] sm:$0xff]  ;;  %v3306_v27 = vld [vmem:[%s6704_s1 + $0x1e0] sm:$0xff] }
0x1088   : > { %v6192_v5 = vpack.c.bf16 %v3273_v15, %v3257_v60  ;;  %v3309_v43 = vld [vmem:[%s6704_s1 + $0x1f8] sm:$0xff]  ;;  %v6216_v60 = vpack.c.bf16 %v4065_v51, %v4064_v50  ;;  %v4057_v50 = vld [vmem:[%s6709_s2 + $0x48] sm:$0xff] }
0x1089   : > { %v3239_v58 = vmul.f32 %v3237_v37, %v3233_v45  ;;  %5355 = vmatmul.mubr.msk.f32.vlgmr.msra.gmra.mrb[32].mxu1 %vm585_vm1, %v7045_v49  ;;  %5357 = vmatmul.mubr.msk.f32.vlgmr.msra.gmra.mrb[26].mxu0 %vm585_vm1, %v7045_v49  ;;  %v3258_v37 = vld [vmem:[%s6704_s1 + $0x60] sm:$0xff]  ;;  %v6212_v45 = vpack.c.bf16 %v3309_v43, %v3293_v23  ;;  %v4086_v43 = vld [vmem:[%s6709_s2 + $0x130] sm:$0xff] }
0x108a   : > { %6171 = vmatpush1.bf16.msra.mxu1 %v6170_v47  ;;  %6179 = vmatpush1.bf16.msra.mxu0 %v6178_v20  ;;  %v6202_v44 = vpack.c.bf16 %v3274_v38, %v3258_v37  ;;  %v3292_v47 = vld [vmem:[%s6704_s1 + $0x170] sm:$0xff] }
0x108b   : > { %v7060_v0 = vadd.f32 %v3243_v40, %v3239_v58  ;;  %3470 = vmatprep.mubr.f32.mxu1 %v6590_v16  ;;  %3547 = vmatprep.mubr.f32.mxu0 %v6590_v16  ;;  %v3276_v40 = vld [vmem:[%s6704_s1 + $0xf0] sm:$0xff]  ;;  %v4048_v58 = vld [vmem:[%s6709_s2] sm:$0xff] }
0x108c   : > { %6173 = vmatprep.subr.bf16.mxu1 %v6172_v53  ;;  %6181 = vmatprep.subr.bf16.mxu0 %v6180_v56  ;;  %v6210_v46 = vpack.c.bf16 %v3276_v40, %v3260_v39  ;;  %v3308_v20 = vld [vmem:[%s6704_s1 + $0x1f0] sm:$0xff]  ;;  %v4097_v53 = vld [vmem:[%s6709_s2 + $0x188] sm:$0xff]  ;;  %v6206_v56 = vpack.c.bf16 %v3306_v27, %v3290_v13  ;;  %v4103_v39 = vld [vmem:[%s6709_s2 + $0x1b8] sm:$0xff]  ;;  %v6226_v40 = vpack.c.bf16 %v4053_v30, %v4052_v29 }
0x108d   : > { %5356 = vmatmul.mubr.msk.f32.gmra.mrb[34].mxu1 %vm585_vm1, %v7060_v0  ;;  %5358 = vmatmul.mubr.msk.f32.gmra.mrb[28].mxu0 %vm585_vm1, %v7060_v0  ;;  %v6214_v57 = vpack.c.bf16 %v3308_v20, %v3292_v47  ;;  %v6248_v15 = vpack.c.bf16 %v4097_v53, %v4096_v52  ;;  %v4070_v37 = vld [vmem:[%s6709_s2 + $0xb0] sm:$0xff]  ;;  %v4073_v13 = vld [vmem:[%s6709_s2 + $0xc8] sm:$0xff]  ;;  %v4104_v27 = vld [vmem:[%s6709_s2 + $0x1c0] sm:$0xff] }
0x108e   : > { %6175 = vmatpush1.bf16.msra.mxu1 %v6174_v61  ;;  %6183 = vmatpush1.bf16.msra.mxu0 %v6182_v62  ;;  %v4080_v61 = vld [vmem:[%s6709_s2 + $0x100] sm:$0xff]  ;;  %v4081_v62 = vld [vmem:[%s6709_s2 + $0x108] sm:$0xff]  ;;  %v4102_v38 = vld [vmem:[%s6709_s2 + $0x1b0] sm:$0xff] }
0x108f   : > { %3618 = vmatprep.mubr.f32.mxu1 %v6590_v16  ;;  %3695 = vmatprep.mubr.f32.mxu0 %v6590_v16  ;;  %v6260_v23 = vpack.c.bf16 %v4103_v39, %v4102_v38  ;;  %v4105_v47 = vld [vmem:[%s6709_s2 + $0x1c8] sm:$0xff]  ;;  %v4088_v53 = vld [vmem:[%s6709_s2 + $0x140] sm:$0xff]  ;;  %v4078_v30 = vld [vmem:[%s6709_s2 + $0xf0] sm:$0xff] }
0x1090   : > { %6185 = vmatprep.subr.bf16.mxu1 %v6184_v4  ;;  %6193 = vmatprep.subr.bf16.mxu0 %v6192_v5  ;;  %v6218_v4 = vpack.c.bf16 %v4049_v59, %v4048_v58  ;;  %v6250_v5 = vpack.c.bf16 %v4081_v62, %v4080_v61  ;;  %v6264_v52 = vpack.c.bf16 %v4105_v47, %v4104_v27  ;;  %v4075_v58 = vld [vmem:[%s6709_s2 + $0xd8] sm:$0xff]  ;;  %v4106_v59 = vld [vmem:[%s6709_s2 + $0x1d0] sm:$0xff] }
0x1091   : > { %5359 = vmatmul.mubr.msk.f32.vlgmr.msra.gmra.mrb[36].mxu1 %vm585_vm1, %v7045_v49  ;;  %5361 = vmatmul.mubr.msk.f32.vlgmr.msra.gmra.mrb[30].mxu0 %vm585_vm1, %v7045_v49  ;;  %v4058_v62 = vld [vmem:[%s6709_s2 + $0x50] sm:$0xff] }
0x1092   : > { %6187 = vmatpush1.bf16.msra.mxu1 %v6186_v10  ;;  %6195 = vmatpush1.bf16.msra.mxu0 %v6194_v11  ;;  %v4082_v10 = vld [vmem:[%s6709_s2 + $0x110] sm:$0xff]  ;;  %v4083_v11 = vld [vmem:[%s6709_s2 + $0x118] sm:$0xff] }
0x1093   : > { %3624 = vmatprep.mubr.f32.mxu1 %v6590_v16  ;;  %3701 = vmatprep.mubr.f32.mxu0 %v6590_v16 }
0x1094   : > { %6189 = vmatprep.subr.bf16.mxu1 %v6188_v26  ;;  %6197 = vmatprep.subr.bf16.mxu0 %v6196_v28  ;;  %v6222_v26 = vpack.c.bf16 %v4051_v7, %v4050_v6  ;;  %v6254_v28 = vpack.c.bf16 %v4083_v11, %v4082_v10  ;;  %v4077_v6 = vld [vmem:[%s6709_s2 + $0xe8] sm:$0xff]  ;;  %v4108_v7 = vld [vmem:[%s6709_s2 + $0x1e0] sm:$0xff] }
0x1095   : > { %5360 = vmatmul.mubr.msk.f32.gmra.mrb[38].mxu1 %vm585_vm1, %v7060_v0  ;;  %5362 = vmatmul.mubr.msk.f32.gmra.mrb[32].mxu0 %vm585_vm1, %v7060_v0  ;;  %v4060_v11 = vld [vmem:[%s6709_s2 + $0x60] sm:$0xff] }
0x1096   : > { %6191 = vmatpush1.bf16.msra.mxu1 %v6190_v32  ;;  %6199 = vmatpush1.bf16.msra.mxu0 %v6198_v33  ;;  %v4084_v32 = vld [vmem:[%s6709_s2 + $0x120] sm:$0xff]  ;;  %v4085_v33 = vld [vmem:[%s6709_s2 + $0x128] sm:$0xff] }
0x1097   : > { %3772 = vmatprep.mubr.f32.mxu1 %v6590_v16  ;;  %3849 = vmatprep.mubr.f32.mxu0 %v6590_v16 }
0x1098   : > { %6201 = vmatprep.subr.bf16.mxu1 %v6200_v41  ;;  %6209 = vmatprep.subr.bf16.mxu0 %v6208_v42  ;;  %v6258_v41 = vpack.c.bf16 %v4085_v33, %v4084_v32  ;;  %v4054_v42 = vld [vmem:[%s6709_s2 + $0x30] sm:$0xff]  ;;  %v4111_v33 = vld [vmem:[%s6709_s2 + $0x1f8] sm:$0xff] }
0x1099   : > { %5363 = vmatmul.mubr.msk.f32.vlgmr.msra.gmra.mrb[40].mxu1 %vm585_vm1, %v7045_v49  ;;  %5365 = vmatmul.mubr.msk.f32.vlgmr.msra.gmra.mrb[34].mxu0 %vm585_vm1, %v7045_v49  ;;  %v6230_v20 = vpack.c.bf16 %v4055_v25, %v4054_v42  ;;  %v4128_v25 = vld [vmem:[%s6709_s2 + $0x280] sm:$0xff] }
0x109a   : > { %6203 = vmatpush1.bf16.msra.mxu1 %v6202_v44  ;;  %6211 = vmatpush1.bf16.msra.mxu0 %v6210_v46  ;;  %v4087_v44 = vld [vmem:[%s6709_s2 + $0x138] sm:$0xff]  ;;  %v4072_v46 = vld [vmem:[%s6709_s2 + $0xc0] sm:$0xff] }
0x109b   : > { %3778 = vmatprep.mubr.f32.mxu1 %v6590_v16  ;;  %3855 = vmatprep.mubr.f32.mxu0 %v6590_v16  ;;  %v6232_v51 = vpack.c.bf16 %v4073_v13, %v4072_v46  ;;  %v7200_v13 = vld [vmem:[%s6719_s23] sm:$0xff] }
0x109c   : > { %6205 = vmatprep.subr.bf16.mxu1 %v6204_v48  ;;  %6213 = vmatprep.subr.bf16.mxu0 %v6212_v45  ;;  %v6262_v48 = vpack.c.bf16 %v4087_v44, %v4086_v43  ;;  %v4056_v45 = vld [vmem:[%s6709_s2 + $0x40] sm:$0xff]  ;;  %v4161_v44 = vld [vmem:[%s6709_s2 + $0x388] sm:$0xff]  ;;  %v3317_v27 = vrot.slane %v7200_v13, %v6762_v21  ;;  %v3325_v47 = vrot.slane %v7200_v13, %v6799_v54 }
0x109d   : > { %5364 = vmatmul.mubr.msk.f32.gmra.mrb[42].mxu1 %vm585_vm1, %v7060_v0  ;;  %5366 = vmatmul.mubr.msk.f32.gmra.mrb[36].mxu0 %vm585_vm1, %v7060_v0 }
0x109e   : > { %6207 = vmatpush1.bf16.msra.mxu1 %v6206_v56  ;;  %6215 = vmatpush1.bf16.msra.mxu0 %v6214_v57  ;;  %v4089_v56 = vld [vmem:[%s6709_s2 + $0x148] sm:$0xff]  ;;  %v4074_v57 = vld [vmem:[%s6709_s2 + $0xd0] sm:$0xff] }
0x109f   : > { %3926 = vmatprep.mubr.f32.mxu1 %v6590_v16  ;;  %4003 = vmatprep.mubr.f32.mxu0 %v6590_v16  ;;  %v6266_v61 = vpack.c.bf16 %v4089_v56, %v4088_v53  ;;  %v6236_v1 = vpack.c.bf16 %v4075_v58, %v4074_v57  ;;  %v4144_v53 = vld [vmem:[%s6709_s2 + $0x300] sm:$0xff]  ;;  %v4145_v56 = vld [vmem:[%s6709_s2 + $0x308] sm:$0xff]  ;;  %v4130_v57 = vld [vmem:[%s6709_s2 + $0x290] sm:$0xff] }
0x10a0   : > { %6217 = vmatprep.subr.bf16.mxu1 %v6216_v60  ;;  %6249 = vmatprep.subr.bf16.mxu0 %v6248_v15  ;;  %v4107_v60 = vld [vmem:[%s6709_s2 + $0x1d8] sm:$0xff]  ;;  %v6234_v15 = vpack.c.bf16 %v4057_v50, %v4056_v45  ;;  %v4112_v45 = vld [vmem:[%s6709_s2 + $0x200] sm:$0xff]  ;;  %v4113_v50 = vld [vmem:[%s6709_s2 + $0x208] sm:$0xff] }
0x10a1   : > { %5367 = vmatmul.mubr.msk.f32.vlgmr.msra.gmra.mrb[44].mxu1 %vm585_vm1, %v7045_v49  ;;  %5369 = vmatmul.mubr.msk.f32.vlgmr.msra.gmra.mrb[38].mxu0 %vm585_vm1, %v7045_v49  ;;  %v6268_v2 = vpack.c.bf16 %v4107_v60, %v4106_v59 }
0x10a2   : > { %3932 = vmatprep.mubr.f32.mxu1 %v6590_v16  ;;  %4009 = vmatprep.mubr.f32.mxu0 %v6590_v16  ;;  %v4071_v16 = vld [vmem:[%s6709_s2 + $0xb8] sm:$0xff] }
0x10a3   : > { %6219 = vmatpush3.bf16.msra.mxu1 %v6218_v4  ;;  %6251 = vmatpush3.bf16.msra.mxu0 %v6250_v5  ;;  %v6228_v22 = vpack.c.bf16 %v4071_v16, %v4070_v37  ;;  %v4091_v4 = vld [vmem:[%s6709_s2 + $0x158] sm:$0xff]  ;;  %v4076_v5 = vld [vmem:[%s6709_s2 + $0xe0] sm:$0xff]  ;;  %v4062_v37 = vld [vmem:[%s6709_s2 + $0x70] sm:$0xff] }
0x10a4   : > { %6221 = vmatprep.subr.bf16.mxu1 %v6220_v8  ;;  %6253 = vmatprep.subr.bf16.mxu0 %v6252_v9  ;;  %v4109_v8 = vld [vmem:[%s6709_s2 + $0x1e8] sm:$0xff]  ;;  %v6238_v9 = vpack.c.bf16 %v4059_v63, %v4058_v62  ;;  %v6270_v10 = vpack.c.bf16 %v4091_v4, %v4090_v3  ;;  %v6240_v12 = vpack.c.bf16 %v4077_v6, %v4076_v5  ;;  %v4063_v16 = vld [vmem:[%s6709_s2 + $0x78] sm:$0xff]  ;;  %v4162_v62 = vld [vmem:[%s6709_s2 + $0x390] sm:$0xff]  ;;  %v7219_v3 = vsub.s32 7, %v6753_v18 }
0x10a5   : > { %5368 = vmatmul.mubr.msk.f32.gmra.mrb[46].mxu1 %vm585_vm1, %v7060_v0  ;;  %5370 = vmatmul.mubr.msk.f32.gmra.mrb[40].mxu0 %vm585_vm1, %v7060_v0  ;;  %v6272_v14 = vpack.c.bf16 %v4109_v8, %v4108_v7  ;;  %v6246_v39 = vpack.c.bf16 %v4063_v16, %v4062_v37  ;;  %v4163_v63 = vld [vmem:[%s6709_s2 + $0x398] sm:$0xff]  ;;  %v6282_v4 = vpack.c.bf16 %v4113_v50, %v4112_v45  ;;  %v4114_v7 = vld [vmem:[%s6709_s2 + $0x210] sm:$0xff] }
0x10a6   : > { %v6314_v5 = vpack.c.bf16 %v4145_v56, %v4144_v53  ;;  %v7223_v6 = vrot.slane %v7200_v13, %v7029_v35  ;;  %v4149_v53 = vld [vmem:[%s6709_s2 + $0x328] sm:$0xff]  ;;  %v4134_v56 = vld [vmem:[%s6709_s2 + $0x2b0] sm:$0xff] }
0x10a7   : > { %6223 = vmatpush3.bf16.msra.mxu1 %v6222_v26  ;;  %6255 = vmatpush3.bf16.msra.mxu0 %v6254_v28  ;;  %v4093_v26 = vld [vmem:[%s6709_s2 + $0x168] sm:$0xff]  ;;  %v6242_v28 = vpack.c.bf16 %v4061_v17, %v4060_v11  ;;  %v4115_v17 = vld [vmem:[%s6709_s2 + $0x218] sm:$0xff] }
0x10a8   : > { %6225 = vmatprep.subr.bf16.mxu1 %v6224_v55  ;;  %6257 = vmatprep.subr.bf16.mxu0 %v6256_v31  ;;  %v6274_v29 = vpack.c.bf16 %v4093_v26, %v4092_v24  ;;  %v4079_v55 = vld [vmem:[%s6709_s2 + $0xf8] sm:$0xff]  ;;  %v4110_v31 = vld [vmem:[%s6709_s2 + $0x1f0] sm:$0xff] }
0x10a9   : > { %v6244_v32 = vpack.c.bf16 %v4079_v55, %v4078_v30  ;;  %v6276_v38 = vpack.c.bf16 %v4111_v33, %v4110_v31  ;;  %v4146_v24 = vld [vmem:[%s6709_s2 + $0x310] sm:$0xff]  ;;  %v4132_v33 = vld [vmem:[%s6709_s2 + $0x2a0] sm:$0xff] }
0x10ab   : > { %6227 = vmatpush3.bf16.msra.mxu1 %v6226_v40  ;;  %6259 = vmatpush3.bf16.msra.mxu0 %v6258_v41  ;;  %v4094_v40 = vld [vmem:[%s6709_s2 + $0x170] sm:$0xff]  ;;  %v4095_v41 = vld [vmem:[%s6709_s2 + $0x178] sm:$0xff] }
0x10ac   : > { %6229 = vmatprep.subr.bf16.mxu1 %v6228_v22  ;;  %6261 = vmatprep.subr.bf16.mxu0 %v6260_v23  ;;  %v6278_v42 = vpack.c.bf16 %v4095_v41, %v4094_v40  ;;  %v4129_v22 = vld [vmem:[%s6709_s2 + $0x288] sm:$0xff]  ;;  %v4160_v23 = vld [vmem:[%s6709_s2 + $0x380] sm:$0xff] }
0x10ad   : > { %v6280_v43 = vpack.c.bf16 %v4129_v22, %v4128_v25  ;;  %v6312_v46 = vpack.c.bf16 %v4161_v44, %v4160_v23  ;;  %v4164_v40 = vld [vmem:[%s6709_s2 + $0x3a0] sm:$0xff]  ;;  %v4165_v41 = vld [vmem:[%s6709_s2 + $0x3a8] sm:$0xff]  ;;  %v6286_v44 = vpack.c.bf16 %v4115_v17, %v4114_v7  ;;  %v4119_v7 = vld [vmem:[%s6709_s2 + $0x238] sm:$0xff] }
0x10ae   : > { %v4136_v17 = vld [vmem:[%s6709_s2 + $0x2c0] sm:$0xff] }
0x10af   : > { %6231 = vmatpush3.bf16.msra.mxu1 %v6230_v20  ;;  %6263 = vmatpush3.bf16.msra.mxu0 %v6262_v48  ;;  %v3321_v20 = vrot.slane %v7200_v13, %v6756_v19  ;;  %v3329_v48 = vrot.slane %v7200_v13, %v6987_v36 }
0x10b0   : > { %6233 = vmatprep.subr.bf16.mxu1 %v6232_v51  ;;  %6265 = vmatprep.subr.bf16.mxu0 %v6264_v52 }
0x10b3   : > { %6235 = vmatpush3.bf16.msra.mxu1 %v6234_v15  ;;  %6267 = vmatpush3.bf16.msra.mxu0 %v6266_v61  ;;  %v4131_v61 = vld [vmem:[%s6709_s2 + $0x298] sm:$0xff] }
0x10b4   : > { %6237 = vmatprep.subr.bf16.mxu1 %v6236_v1  ;;  %6269 = vmatprep.subr.bf16.mxu0 %v6268_v2 }
0x10b7   : > { %6239 = vmatpush3.bf16.msra.mxu1 %v6238_v9  ;;  %6271 = vmatpush3.bf16.msra.mxu0 %v6270_v10 }
0x10b8   : > { %6241 = vmatprep.subr.bf16.mxu1 %v6240_v12  ;;  %6273 = vmatprep.subr.bf16.mxu0 %v6272_v14  ;;  %v6284_v12 = vpack.c.bf16 %v4131_v61, %v4130_v57  ;;  %v6316_v14 = vpack.c.bf16 %v4163_v63, %v4162_v62 }
0x10bb   : > { %6243 = vmatpush3.bf16.msra.mxu1 %v6242_v28  ;;  %6275 = vmatpush3.bf16.msra.mxu0 %v6274_v29 }
0x10bc   : > { %6245 = vmatprep.subr.bf16.mxu1 %v6244_v32  ;;  %6277 = vmatprep.subr.bf16.mxu0 %v6276_v38  ;;  %v4147_v32 = vld [vmem:[%s6709_s2 + $0x318] sm:$0xff]  ;;  %v7232_v38 = vrot.slane %v7200_v13, %v7219_v3 }
0x10bf   : > { %6247 = vmatpush3.bf16.msra.mxu1 %v6246_v39  ;;  %6279 = vmatpush3.bf16.msra.mxu0 %v6278_v42  ;;  %v4133_v39 = vld [vmem:[%s6709_s2 + $0x2a8] sm:$0xff]  ;;  %v4116_v42 = vld [vmem:[%s6709_s2 + $0x220] sm:$0xff] }
0x10c0   : > { %6281 = vmatprep.subr.bf16.mxu1 %v6280_v43  ;;  %6313 = vmatprep.subr.bf16.mxu0 %v6312_v46  ;;  %v6318_v46 = vpack.c.bf16 %v4147_v32, %v4146_v24  ;;  %v4137_v24 = vld [vmem:[%s6709_s2 + $0x2c8] sm:$0xff]  ;;  %v4120_v32 = vld [vmem:[%s6709_s2 + $0x240] sm:$0xff] }
0x115c   : > { %v3466_v51 = vpop.f32.mrb[32].mxu1  ;;  %v3543_v52 = vpop.f32.mrb[26].mxu0 }
0x115d   : > { %v3467_v58 = vadd.f32 %v3466_v51, %v3317_v27  ;;  %v3544_v59 = vadd.f32 %v3543_v52, %v3325_v47  ;;  %v3468_v60 = vpop.f32.mrb[33].mxu1  ;;  %v3545_v15 = vpop.f32.mrb[27].mxu0  ;;  %v6288_v51 = vpack.c.bf16 %v4133_v39, %v4132_v33  ;;  %v6320_v52 = vpack.c.bf16 %v4165_v41, %v4164_v40  ;;  %v4121_v33 = vld [vmem:[%s6709_s2 + $0x248] sm:$0xff]  ;;  %v4152_v41 = vld [vmem:[%s6709_s2 + $0x340] sm:$0xff] }
0x115e   : > { %v3469_v1 = vadd.f32 %v3468_v60, %v3321_v20  ;;  %v3546_v2 = vadd.f32 %v3545_v15, %v3329_v48  ;;  %v4166_v60 = vld [vmem:[%s6709_s2 + $0x3b0] sm:$0xff]  ;;  %v4167_v15 = vld [vmem:[%s6709_s2 + $0x3b8] sm:$0xff]  ;;  %v6296_v39 = vpack.c.bf16 %v4137_v24, %v4136_v17 }
0x115f   : > { %v4016_v26 = vmax.f32 %v3467_v58, 0.0  ;;  %v4018_v28 = vmax.f32 %v3544_v59, 0.0  ;;  %v4135_v59 = vld [vmem:[%s6709_s2 + $0x2b8] sm:$0xff] }
0x1160   : > { %v4017_v8 = vmax.f32 %v3469_v1, 0.0  ;;  %v4019_v9 = vmax.f32 %v3546_v2, 0.0  ;;  %v3472_v10 = vpop.f32.mrb[34].mxu1  ;;  %v3549_v11 = vpop.f32.mrb[28].mxu0 }
0x1161   : > { %v3473_v29 = vadd.f32 %v3472_v10, %v3317_v27  ;;  %v3550_v30 = vadd.f32 %v3549_v11, %v3325_v47  ;;  %v3474_v55 = vpop.f32.mrb[35].mxu1  ;;  %v3551_v31 = vpop.f32.mrb[29].mxu0  ;;  %v4117_v27 = vld [vmem:[%s6709_s2 + $0x228] sm:$0xff]  ;;  %v4148_v47 = vld [vmem:[%s6709_s2 + $0x320] sm:$0xff]  ;;  %v6292_v10 = vpack.c.bf16 %v4135_v59, %v4134_v56  ;;  %v6324_v11 = vpack.c.bf16 %v4167_v15, %v4166_v60  ;;  %v4154_v59 = vld [vmem:[%s6709_s2 + $0x350] sm:$0xff] }
0x1162   : > { %v3475_v37 = vadd.f32 %v3474_v55, %v3321_v20  ;;  %v3552_v16 = vadd.f32 %v3551_v31, %v3329_v48  ;;  %4372 = vmatprep.mubr.f32.mxu1 %v4017_v8  ;;  %4447 = vmatprep.mubr.f32.mxu0 %v4019_v9  ;;  %v6290_v2 = vpack.c.bf16 %v4117_v27, %v4116_v42  ;;  %v4153_v42 = vld [vmem:[%s6709_s2 + $0x348] sm:$0xff]  ;;  %v7284_v27 = vsub.s32 6, %v6753_v18  ;;  %v4155_v60 = vld [vmem:[%s6709_s2 + $0x358] sm:$0xff]  ;;  %v4140_v15 = vld [vmem:[%s6709_s2 + $0x2e0] sm:$0xff] }
0x1163   : > { %4373 = vmatmul.mubr.f32.vlgmr.msra.gmra.mrb[48].mxu1 %v4016_v26  ;;  %4448 = vmatmul.mubr.f32.vlgmr.msra.gmra.mrb[42].mxu0 %v4018_v28  ;;  %v4032_v20 = vmax.f32 %v3473_v29, 0.0  ;;  %v4034_v48 = vmax.f32 %v3550_v30, 0.0  ;;  %v4168_v26 = vld [vmem:[%s6709_s2 + $0x3c0] sm:$0xff]  ;;  %v4169_v28 = vld [vmem:[%s6709_s2 + $0x3c8] sm:$0xff] }
0x1164   : > { %v4033_v25 = vmax.f32 %v3475_v37, 0.0  ;;  %v4035_v22 = vmax.f32 %v3552_v16, 0.0  ;;  %6283 = vmatpush3.bf16.msra.mxu1 %v6282_v4  ;;  %6315 = vmatpush3.bf16.msra.mxu0 %v6314_v5  ;;  %v7238_v23 = vpop.f32.mrb[36].mxu1  ;;  %v7240_v43 = vpop.f32.mrb[30].mxu0  ;;  %v6322_v4 = vpack.c.bf16 %v4149_v53, %v4148_v47  ;;  %v4118_v5 = vld [vmem:[%s6709_s2 + $0x230] sm:$0xff]  ;;  %v6328_v40 = vpack.c.bf16 %v4169_v28, %v4168_v26  ;;  %v7287_v47 = vld [vmem:[%s6719_s23 + $0x8] sm:$0xff] }
0x1165   : > { %v3622_v45 = vpop.f32.mrb[37].mxu1  ;;  %v3699_v50 = vpop.f32.mrb[31].mxu0  ;;  %6285 = vmatprep.subr.bf16.mxu1 %v6284_v12  ;;  %6317 = vmatprep.subr.bf16.mxu0 %v6316_v14  ;;  %v4150_v12 = vld [vmem:[%s6709_s2 + $0x330] sm:$0xff]  ;;  %v4151_v14 = vld [vmem:[%s6709_s2 + $0x338] sm:$0xff]  ;;  %v6294_v55 = vpack.c.bf16 %v4119_v7, %v4118_v5  ;;  %v3373_v56 = vrot.slane %v7287_v47, %v7284_v27 }
0x1166   : > { %v3623_v57 = vadd.f32 %v3622_v45, %v7223_v6  ;;  %v3700_v58 = vadd.f32 %v3699_v50, %v7232_v38  ;;  %4377 = vmatprep.mubr.f32.mxu1 %v4033_v25  ;;  %4452 = vmatprep.mubr.f32.mxu0 %v4035_v22  ;;  %v6326_v31 = vpack.c.bf16 %v4151_v14, %v4150_v12  ;;  %v4138_v25 = vld [vmem:[%s6709_s2 + $0x2d0] sm:$0xff]  ;;  %v4139_v22 = vld [vmem:[%s6709_s2 + $0x2d8] sm:$0xff]  ;;  %v4124_v12 = vld [vmem:[%s6709_s2 + $0x260] sm:$0xff] }
0x1167   : > { %4378 = vmatmul.mubr.f32.gmra.mrb[50].mxu1 %v4032_v20  ;;  %4453 = vmatmul.mubr.f32.gmra.mrb[44].mxu0 %v4034_v48  ;;  %v6298_v45 = vpack.c.bf16 %v4121_v33, %v4120_v32  ;;  %v6330_v50 = vpack.c.bf16 %v4153_v42, %v4152_v41  ;;  %v4125_v14 = vld [vmem:[%s6709_s2 + $0x268] sm:$0xff]  ;;  %v4142_v33 = vld [vmem:[%s6709_s2 + $0x2f0] sm:$0xff]  ;;  %v4175_v42 = vld [vmem:[%s6709_s2 + $0x3f8] sm:$0xff] }
0x1168   : > { %v4021_v61 = vmax.f32 %v3623_v57, 0.0  ;;  %v4023_v62 = vmax.f32 %v3700_v58, 0.0  ;;  %6287 = vmatpush3.bf16.msra.mxu1 %v6286_v44  ;;  %6319 = vmatpush3.bf16.msra.mxu0 %v6318_v46  ;;  %v7251_v63 = vpop.f32.mrb[38].mxu1  ;;  %v7253_v1 = vpop.f32.mrb[32].mxu0  ;;  %v4170_v44 = vld [vmem:[%s6709_s2 + $0x3d0] sm:$0xff]  ;;  %v4171_v46 = vld [vmem:[%s6709_s2 + $0x3d8] sm:$0xff]  ;;  %v6300_v57 = vpack.c.bf16 %v4139_v22, %v4138_v25  ;;  %v3333_v25 = vrot.slane %v7200_v13, %v7026_v34 }
0x1169   : > { %v7257_v8 = vpop.f32.mrb[39].mxu1  ;;  %v7259_v9 = vpop.f32.mrb[33].mxu0  ;;  %6289 = vmatprep.subr.bf16.mxu1 %v6288_v51  ;;  %6321 = vmatprep.subr.bf16.mxu0 %v6320_v52  ;;  %v4122_v51 = vld [vmem:[%s6709_s2 + $0x250] sm:$0xff]  ;;  %v4123_v52 = vld [vmem:[%s6709_s2 + $0x258] sm:$0xff]  ;;  %v6332_v58 = vpack.c.bf16 %v4171_v46, %v4170_v44  ;;  %v4157_v32 = vld [vmem:[%s6709_s2 + $0x368] sm:$0xff]  ;;  %v3341_v22 = vrot.slane %v7200_v13, %v7284_v27 }
0x116a   : > { %4522 = vmatprep.mubr.f32.mxu1 %v4021_v61  ;;  %4597 = vmatprep.mubr.f32.mxu0 %v4023_v62  ;;  %v3377_v61 = vrot.slane %v7287_v47, %v7219_v3  ;;  %v4141_v62 = vld [vmem:[%s6709_s2 + $0x2e8] sm:$0xff]  ;;  %v4174_v41 = vld [vmem:[%s6709_s2 + $0x3f0] sm:$0xff] }
0x116b   : > { %v6304_v28 = vpack.c.bf16 %v4141_v62, %v4140_v15  ;;  %v6340_v15 = vpack.c.bf16 %v4175_v42, %v4174_v41  ;;  %v4159_v62 = vld [vmem:[%s6709_s2 + $0x378] sm:$0xff]  ;;  %v4226_v42 = vld [vmem:[%s6709_s2 + $0x590] sm:$0xff] }
0x116c   : > { %6291 = vmatpush3.bf16.msra.mxu1 %v6290_v2  ;;  %6323 = vmatpush3.bf16.msra.mxu0 %v6322_v4  ;;  %v7267_v29 = vpop.f32.mrb[40].mxu1  ;;  %v7269_v30 = vpop.f32.mrb[34].mxu0  ;;  %v4172_v2 = vld [vmem:[%s6709_s2 + $0x3e0] sm:$0xff]  ;;  %v4173_v4 = vld [vmem:[%s6709_s2 + $0x3e8] sm:$0xff]  ;;  %v4195_v41 = vld [vmem:[%s6709_s2 + $0x498] sm:$0xff] }
0x116d   : > { %v7273_v37 = vpop.f32.mrb[41].mxu1  ;;  %v7275_v16 = vpop.f32.mrb[35].mxu0  ;;  %6293 = vmatprep.subr.bf16.mxu1 %v6292_v10  ;;  %6325 = vmatprep.subr.bf16.mxu0 %v6324_v11  ;;  %v6302_v10 = vpack.c.bf16 %v4123_v52, %v4122_v51  ;;  %v6334_v11 = vpack.c.bf16 %v4155_v60, %v4154_v59  ;;  %v4126_v51 = vld [vmem:[%s6709_s2 + $0x270] sm:$0xff]  ;;  %v4127_v52 = vld [vmem:[%s6709_s2 + $0x278] sm:$0xff] }
0x1170   : > { %6295 = vmatpush3.bf16.msra.mxu1 %v6294_v55  ;;  %6327 = vmatpush3.bf16.msra.mxu0 %v6326_v31  ;;  %v7289_v20 = vpop.f32.mrb[42].mxu1  ;;  %v7291_v48 = vpop.f32.mrb[36].mxu0  ;;  %v6336_v55 = vpack.c.bf16 %v4173_v4, %v4172_v2  ;;  %v4156_v31 = vld [vmem:[%s6709_s2 + $0x360] sm:$0xff]  ;;  %v4193_v4 = vld [vmem:[%s6709_s2 + $0x488] sm:$0xff] }
0x1171   : > { %v7295_v18 = vpop.f32.mrb[43].mxu1  ;;  %v7297_v53 = vpop.f32.mrb[37].mxu0  ;;  %6297 = vmatprep.subr.bf16.mxu1 %v6296_v39  ;;  %6329 = vmatprep.subr.bf16.mxu0 %v6328_v40  ;;  %v4143_v40 = vld [vmem:[%s6709_s2 + $0x2f8] sm:$0xff]  ;;  %v4192_v2 = vld [vmem:[%s6709_s2 + $0x480] sm:$0xff] }
0x1172   : > { %v6308_v60 = vpack.c.bf16 %v4143_v40, %v4142_v33  ;;  %v3621_v33 = vadd.f32 %v7238_v23, %v3333_v25  ;;  %v7365_v23 = vrot.slane %v7287_v47, %v6987_v36  ;;  %v4178_v36 = vld [vmem:[%s6709_s2 + $0x410] sm:$0xff] }
0x1174   : > { %6299 = vmatpush3.bf16.msra.mxu1 %v6298_v45  ;;  %6331 = vmatpush3.bf16.msra.mxu0 %v6330_v50  ;;  %v7309_v5 = vpop.f32.mrb[44].mxu1  ;;  %v4005_v7 = vpop.f32.mrb[38].mxu0  ;;  %v6306_v45 = vpack.c.bf16 %v4125_v14, %v4124_v12  ;;  %v6338_v50 = vpack.c.bf16 %v4157_v32, %v4156_v31  ;;  %v4177_v12 = vld [vmem:[%s6709_s2 + $0x408] sm:$0xff]  ;;  %v6310_v14 = vpack.c.bf16 %v4127_v52, %v4126_v51  ;;  %v4194_v32 = vld [vmem:[%s6709_s2 + $0x490] sm:$0xff] }
0x1175   : > { %v7313_v17 = vadd.f32 %v4005_v7, %v3373_v56  ;;  %v7315_v24 = vpop.f32.mrb[45].mxu1  ;;  %v4007_v26 = vpop.f32.mrb[39].mxu0  ;;  %6301 = vmatprep.subr.bf16.mxu1 %v6300_v57  ;;  %6333 = vmatprep.subr.bf16.mxu0 %v6332_v58  ;;  %v4158_v57 = vld [vmem:[%s6709_s2 + $0x370] sm:$0xff]  ;;  %v4209_v31 = vld [vmem:[%s6709_s2 + $0x508] sm:$0xff]  ;;  %v7361_v51 = vrot.slane %v7287_v47, %v6756_v19  ;;  %v3704_v19 = vadd.f32 %v7253_v1, %v3341_v22 }
0x1176   : > { %v7320_v39 = vadd.f32 %v4007_v26, %v3377_v61  ;;  %v6342_v26 = vpack.c.bf16 %v4159_v62, %v4158_v57  ;;  %v4020_v57 = vmax.f32 %v3621_v33, 0.0  ;;  %v4197_v1 = vld [vmem:[%s6709_s2 + $0x4a8] sm:$0xff] }
0x1177   : > { %v3777_v62 = vadd.f32 %v7273_v37, %v7361_v51  ;;  %v4038_v37 = vmax.f32 %v3704_v19, 0.0  ;;  %v4213_v33 = vld [vmem:[%s6709_s2 + $0x528] sm:$0xff]  ;;  %v4232_v19 = vld [vmem:[%s6709_s2 + $0x5c0] sm:$0xff] }
0x1178   : > { %6303 = vmatpush3.bf16.msra.mxu1 %v6302_v10  ;;  %6335 = vmatpush3.bf16.msra.mxu0 %v6334_v11  ;;  %v7329_v44 = vpop.f32.mrb[46].mxu1  ;;  %v4011_v46 = vpop.f32.mrb[40].mxu0  ;;  %v4224_v10 = vld [vmem:[%s6709_s2 + $0x580] sm:$0xff]  ;;  %v4225_v11 = vld [vmem:[%s6709_s2 + $0x588] sm:$0xff] }
0x1179   : > { %v7334_v58 = vadd.f32 %v4011_v46, %v3373_v56  ;;  %v7336_v13 = vpop.f32.mrb[47].mxu1  ;;  %v4013_v59 = vpop.f32.mrb[41].mxu0  ;;  %6305 = vmatprep.subr.bf16.mxu1 %v6304_v28  ;;  %6337 = vmatprep.subr.bf16.mxu0 %v6336_v55  ;;  %v4176_v56 = vld [vmem:[%s6709_s2 + $0x400] sm:$0xff]  ;;  %v6344_v28 = vpack.c.bf16 %v4193_v4, %v4192_v2  ;;  %v6376_v40 = vpack.c.bf16 %v4225_v11, %v4224_v10  ;;  %v4227_v46 = vld [vmem:[%s6709_s2 + $0x598] sm:$0xff]  ;;  %v4210_v4 = vld [vmem:[%s6709_s2 + $0x510] sm:$0xff] }
0x117a   : > { %v7341_v7 = vadd.f32 %v4013_v59, %v3377_v61  ;;  %v4208_v55 = vld [vmem:[%s6709_s2 + $0x500] sm:$0xff]  ;;  %v3698_v61 = vadd.f32 %v7240_v43, %v3341_v22  ;;  %v6346_v43 = vpack.c.bf16 %v4177_v12, %v4176_v56  ;;  %v4179_v59 = vld [vmem:[%s6709_s2 + $0x418] sm:$0xff]  ;;  %v3854_v2 = vadd.f32 %v7275_v16, %v7365_v23  ;;  %v4229_v22 = vld [vmem:[%s6709_s2 + $0x5a8] sm:$0xff] }
0x117b   : > { %v6378_v52 = vpack.c.bf16 %v4209_v31, %v4208_v55  ;;  %v4211_v10 = vld [vmem:[%s6709_s2 + $0x518] sm:$0xff]  ;;  %v6350_v16 = vpack.c.bf16 %v4179_v59, %v4178_v36  ;;  %v4180_v12 = vld [vmem:[%s6709_s2 + $0x420] sm:$0xff]  ;;  %v4233_v36 = vld [vmem:[%s6709_s2 + $0x5c8] sm:$0xff] }
0x117c   : > { %6307 = vmatpush3.bf16.msra.mxu1 %v6306_v45  ;;  %6339 = vmatpush3.bf16.msra.mxu0 %v6338_v50  ;;  %v3629_v45 = vadd.f32 %v7257_v8, %v7223_v6  ;;  %v3706_v50 = vadd.f32 %v7259_v9, %v7232_v38  ;;  %v6348_v6 = vpack.c.bf16 %v4195_v41, %v4194_v32  ;;  %v4022_v38 = vmax.f32 %v3698_v61, 0.0  ;;  %v4212_v32 = vld [vmem:[%s6709_s2 + $0x520] sm:$0xff]  ;;  %v4198_v61 = vld [vmem:[%s6709_s2 + $0x4b0] sm:$0xff] }
0x117d   : > { %6309 = vmatprep.subr.bf16.mxu1 %v6308_v60  ;;  %6341 = vmatprep.subr.bf16.mxu0 %v6340_v15  ;;  %v6380_v8 = vpack.c.bf16 %v4227_v46, %v4226_v42  ;;  %v3627_v9 = vadd.f32 %v7251_v63, %v3333_v25  ;;  %v4196_v63 = vld [vmem:[%s6709_s2 + $0x4a0] sm:$0xff]  ;;  %v6382_v56 = vpack.c.bf16 %v4211_v10, %v4210_v4  ;;  %v4230_v41 = vld [vmem:[%s6709_s2 + $0x5b0] sm:$0xff]  ;;  %v4231_v42 = vld [vmem:[%s6709_s2 + $0x5b8] sm:$0xff] }
0x117e   : > { %v4037_v60 = vmax.f32 %v3629_v45, 0.0  ;;  %v4039_v15 = vmax.f32 %v3706_v50, 0.0  ;;  %v4228_v25 = vld [vmem:[%s6709_s2 + $0x5a0] sm:$0xff]  ;;  %v6352_v55 = vpack.c.bf16 %v4197_v1, %v4196_v63  ;;  %v6386_v45 = vpack.c.bf16 %v4213_v33, %v4212_v32  ;;  %v4182_v50 = vld [vmem:[%s6709_s2 + $0x430] sm:$0xff]  ;;  %v4217_v63 = vld [vmem:[%s6709_s2 + $0x548] sm:$0xff] }
0x117f   : > { %v4036_v11 = vmax.f32 %v3627_v9, 0.0  ;;  %v6384_v31 = vpack.c.bf16 %v4229_v22, %v4228_v25  ;;  %v4201_v9 = vld [vmem:[%s6709_s2 + $0x4c8] sm:$0xff]  ;;  %v6392_v4 = vpack.c.bf16 %v4233_v36, %v4232_v19  ;;  %v4216_v10 = vld [vmem:[%s6709_s2 + $0x540] sm:$0xff]  ;;  %v4202_v1 = vld [vmem:[%s6709_s2 + $0x4d0] sm:$0xff] }
0x1180   : > { %6311 = vmatpush3.bf16.msra.mxu1 %v6310_v14  ;;  %6343 = vmatpush3.bf16.msra.mxu0 %v6342_v26  ;;  %v4181_v14 = vld [vmem:[%s6709_s2 + $0x428] sm:$0xff]  ;;  %v4025_v26 = vmax.f32 %v3777_v62, 0.0  ;;  %v4203_v25 = vld [vmem:[%s6709_s2 + $0x4d8] sm:$0xff]  ;;  %v4234_v22 = vld [vmem:[%s6709_s2 + $0x5d0] sm:$0xff] }
0x1181   : > { %6345 = vmatprep.subr.bf16.mxu1 %v6344_v28  ;;  %6377 = vmatprep.subr.bf16.mxu0 %v6376_v40  ;;  %v4027_v28 = vmax.f32 %v3854_v2, 0.0  ;;  %v4199_v40 = vld [vmem:[%s6709_s2 + $0x4b8] sm:$0xff]  ;;  %v6354_v46 = vpack.c.bf16 %v4181_v14, %v4180_v12  ;;  %v4185_v62 = vld [vmem:[%s6709_s2 + $0x448] sm:$0xff]  ;;  %v6364_v14 = vpack.c.bf16 %v4203_v25, %v4202_v1  ;;  %v4236_v33 = vld [vmem:[%s6709_s2 + $0x5e0] sm:$0xff] }
0x1182   : > { %v4187_v12 = vld [vmem:[%s6709_s2 + $0x458] sm:$0xff]  ;;  %v4205_v32 = vld [vmem:[%s6709_s2 + $0x4e8] sm:$0xff]  ;;  %v4288_v1 = vld [vmem:[%s6709_s2 + $0x780] sm:$0xff] }
0x1183   : > { %4523 = vmatmul.mubr.f32.vlgmr.msra.gmra.mrb[52].mxu1 %v4020_v57  ;;  %4598 = vmatmul.mubr.f32.vlgmr.msra.gmra.mrb[46].mxu0 %v4022_v38  ;;  %v4215_v57 = vld [vmem:[%s6709_s2 + $0x538] sm:$0xff]  ;;  %v4200_v38 = vld [vmem:[%s6709_s2 + $0x4c0] sm:$0xff]  ;;  %v4289_v25 = vld [vmem:[%s6709_s2 + $0x788] sm:$0xff] }
0x1184   : > { %4527 = vmatprep.mubr.f32.mxu1 %v4037_v60  ;;  %4602 = vmatprep.mubr.f32.mxu0 %v4039_v15  ;;  %v4184_v15 = vld [vmem:[%s6709_s2 + $0x440] sm:$0xff]  ;;  %v6360_v2 = vpack.c.bf16 %v4201_v9, %v4200_v38  ;;  %v4239_v38 = vld [vmem:[%s6709_s2 + $0x5f8] sm:$0xff]  ;;  %v3349_v9 = vrot.slane %v7287_v47, %v6762_v21 }
0x1185   : > { %6347 = vmatpush3.bf16.msra.mxu1 %v6346_v43  ;;  %6379 = vmatpush3.bf16.msra.mxu0 %v6378_v52  ;;  %v4183_v43 = vld [vmem:[%s6709_s2 + $0x438] sm:$0xff]  ;;  %v6356_v52 = vpack.c.bf16 %v4199_v40, %v4198_v61  ;;  %v4237_v61 = vld [vmem:[%s6709_s2 + $0x5e8] sm:$0xff] }
0x1186   : > { %6349 = vmatprep.subr.bf16.mxu1 %v6348_v6  ;;  %6381 = vmatprep.subr.bf16.mxu0 %v6380_v8  ;;  %v6388_v6 = vpack.c.bf16 %v4231_v42, %v4230_v41  ;;  %v4214_v8 = vld [vmem:[%s6709_s2 + $0x530] sm:$0xff]  ;;  %v6358_v59 = vpack.c.bf16 %v4183_v43, %v4182_v50  ;;  %v4188_v42 = vld [vmem:[%s6709_s2 + $0x460] sm:$0xff]  ;;  %v6400_v50 = vpack.c.bf16 %v4237_v61, %v4236_v33  ;;  %v4223_v21 = vld [vmem:[%s6709_s2 + $0x578] sm:$0xff] }
0x1187   : > { %4528 = vmatmul.mubr.f32.gmra.mrb[54].mxu1 %v4036_v11  ;;  %4603 = vmatmul.mubr.f32.gmra.mrb[48].mxu0 %v4038_v37  ;;  %v6390_v60 = vpack.c.bf16 %v4215_v57, %v4214_v8  ;;  %v4235_v11 = vld [vmem:[%s6709_s2 + $0x5d8] sm:$0xff]  ;;  %v6362_v37 = vpack.c.bf16 %v4185_v62, %v4184_v15  ;;  %v4220_v43 = vld [vmem:[%s6709_s2 + $0x560] sm:$0xff]  ;;  %v4238_v57 = vld [vmem:[%s6709_s2 + $0x5f0] sm:$0xff]  ;;  %v3357_v62 = vrot.slane %v7287_v47, %v6799_v54 }
0x1188   : > { %4672 = vmatprep.mubr.f32.mxu1 %v4025_v26  ;;  %4747 = vmatprep.mubr.f32.mxu0 %v4027_v28  ;;  %v6396_v26 = vpack.c.bf16 %v4235_v11, %v4234_v22  ;;  %v4218_v28 = vld [vmem:[%s6709_s2 + $0x550] sm:$0xff]  ;;  %v4207_v8 = vld [vmem:[%s6709_s2 + $0x4f8] sm:$0xff]  ;;  %v3860_v33 = vadd.f32 %v7297_v53, %v7365_v23  ;;  %v7447_v61 = vrot.slane %v7287_v47, %v7029_v35 }
0x1189   : > { %6351 = vmatpush3.bf16.msra.mxu1 %v6350_v16  ;;  %6383 = vmatpush3.bf16.msra.mxu0 %v6382_v56  ;;  %v6394_v16 = vpack.c.bf16 %v4217_v63, %v4216_v10  ;;  %v4186_v56 = vld [vmem:[%s6709_s2 + $0x450] sm:$0xff]  ;;  %v4256_v10 = vld [vmem:[%s6709_s2 + $0x680] sm:$0xff]  ;;  %v4257_v63 = vld [vmem:[%s6709_s2 + $0x688] sm:$0xff]  ;;  %v3781_v53 = vadd.f32 %v7289_v20, %v3349_v9  ;;  %v3858_v23 = vadd.f32 %v7291_v48, %v3357_v62 }
0x118a   : > { %6353 = vmatprep.subr.bf16.mxu1 %v6352_v55  ;;  %6385 = vmatprep.subr.bf16.mxu0 %v6384_v31  ;;  %v4219_v55 = vld [vmem:[%s6709_s2 + $0x558] sm:$0xff]  ;;  %v4204_v31 = vld [vmem:[%s6709_s2 + $0x4e0] sm:$0xff]  ;;  %v6366_v40 = vpack.c.bf16 %v4187_v12, %v4186_v56  ;;  %v4222_v15 = vld [vmem:[%s6709_s2 + $0x570] sm:$0xff]  ;;  %v6408_v54 = vpack.c.bf16 %v4257_v63, %v4256_v10  ;;  %v3775_v12 = vadd.f32 %v7267_v29, %v3349_v9 }
0x118b   : > { %v6398_v41 = vpack.c.bf16 %v4219_v55, %v4218_v28  ;;  %v6406_v11 = vpack.c.bf16 %v4223_v21, %v4222_v15  ;;  %v4272_v56 = vld [vmem:[%s6709_s2 + $0x700] sm:$0xff]  ;;  %v4273_v28 = vld [vmem:[%s6709_s2 + $0x708] sm:$0xff]  ;;  %v4258_v55 = vld [vmem:[%s6709_s2 + $0x690] sm:$0xff]  ;;  %v4040_v9 = vmax.f32 %v3781_v53, 0.0 }
0x118c   : > { %v4290_v29 = vld [vmem:[%s6709_s2 + $0x790] sm:$0xff]  ;;  %v4261_v20 = vld [vmem:[%s6709_s2 + $0x6a8] sm:$0xff]  ;;  %v4292_v48 = vld [vmem:[%s6709_s2 + $0x7a0] sm:$0xff] }
0x118d   : > { %6355 = vmatpush3.bf16.msra.mxu1 %v6354_v46  ;;  %6387 = vmatpush3.bf16.msra.mxu0 %v6386_v45  ;;  %v4189_v46 = vld [vmem:[%s6709_s2 + $0x468] sm:$0xff]  ;;  %v6368_v45 = vpack.c.bf16 %v4205_v32, %v4204_v31  ;;  %v4259_v31 = vld [vmem:[%s6709_s2 + $0x698] sm:$0xff]  ;;  %v3783_v32 = vadd.f32 %v7295_v18, %v7361_v51  ;;  %v4024_v18 = vmax.f32 %v3775_v12, 0.0  ;;  %v4242_v35 = vld [vmem:[%s6709_s2 + $0x610] sm:$0xff] }
0x118e   : > { %6357 = vmatprep.subr.bf16.mxu1 %v6356_v52  ;;  %6389 = vmatprep.subr.bf16.mxu0 %v6388_v6  ;;  %v4221_v52 = vld [vmem:[%s6709_s2 + $0x568] sm:$0xff]  ;;  %v4206_v6 = vld [vmem:[%s6709_s2 + $0x4f0] sm:$0xff]  ;;  %v6370_v19 = vpack.c.bf16 %v4189_v46, %v4188_v42  ;;  %v6412_v42 = vpack.c.bf16 %v4259_v31, %v4258_v55  ;;  %v4243_v46 = vld [vmem:[%s6709_s2 + $0x618] sm:$0xff] }
0x118f   : > { %v6402_v36 = vpack.c.bf16 %v4221_v52, %v4220_v43  ;;  %v3931_v43 = vadd.f32 %v7315_v24, %v7447_v61  ;;  %v6414_v24 = vpack.c.bf16 %v4243_v46, %v4242_v35  ;;  %v4276_v21 = vld [vmem:[%s6709_s2 + $0x720] sm:$0xff]  ;;  %v4277_v10 = vld [vmem:[%s6709_s2 + $0x728] sm:$0xff]  ;;  %v4262_v63 = vld [vmem:[%s6709_s2 + $0x6b0] sm:$0xff] }
0x1190   : > { %v4278_v12 = vld [vmem:[%s6709_s2 + $0x730] sm:$0xff]  ;;  %v4296_v55 = vld [vmem:[%s6709_s2 + $0x7c0] sm:$0xff]  ;;  %v4297_v31 = vld [vmem:[%s6709_s2 + $0x7c8] sm:$0xff] }
0x1191   : > { %6359 = vmatpush3.bf16.msra.mxu1 %v6358_v59  ;;  %6391 = vmatpush3.bf16.msra.mxu0 %v6390_v60  ;;  %v4190_v59 = vld [vmem:[%s6709_s2 + $0x470] sm:$0xff]  ;;  %v4191_v60 = vld [vmem:[%s6709_s2 + $0x478] sm:$0xff]  ;;  %v4029_v15 = vmax.f32 %v3931_v43, 0.0 }
0x1192   : > { %6361 = vmatprep.subr.bf16.mxu1 %v6360_v2  ;;  %6393 = vmatprep.subr.bf16.mxu0 %v6392_v4  ;;  %v6372_v2 = vpack.c.bf16 %v4207_v8, %v4206_v6  ;;  %v6404_v4 = vpack.c.bf16 %v4239_v38, %v4238_v57  ;;  %v6374_v22 = vpack.c.bf16 %v4191_v60, %v4190_v59  ;;  %v4274_v6 = vld [vmem:[%s6709_s2 + $0x710] sm:$0xff]  ;;  %v4275_v8 = vld [vmem:[%s6709_s2 + $0x718] sm:$0xff]  ;;  %v4260_v57 = vld [vmem:[%s6709_s2 + $0x6a0] sm:$0xff] }
0x1193   : > { %v4293_v38 = vld [vmem:[%s6709_s2 + $0x7a8] sm:$0xff]  ;;  %v4244_v59 = vld [vmem:[%s6709_s2 + $0x620] sm:$0xff]  ;;  %v4267_v53 = vld [vmem:[%s6709_s2 + $0x6d8] sm:$0xff] }
0x1194   : > { %v4245_v60 = vld [vmem:[%s6709_s2 + $0x628] sm:$0xff]  ;;  %v4299_v35 = vld [vmem:[%s6709_s2 + $0x7d8] sm:$0xff] }
0x1195   : > { %6363 = vmatpush3.bf16.msra.mxu1 %v6362_v37  ;;  %6395 = vmatpush3.bf16.msra.mxu0 %v6394_v16  ;;  %v4240_v37 = vld [vmem:[%s6709_s2 + $0x600] sm:$0xff]  ;;  %v4241_v16 = vld [vmem:[%s6709_s2 + $0x608] sm:$0xff]  ;;  %v4251_v43 = vld [vmem:[%s6709_s2 + $0x658] sm:$0xff] }
0x1196   : > { %6365 = vmatprep.subr.bf16.mxu1 %v6364_v14  ;;  %6397 = vmatprep.subr.bf16.mxu0 %v6396_v26  ;;  %v3852_v14 = vadd.f32 %v7269_v30, %v3357_v62  ;;  %v6440_v26 = vpack.c.bf16 %v4289_v25, %v4288_v1  ;;  %v4291_v30 = vld [vmem:[%s6709_s2 + $0x798] sm:$0xff]  ;;  %v4031_v62 = vmax.f32 %v7320_v39, 0.0  ;;  %v4294_v25 = vld [vmem:[%s6709_s2 + $0x7b0] sm:$0xff]  ;;  %v6418_v39 = vpack.c.bf16 %v4245_v60, %v4244_v59  ;;  %v4253_v59 = vld [vmem:[%s6709_s2 + $0x668] sm:$0xff] }
0x1197   : > { %v6444_v52 = vpack.c.bf16 %v4291_v30, %v4290_v29  ;;  %v4263_v1 = vld [vmem:[%s6709_s2 + $0x6b8] sm:$0xff]  ;;  %v4248_v29 = vld [vmem:[%s6709_s2 + $0x640] sm:$0xff]  ;;  %v4249_v30 = vld [vmem:[%s6709_s2 + $0x648] sm:$0xff] }
0x1198   : > { %v4026_v51 = vmax.f32 %v3852_v14, 0.0  ;;  %v4279_v14 = vld [vmem:[%s6709_s2 + $0x738] sm:$0xff]  ;;  %v6426_v46 = vpack.c.bf16 %v4249_v30, %v4248_v29  ;;  %v5371_v29 = vld [vmem:[%s6714_s3 + $0x8] ss:$0 sm:$0xff] }
0x1199   : > { %6367 = vmatpush3.bf16.msra.mxu1 %v6366_v40  ;;  %6399 = vmatpush3.bf16.msra.mxu0 %v6398_v41  ;;  %v6410_v40 = vpack.c.bf16 %v4241_v16, %v4240_v37  ;;  %v6442_v41 = vpack.c.bf16 %v4273_v28, %v4272_v56  ;;  %v4247_v37 = vld [vmem:[%s6709_s2 + $0x638] sm:$0xff]  ;;  %v6420_v16 = vpack.c.bf16 %v4263_v1, %v4262_v63  ;;  %v4265_v28 = vld [vmem:[%s6709_s2 + $0x6c8] sm:$0xff] }
0x119a   : > { %6369 = vmatprep.subr.bf16.mxu1 %v6368_v45  ;;  %6401 = vmatprep.subr.bf16.mxu0 %v6400_v50  ;;  %v4041_v45 = vmax.f32 %v3783_v32, 0.0  ;;  %v4043_v50 = vmax.f32 %v3860_v33, 0.0  ;;  %v6454_v33 = vpack.c.bf16 %v4279_v14, %v4278_v12  ;;  %v4303_v63 = vld [vmem:[%s6709_s2 + $0x7f8] sm:$0xff] }
0x119d   : > { %6371 = vmatpush3.bf16.msra.mxu1 %v6370_v19  ;;  %6403 = vmatpush3.bf16.msra.mxu0 %v6402_v36  ;;  %v4042_v19 = vmax.f32 %v3858_v23, 0.0  ;;  %v6446_v36 = vpack.c.bf16 %v4275_v8, %v4274_v6  ;;  %v4298_v23 = vld [vmem:[%s6709_s2 + $0x7d0] sm:$0xff] }
0x119e   : > { %6373 = vmatprep.subr.bf16.mxu1 %v6372_v2  ;;  %6405 = vmatprep.subr.bf16.mxu0 %v6404_v4  ;;  %v6416_v2 = vpack.c.bf16 %v4261_v20, %v4260_v57  ;;  %v6448_v4 = vpack.c.bf16 %v4293_v38, %v4292_v48  ;;  %v6460_v6 = vpack.c.bf16 %v4299_v35, %v4298_v23  ;;  %v4282_v8 = vld [vmem:[%s6709_s2 + $0x750] sm:$0xff]  ;;  %v4283_v57 = vld [vmem:[%s6709_s2 + $0x758] sm:$0xff]  ;;  %v4268_v20 = vld [vmem:[%s6709_s2 + $0x6e0] sm:$0xff] }
0x119f   : > { %v4269_v48 = vld [vmem:[%s6709_s2 + $0x6e8] sm:$0xff]  ;;  %v4300_v38 = vld [vmem:[%s6709_s2 + $0x7e0] sm:$0xff] }
0x11a0   : > { %v6432_v60 = vpack.c.bf16 %v4269_v48, %v4268_v20 }
0x11a1   : > { %6375 = vmatpush3.bf16.msra.mxu1 %v6374_v22  ;;  %6407 = vmatpush3.bf16.msra.mxu0 %v6406_v11  ;;  %v4295_v22 = vld [vmem:[%s6709_s2 + $0x7b8] sm:$0xff]  ;;  %v6450_v11 = vpack.c.bf16 %v4277_v10, %v4276_v21  ;;  %v4302_v10 = vld [vmem:[%s6709_s2 + $0x7f0] sm:$0xff] }
0x11a2   : > { %6409 = vmatprep.subr.bf16.mxu1 %v6408_v54  ;;  %6441 = vmatprep.subr.bf16.mxu0 %v6440_v26  ;;  %v4246_v54 = vld [vmem:[%s6709_s2 + $0x630] sm:$0xff]  ;;  %v6452_v56 = vpack.c.bf16 %v4295_v22, %v4294_v25  ;;  %v4264_v26 = vld [vmem:[%s6709_s2 + $0x6c0] sm:$0xff]  ;;  %v4271_v21 = vld [vmem:[%s6709_s2 + $0x6f8] sm:$0xff] }
0x11a3   : > { %v6422_v32 = vpack.c.bf16 %v4247_v37, %v4246_v54  ;;  %v4254_v22 = vld [vmem:[%s6709_s2 + $0x670] sm:$0xff]  ;;  %v6468_v54 = vpack.c.bf16 %v4303_v63, %v4302_v10  ;;  %v4255_v37 = vld [vmem:[%s6709_s2 + $0x678] sm:$0xff] }
0x11a4   : > { %4673 = vmatmul.mubr.f32.vlgmr.msra.gmra.mrb[56].mxu1 %v4024_v18  ;;  %4748 = vmatmul.mubr.f32.vlgmr.msra.gmra.mrb[50].mxu0 %v4026_v51  ;;  %v4281_v18 = vld [vmem:[%s6709_s2 + $0x748] sm:$0xff]  ;;  %v4266_v51 = vld [vmem:[%s6709_s2 + $0x6d0] sm:$0xff]  ;;  %v6438_v12 = vpack.c.bf16 %v4255_v37, %v4254_v22 }
0x11a5   : > { %4677 = vmatprep.mubr.f32.mxu1 %v4041_v45  ;;  %4752 = vmatprep.mubr.f32.mxu0 %v4043_v50  ;;  %v4250_v50 = vld [vmem:[%s6709_s2 + $0x650] sm:$0xff] }
0x11a6   : > { %6411 = vmatpush3.bf16.msra.mxu1 %v6410_v40  ;;  %6443 = vmatpush3.bf16.msra.mxu0 %v6442_v41  ;;  %v6424_v40 = vpack.c.bf16 %v4265_v28, %v4264_v26  ;;  %v6456_v41 = vpack.c.bf16 %v4297_v31, %v4296_v55  ;;  %v3937_v28 = vadd.f32 %v7336_v13, %v7447_v61 }
0x11a7   : > { %6413 = vmatprep.subr.bf16.mxu1 %v6412_v42  ;;  %6445 = vmatprep.subr.bf16.mxu0 %v6444_v52  ;;  %v4280_v42 = vld [vmem:[%s6709_s2 + $0x740] sm:$0xff]  ;;  %v6428_v52 = vpack.c.bf16 %v4267_v53, %v4266_v51 }
0x11a8   : > { %4678 = vmatmul.mubr.f32.gmra.mrb[58].mxu1 %v4040_v9  ;;  %4753 = vmatmul.mubr.f32.gmra.mrb[52].mxu0 %v4042_v19  ;;  %v6458_v45 = vpack.c.bf16 %v4281_v18, %v4280_v42  ;;  %v4301_v9 = vld [vmem:[%s6709_s2 + $0x7e8] sm:$0xff]  ;;  %v6430_v19 = vpack.c.bf16 %v4251_v43, %v4250_v50  ;;  %v4045_v31 = vmax.f32 %v3937_v28, 0.0 }
0x11a9   : > { %4822 = vmatprep.mubr.f32.mxu1 %v4029_v15  ;;  %4897 = vmatprep.mubr.f32.mxu0 %v4031_v62  ;;  %v6464_v15 = vpack.c.bf16 %v4301_v9, %v4300_v38  ;;  %v4284_v62 = vld [vmem:[%s6709_s2 + $0x760] sm:$0xff] }
0x11aa   : > { %6415 = vmatpush3.bf16.msra.mxu1 %v6414_v24  ;;  %6447 = vmatpush3.bf16.msra.mxu0 %v6446_v36  ;;  %v6462_v24 = vpack.c.bf16 %v4283_v57, %v4282_v8  ;;  %v4252_v36 = vld [vmem:[%s6709_s2 + $0x660] sm:$0xff] }
0x11ab   : > { %6417 = vmatprep.subr.bf16.mxu1 %v6416_v2  ;;  %6449 = vmatprep.subr.bf16.mxu0 %v6448_v4  ;;  %v4285_v2 = vld [vmem:[%s6709_s2 + $0x768] sm:$0xff]  ;;  %v4270_v4 = vld [vmem:[%s6709_s2 + $0x6f0] sm:$0xff]  ;;  %v6434_v1 = vpack.c.bf16 %v4253_v59, %v4252_v36 }
0x11ac   : > { %v6466_v25 = vpack.c.bf16 %v4285_v2, %v4284_v62 }
0x11ae   : > { %6419 = vmatpush3.bf16.msra.mxu1 %v6418_v39  ;;  %6451 = vmatpush3.bf16.msra.mxu0 %v6450_v11  ;;  %v3365_v39 = vrot.slane %v7287_v47, %v7026_v34  ;;  %v6436_v11 = vpack.c.bf16 %v4271_v21, %v4270_v4  ;;  %v4030_v47 = vmax.f32 %v7313_v17, 0.0 }
0x11af   : > { %6421 = vmatprep.subr.bf16.mxu1 %v6420_v16  ;;  %6453 = vmatprep.subr.bf16.mxu0 %v6452_v56  ;;  %v4286_v16 = vld [vmem:[%s6709_s2 + $0x770] sm:$0xff]  ;;  %v4287_v56 = vld [vmem:[%s6709_s2 + $0x778] sm:$0xff] }
0x11b0   : > { %v6470_v14 = vpack.c.bf16 %v4287_v56, %v4286_v16  ;;  %v3929_v26 = vadd.f32 %v7309_v5, %v3365_v39  ;;  %v3935_v55 = vadd.f32 %v7329_v44, %v3365_v39 }
0x11b2   : > { %6423 = vmatpush3.bf16.msra.mxu1 %v6422_v32  ;;  %6455 = vmatpush3.bf16.msra.mxu0 %v6454_v33  ;;  %v4028_v34 = vmax.f32 %v3929_v26, 0.0  ;;  %v4047_v32 = vmax.f32 %v7341_v7, 0.0  ;;  %v4044_v5 = vmax.f32 %v3935_v55, 0.0  ;;  %v4046_v33 = vmax.f32 %v7334_v58, 0.0 }
0x11b3   : > { %6425 = vmatprep.subr.bf16.mxu1 %v6424_v40  ;;  %6457 = vmatprep.subr.bf16.mxu0 %v6456_v41 }
0x11b6   : > { %6427 = vmatpush3.bf16.msra.mxu1 %v6426_v46  ;;  %6459 = vmatpush3.bf16.msra.mxu0 %v6458_v45 }
0x11b7   : > { %6429 = vmatprep.subr.bf16.mxu1 %v6428_v52  ;;  %6461 = vmatprep.subr.bf16.mxu0 %v6460_v6 }
0x11ba   : > { %6431 = vmatpush3.bf16.msra.mxu1 %v6430_v19  ;;  %6463 = vmatpush3.bf16.msra.mxu0 %v6462_v24 }
0x11bb   : > { %6433 = vmatprep.subr.bf16.mxu1 %v6432_v60  ;;  %6465 = vmatprep.subr.bf16.mxu0 %v6464_v15 }
0x11be   : > { %6435 = vmatpush3.bf16.msra.mxu1 %v6434_v1  ;;  %6467 = vmatpush3.bf16.msra.mxu0 %v6466_v25 }
0x11bf   : > { %6437 = vmatprep.subr.bf16.mxu1 %v6436_v11  ;;  %6469 = vmatprep.subr.bf16.mxu0 %v6468_v54 }
0x11c2   : > { %6439 = vmatpush3.bf16.msra.mxu1 %v6438_v12  ;;  %6471 = vmatpush3.bf16.msra.mxu0 %v6470_v14 }
0x11c5   : > { %4823 = vmatmul.mubr.f32.vlgmr.msra.gmra.mrb[60].mxu1 %v4028_v34  ;;  %4898 = vmatmul.mubr.f32.vlgmr.msra.gmra.mrb[54].mxu0 %v4030_v47 }
0x11c6   : > { %4827 = vmatprep.mubr.f32.mxu1 %v4045_v31  ;;  %4902 = vmatprep.mubr.f32.mxu0 %v4047_v32 }
0x11c9   : > { %4828 = vmatmul.mubr.f32.gmra.mrb[62].mxu1 %v4044_v5  ;;  %4903 = vmatmul.mubr.f32.gmra.mrb[56].mxu0 %v4046_v33 }
0x1236   : > { %v5536_v13 = vpop.f32.mrb[48].mxu1  ;;  %v5574_v61 = vpop.f32.mrb[42].mxu0 }
0x1237   : > { %v5537_v30 = vpop.f32.mrb[49].mxu1  ;;  %v5575_v40 = vpop.f32.mrb[43].mxu0 }
0x1238   : > { %v5538_v17 = vadd.f32 %v5537_v30, %v5536_v13  ;;  %v5576_v41 = vadd.f32 %v5575_v40, %v5574_v61 }
0x123a   : > { %v4375_v44 = vadd.f32 %v5538_v17, %v5371_v29  ;;  %v5539_v42 = vpop.f32.mrb[50].mxu1  ;;  %v5577_v18 = vpop.f32.mrb[44].mxu0 }
0x123b   : > { %v5540_v7 = vpop.f32.mrb[51].mxu1  ;;  %v5578_v51 = vpop.f32.mrb[45].mxu0 }
0x123c   : > { %v4450_v53 = vadd.f32 %v5576_v41, %v4375_v44  ;;  %v5541_v23 = vadd.f32 %v5540_v7, %v5539_v42  ;;  %v5579_v35 = vadd.f32 %v5578_v51, %v5577_v18 }
0x123e   : > { %v4380_v46 = vadd.f32 %v5541_v23, %v5371_v29 }
0x1240   : > { %v4455_v45 = vadd.f32 %v5579_v35, %v4380_v46 }
0x1256   : > { %v5612_v58 = vpop.f32.mrb[52].mxu1  ;;  %v5650_v50 = vpop.f32.mrb[46].mxu0 }
0x1257   : > { %v5613_v43 = vpop.f32.mrb[53].mxu1  ;;  %v5651_v52 = vpop.f32.mrb[47].mxu0 }
0x1258   : > { %v5614_v6 = vadd.f32 %v5613_v43, %v5612_v58  ;;  %v5652_v8 = vadd.f32 %v5651_v52, %v5650_v50 }
0x125a   : > { %v4525_v57 = vadd.f32 %v5614_v6, %v4450_v53  ;;  %v5615_v20 = vpop.f32.mrb[54].mxu1  ;;  %v5653_v48 = vpop.f32.mrb[48].mxu0 }
0x125b   : > { %v5616_v38 = vpop.f32.mrb[55].mxu1  ;;  %v5654_v9 = vpop.f32.mrb[49].mxu0 }
0x125c   : > { %v4600_v19 = vadd.f32 %v5652_v8, %v4525_v57  ;;  %v5617_v24 = vadd.f32 %v5616_v38, %v5615_v20  ;;  %v5655_v36 = vadd.f32 %v5654_v9, %v5653_v48  ;;  %v6547_v57 = vld [vmem:[%s6714_s3] sm:$0xff] }
0x125d   : > { %v4939_v20 = vrot.slane %v6547_v57, %v7284_v27  ;;  %v4945_v38 = vrot.slane %v6547_v57, %v7219_v3 }
0x125e   : > { %v4530_v59 = vadd.f32 %v5617_v24, %v4455_v45 }
0x1260   : > { %v4605_v60 = vadd.f32 %v5655_v36, %v4530_v59 }
0x1277   : > { %v5688_v15 = vpop.f32.mrb[56].mxu1  ;;  %v5726_v62 = vpop.f32.mrb[50].mxu0 }
0x1278   : > { %v5689_v2 = vpop.f32.mrb[57].mxu1  ;;  %v5727_v4 = vpop.f32.mrb[51].mxu0 }
0x1279   : > { %v5690_v21 = vadd.f32 %v5689_v2, %v5688_v15  ;;  %v5728_v10 = vadd.f32 %v5727_v4, %v5726_v62 }
0x127b   : > { %v4675_v63 = vadd.f32 %v5690_v21, %v4600_v19  ;;  %v5691_v1 = vpop.f32.mrb[58].mxu1  ;;  %v5729_v25 = vpop.f32.mrb[52].mxu0 }
0x127c   : > { %v5692_v22 = vpop.f32.mrb[59].mxu1  ;;  %v5730_v39 = vpop.f32.mrb[53].mxu0 }
0x127d   : > { %v4750_v11 = vadd.f32 %v5728_v10, %v4675_v63  ;;  %v5693_v54 = vadd.f32 %v5692_v22, %v5691_v1  ;;  %v5731_v37 = vadd.f32 %v5730_v39, %v5729_v25 }
0x127f   : > { %v4680_v16 = vadd.f32 %v5693_v54, %v4605_v60 }
0x1281   : > { %v4755_v56 = vadd.f32 %v5731_v37, %v4680_v16  ;;  %v5020_v16 = vld [vmem:[%s7593_s11] sm:$0xff] (!%p5372_p5) }
0x1298   : > { %v5764_v12 = vpop.f32.mrb[60].mxu1  ;;  %v5802_v14 = vpop.f32.mrb[54].mxu0 }
0x1299   : > { %v5765_v26 = vpop.f32.mrb[61].mxu1  ;;  %v5803_v28 = vpop.f32.mrb[55].mxu0 }
0x129a   : > { %v5766_v34 = vadd.f32 %v5765_v26, %v5764_v12  ;;  %v5804_v47 = vadd.f32 %v5803_v28, %v5802_v14  ;;  %v5022_v14 = vld [vmem:[%s7593_s11 + $0x10] sm:$0xff] (!%p5372_p5)  ;;  %v5023_v26 = vld [vmem:[%s7593_s11 + $0x18] sm:$0xff] (!%p5372_p5)  ;;  %v6595_v28 = vmov (!%p5372_p5), 0.0|0.0  }
0x129b   : > { %6472 = vmatprep.subr.bf16.mxu0 (!%p5372_p5), %v6595_v28 }
0x129c   : > { %v4825_v55 = vadd.f32 %v5766_v34, %v4750_v11  ;;  %v5767_v31 = vpop.f32.mrb[62].mxu1  ;;  %v5805_v32 = vpop.f32.mrb[56].mxu0  ;;  %v6597_v34 = vmov (!%p5372_p5), 0.0  }
0x129d   : > { %v5768_v5 = vpop.f32.mrb[63].mxu1  ;;  %v5806_v33 = vpop.f32.mrb[57].mxu0  ;;  %6053 = vmatprep.mubr.msk.f32.mxu0 (!%p5372_p5), %vm6596_vm6, %v6597_v34 }
0x129e   : > { %v4900_v13 = vadd.f32 %v5804_v47, %v4825_v55  ;;  %v5769_v61 = vadd.f32 %v5768_v5, %v5767_v31  ;;  %v5807_v29 = vadd.f32 %v5806_v33, %v5805_v32  ;;  %v6476_v47 = vpack.c.bf16 (!%p5372_p5), %v5023_v26, %v5022_v14 }
0x12a0   : > { %v4830_v30 = vadd.f32 %v5769_v61, %v4755_v56  ;;  %v4908_v40 = vadd.f32 %v4900_v13, %v7045_v49  ;;  %v5021_v56 = vld [vmem:[%s7593_s11 + $0x8] sm:$0xff] (!%p5372_p5) }
0x12a1   : > { %v6473_v12 = vpack.c.bf16 (!%p5372_p5), %v5021_v56, %v5020_v16 }
0x12a2   : > { %v4905_v17 = vadd.f32 %v5807_v29, %v4830_v30  ;;  %v4910_v41 = vsel %vm585_vm1, %v4908_v40, 0.0  ;;  %v5373_v30 = vld [vmem:[%s7591_s9] ss:$0 sm:$0xff] (!%p5372_p5) }
0x12a3   : > { %4911 = vadd.xlane.f32.xlu1 %v4910_v41  ;;  %6474 = vmatpush3.bf16.msra.mxu0 (!%p5372_p5), %v6473_v12  ;;  %v5374_v41 = vld [vmem:[%s7592_s10] ss:$0 sm:$0xff] (!%p5372_p5) }
0x12a4   : > { %v4909_v44 = vadd.f32 %v4905_v17, %v7060_v0  ;;  %6475 = vmatprep.subr.bf16.mxu0 (!%p5372_p5), %v6595_v28 }
0x12a6   : > { %v4913_v42 = vsel %vm585_vm1, %v4909_v44, 0.0 }
0x12a7   : > { %4914 = vadd.xlane.f32.xlu1 %v4913_v42  ;;  %6477 = vmatpush3.bf16.msra.mxu0 (!%p5372_p5), %v6476_v47 }
0x1330   : > { %v4912_v18 = vpop.xlane.xlu1 %4911 }
0x1331   : > { %v4916_v7 = vmul.f32 0.03125, %v4912_v18 }
0x1333   : > { %v4918_v51 = vsub.f32 %v4908_v40, %v4916_v7 }
0x1334   : > { %v4915_v53 = vpop.xlane.xlu1 %4914 }
0x1335   : > { %v4917_v23 = vmul.f32 0.03125, %v4915_v53  ;;  %v4920_v35 = vmul.f32 %v4918_v51, %v4918_v51 }
0x1337   : > { %v4919_v46 = vsub.f32 %v4909_v44, %v4917_v23  ;;  %v4922_v45 = vsel %vm585_vm1, %v4920_v35, 0.0 }
0x1338   : > { %4923 = vadd.xlane.f32.xlu0 %v4922_v45 }
0x1339   : > { %v4921_v49 = vmul.f32 %v4919_v46, %v4919_v46 }
0x133b   : > { %v4925_v58 = vsel %vm585_vm1, %v4921_v49, 0.0 }
0x133c   : > { %4926 = vadd.xlane.f32.xlu1 %v4925_v58 }
0x13c5   : > { %v4924_v50 = vpop.xlane.xlu0 %4923 }
0x13c6   : > { %v4928_v0 = vmul.f32 0.03125, %v4924_v50 }
0x13c8   : > { %v4930_v43 = vadd.f32 1e-05, %v4928_v0 }
0x13c9   : > { %v4927_v52 = vpop.xlane.xlu1 %4926 }
0x13ca   : > { %6543 = vrsqrt.f32 %v4930_v43  ;;  %v4929_v6 = vmul.f32 0.03125, %v4927_v52 }
0x13cc   : > { %v4931_v8 = vadd.f32 1e-05, %v4929_v6 }
0x13ce   : > { %6545 = vrsqrt.f32 %v4931_v8 }
0x13d4   : > { %v6544_v48 = vpop.eup %6543 }
0x13d5   : > { %v4934_v9 = vmul.f32 %v6544_v48, %v4918_v51 }
0x13d7   : > { %v4940_v19 = vmul.f32 %v4939_v20, %v4934_v9 }
0x13d8   : > { %v6546_v24 = vpop.eup %6545 }
0x13d9   : > { %v4946_v36 = vadd.f32 %v4945_v38, %v4940_v19  ;;  %v4935_v59 = vmul.f32 %v6546_v24, %v4919_v46  ;;  %4953 = sbr.rel (%p5372_p5) target bundleno = 5628 (0x15fc), region = 80  ;;  %v5375_v46 = vld [vmem:[%s7594_s12] ss:$0 sm:$0xff] (!%p5372_p5) }
0x13db   : > { %4948 = vst.msk [vmem:[#allocation2] sm:$0xff] %vm585_vm1, %v4946_v36  ;;  %v4941_v60 = vmul.f32 %v4939_v20, %v4935_v59  ;;  %v4962_v3 = vsel (!%p5372_p5), %vm4961_vm5, %v4946_v36, 0.0 }
0x13dd   : > { %v4947_v15 = vadd.f32 %v4945_v38, %v4941_v60 }
0x13df   : > { %4949 = vst.msk [vmem:[#allocation2 + $0x8] sm:$0xff] %vm585_vm1, %v4947_v15  ;;  %v4958_v62 = vrot.slane (!%p5372_p5), %v4947_v15, 7 }
0x13e1   : > { %v4966_v27 = vsel %vm4965_vm4, %v4958_v62, 0.0 }
0x13e2   : > { %4967 = vadd.xlane.f32.xlu0 %v4966_v27 }
0x13e6   : > { %4963 = vadd.xlane.f32.xlu0 %v4962_v3 }
0x146f   : > { %v4968_v2 = vpop.xlane.xlu0 %4967 }
0x1470   : > { %v4970_v4 = vmul.f32 0.03125, %v4968_v2 }
0x1472   : > { %v4973_v21 = vrot.slane %v4970_v4, 1 }
0x1473   : > { %v4964_v10 = vpop.xlane.xlu0 %4963 }
0x1474   : > { %v4977_v63 = vsub.f32 %v4947_v15, %v4973_v21  ;;  %v4969_v1 = vmul.f32 0.03125, %v4964_v10 }
0x1476   : > { %v4976_v25 = vsub.f32 %v4946_v36, %v4969_v1  ;;  %v4979_v22 = vmul.f32 %v4977_v63, %v4977_v63 }
0x1478   : > { %v4978_v39 = vmul.f32 %v4976_v25, %v4976_v25  ;;  %v4982_v11 = vrot.slane %v4979_v22, 7 }
0x147a   : > { %v4988_v54 = vsel %vm4965_vm4, %v4982_v11, 0.0  ;;  %v4985_v37 = vsel %vm4961_vm5, %v4978_v39, 0.0 }
0x147b   : > { %4989 = vadd.xlane.f32.xlu1 %v4988_v54 }
0x147f   : > { %4986 = vadd.xlane.f32.xlu1 %v4985_v37 }
0x1508   : > { %v4990_v55 = vpop.xlane.xlu1 %4989 }
0x1509   : > { %v4992_v31 = vmul.f32 0.03125, %v4990_v55 }
0x150b   : > { %v4994_v32 = vadd.f32 1e-05, %v4992_v31 }
0x150c   : > { %v4987_v5 = vpop.xlane.xlu1 %4986 }
0x150d   : > { %6548 = vrsqrt.f32 %v4994_v32  ;;  %v4991_v33 = vmul.f32 0.03125, %v4987_v5 }
0x150f   : > { %v4993_v13 = vadd.f32 1e-05, %v4991_v33 }
0x1511   : > { %6550 = vrsqrt.f32 %v4993_v13 }
0x1517   : > { %v6549_v61 = vpop.eup %6548 }
0x1518   : > { %v4999_v29 = vrot.slane %v6549_v61, 1 }
0x151a   : > { %v5003_v40 = vmul.f32 %v4999_v29, %v4977_v63 }
0x151b   : > { %v6551_v17 = vpop.eup %6550 }
0x151c   : > { %v5011_v44 = vmul.f32 %v5373_v30, %v5003_v40  ;;  %v5002_v42 = vmul.f32 %v6551_v17, %v4976_v25 }
0x151e   : > { %v5010_v18 = vmul.f32 %v5373_v30, %v5002_v42  ;;  %v5019_v7 = vadd.f32 %v5374_v41, %v5011_v44 }
0x1520   : > { %v5018_v51 = vadd.f32 %v5374_v41, %v5010_v18  ;;  %v5034_v23 = vrot.slane %v5019_v7, 6 }
0x1522   : > { %v5033_v53 = vrot.slane %v5018_v51, 7 }
0x1524   : > { %v5036_v35 = vsel %vm5035_vm7, %v5034_v23, %v5033_v53 }
0x1525   : > { %6054 = vmatmul.mubr.msk.f32.vlgmr.msra.gmra.mrb[0].mxu0 %vm585_vm1, %v5036_v35 }
0x15f8   : > { %v5105_v45 = vpop.f32.mrb[0].mxu0 }
0x15f9   : > { %v5106_v49 = vadd.f32 %v5375_v46, %v5105_v45  ;;  %v6055_v58 = vpop.f32.mrb[1].mxu0 }
0x15fb   : > { %5109 = vst [vmem:[#allocation3] sm:$0x3] %v5106_v49 }
0x15fc PF: > { %p6488_p6 = scmp.eq.s32.totalorder %s6675_s26, 1  ;;  %s6598_s30 = smov [#allocation3]  }
0x15fd   : > { %s5117_s13 = sshll.u32 %s6598_s30, 4  ;;  %s5118_s13 = int_to_ptr.vmem [resolvable:$true] %s5117_s13 }
0x15fe   : > { %s6552_s27 = scalar_lea.vmem %s5118_s13, 32  ;;  %p6559_p10 = scmp.lt.s32.totalorder %s5118_s13, %s5118_s13 }
0x15ff   : > { %p6553_p7 = scmp.ne.s32.totalorder %s5118_s13, %s6552_s27  ;;  %p6560_p11 = scmp.lt.s32.totalorder %s6552_s27, %s6552_s27 }
0x1601   : > { %p6554_p8 = pnand %p6553_p7, %p6488_p6  ;;  %p6561_p12 = por %p6560_p11, %p6559_p10 }
0x1603   : > { %p6555_p9 = pneg %p6554_p8 }
0x1605   : > { %p6562_p13 = pnand %p6561_p12, %p6555_p9 }
0x1607   : > { %6565 = shalt.err (!%p6562_p13)
}
0x1608   : > { %s7606_s17 = sld [smem:[#allocation10_spill]] }
0x160e   : > { %s6566_s1 = scalar_lea.hbm %s7606_s17, 32 }
0x160f   : > { %p6567_p0 = scmp.ne.s32.totalorder %s7606_s17, %s6566_s1  ;;  %p6572_p3 = scmp.lt.u32.totalorder %s6566_s1, %s7606_s17 }
0x1611   : > { %p6568_p1 = pnand %p6567_p0, %p6488_p6 }
0x1613   : > { %p6569_p2 = pneg %p6568_p1 }
0x1615   : > { %p6574_p4 = pnand %p6572_p3, %p6569_p2 }
0x1617   : > { %6577 = shalt.err (!%p6574_p4)
}
0x1618   : > { %6485 = dma.vmem_to_hbm [thread:$0]  (%p6488_p6), %s5118_s13, 32, %s7606_s17, [#allocation4]  }
0x1619   : > { %6583 = dma.done.wait (%p6488_p6), [#allocation4], 32  }
0x161a   : > { %6585 = vsyncadd (%p6488_p6), [#allocation4], 4294967264 }
0x161b PF: > { %s7607_s19 = sld [smem:[#allocation6_spill]] }
0x1621   : > { %s24_s25 = sadd.s32 1, %s7607_s19  }
0x1622   : > { %p21_p5 = scmp.ge.s32.totalorder %s24_s25, 4  }
0x1624   :  { %23 = sbr.rel (!%p21_p5) target bundleno = 6 (0x6), region = 140 }
0x162b   :  { %5130 = vsyncpa [#allocation4], 1 }
0x162c   :  { %5132 = vsyncpa [#allocation4 + $0x1], 1 }

</bundles_post_ra>
